<compile_context>
chip_gen: v6e
topology: v6e:2x2x1
jax: 0.10.0
libtpu: 0.0.40
codegen_flags: <defaults>
</compile_context>

<pallas_src>
import math

import jax
import jax.numpy as jnp
from jax import lax
from jax.experimental import pallas as pl
from jax.experimental.pallas import tpu as pltpu


N_HEAD = 4
D_K = 32


# ----------------------------------------------------------------------------
# Pallas kernel: one (batch, spatial-tile) block of one stage, fully fused.
# ----------------------------------------------------------------------------
def _tcross_attn_kernel(mu_ref,          # SMEM (1,)        blend weight mu
                        xkv_ref,         # (1, T, C, HWt)   evt-rec keys/values (bf16)
                        xq_ref,          # (1, C, HWt)      efnet queries + residual (f32)
                        sel_ref,         # (NH, D)          head reduce (1/sqrt(dk) folded)
                        ex_ref,          # (C, NH)          head expansion (0/1)
                        wq_ref, bq_ref,  # (D, C), (D, 1)
                        wk_ref, bk_ref,  # (D, C), (D, 1)
                        wm_ref, bm_ref,  # (C, C), (C, 1)   LTAE mlp Linear
                        wa_ref, ba_ref,  # (C, C), (C, 1)   align 1x1 conv
                        out_ref):        # (1, C, HWt)
    T = xkv_ref.shape[1]
    f32 = jnp.float32

    xq = xq_ref[0]                                                     # (C, HW) f32

    # ---- Q projection: lane-dense MXU matmul, default precision, f32 acc ---
    q = jnp.dot(wq_ref[...], xq, preferred_element_type=f32) + bq_ref[...]

    sel = sel_ref[...]                                                 # (NH, D)
    ex = ex_ref[...]                                                   # (C, NH)
    wk = wk_ref[...]
    bk = bk_ref[...]

    # ---- pass 1: per-t scores + running max (T unrolled) --------------------
    scores = []
    m = None
    for t in range(T):
        x_t = xkv_ref[0, t]                                            # (C, HW) bf16
        k_t = jnp.dot(wk, x_t, preferred_element_type=f32) + bk        # (D, HW)
        s_t = jnp.dot(sel, q * k_t, preferred_element_type=f32)        # (NH, HW)
        scores.append(s_t)
        m = s_t if m is None else jnp.maximum(m, s_t)

    # ---- pass 2: un-normalized softmax + value accumulation -----------------
    # values are the raw x_evt[t]; a single (C, HW) accumulator, per-head
    # attention weights expanded with a tiny constant matmul.
    den = jnp.zeros_like(m)
    acc = jnp.zeros_like(xq)
    for t in range(T):
        p_t = jnp.exp(scores[t] - m)                                   # (NH, HW)
        den = den + p_t
        x_t = xkv_ref[0, t]
        acc = acc + jnp.dot(ex, p_t, preferred_element_type=f32) * x_t.astype(f32)

    inv = pl.reciprocal(den, approx=True)                              # EUP slot
    att_out = acc * jnp.dot(ex, inv, preferred_element_type=f32)       # (C, HW)

    # ---- LTAE mlp (Linear + ReLU) and align 1x1 conv, channel-major ---------
    # TODO(synk): GroupNorm/BatchNorm1d/positional-encoding/dropout of LTAE2d
    # omitted (module source not provided in the spec).
    h1 = jnp.dot(wm_ref[...], att_out, preferred_element_type=f32) + bm_ref[...]
    h1 = jnp.maximum(h1, 0.0)
    mrg = jnp.dot(wa_ref[...], h1, preferred_element_type=f32) + ba_ref[...]

    mu = mu_ref[0]
    out_ref[0] = ((1.0 - mu) * xq + mu * mrg).astype(out_ref.dtype)


# ----------------------------------------------------------------------------
# pallas_call wrapper for one stage
# ----------------------------------------------------------------------------
def _vmem_capacity_bytes():
    try:
        return int(pltpu.get_tpu_info().vmem_capacity_bytes)
    except Exception:
        return 64 << 20            # conservative (v7x per-TC) fallback


def _pick_hw_tile(hw, kv_bytes_per_col, budget):
    """Lane-dense tile of the flattened spatial axis.  Keeps the streamed
    evt-rec block under `budget` bytes and prefers >=2 spatial steps so the
    auto-pipeline overlaps DMA with compute (and v7x's 2 TCs stay balanced)."""
    cap_cols = max(1, budget // max(1, kv_bytes_per_col))
    if hw % 128 == 0:
        tile = 128
        while tile * 2 <= min(hw, cap_cols) and hw % (tile * 2) == 0:
            tile *= 2
        if hw // tile == 1 and tile >= 256:
            tile //= 2
        return tile
    # Non-128-multiple spatial size: largest divisor that fits the budget
    # (avoids a single huge block blowing VMEM on large odd feature maps).
    if hw <= cap_cols:
        return hw
    best, d = 1, 1
    while d * d <= hw:
        if hw % d == 0:
            if d <= cap_cols:
                best = max(best, d)
            od = hw // d
            if od <= cap_cols:
                best = max(best, od)
        d += 1
    return best


def _tcross_attn_stage(x_kv, x_q, p):
    """x_kv: (B, T, C, HW) bf16/f32, x_q: (B, C, HW) f32 -> (B, C, HW) f32."""
    B, T, C, HW = x_kv.shape
    D = p["wq"].shape[0]
    NH = N_HEAD

    vmem_cap = _vmem_capacity_bytes()
    kv_itemsize = jnp.dtype(x_kv.dtype).itemsize
    kv_budget = (3 << 20) if vmem_cap >= (96 << 20) else (2 << 20)
    hw_t = _pick_hw_tile(HW, kv_itemsize * T * C, kv_budget)
    grid = (B, HW // hw_t)

    flops = 2 * B * HW * (D * C * (T + 1)
                          + T * (D + NH * D + C * NH + C)
                          + 2 * C * C)
    bytes_accessed = (B * HW * (kv_itemsize * T * C + 4 * 2 * C)
                      + 4 * (2 * D * C + 2 * C * C + 2 * D + 2 * C
                             + NH * D + C * NH + 1))

    kv_block = kv_itemsize * T * C * hw_t
    io_block = 4 * C * hw_t * 2                       # xq + out blocks (f32)
    weight_bytes = 4 * (2 * D * C + 2 * C * C + 2 * D + 2 * C + NH * D + C * NH)
    live_bytes = 4 * hw_t * (3 * D + 3 * C + (T + 2) * NH)
    need = 2 * (kv_block + io_block) + 2 * weight_bytes + live_bytes + (4 << 20)
    vmem_limit = int(min(max(need, 16 << 20), int(vmem_cap * 0.55)))

    w2 = lambda b, s: (0, 0)            # resident constants: fixed block index

    return pl.pallas_call(
        _tcross_attn_kernel,
        out_shape=jax.ShapeDtypeStruct((B, C, HW), jnp.float32),
        grid_spec=pltpu.PrefetchScalarGridSpec(
            num_scalar_prefetch=0,
            grid=grid,
            in_specs=[
                pl.BlockSpec(memory_space=pltpu.MemorySpace.SMEM),          # mu
                pl.BlockSpec((1, T, C, hw_t), lambda b, s: (b, 0, 0, s)),   # x_kv
                pl.BlockSpec((1, C, hw_t), lambda b, s: (b, 0, s)),         # x_q
                pl.BlockSpec((NH, D), w2),                                  # sel
                pl.BlockSpec((C, NH), w2),                                  # ex
                pl.BlockSpec((D, C), w2), pl.BlockSpec((D, 1), w2),         # wq, bq
                pl.BlockSpec((D, C), w2), pl.BlockSpec((D, 1), w2),         # wk, bk
                pl.BlockSpec((C, C), w2), pl.BlockSpec((C, 1), w2),         # wm, bm
                pl.BlockSpec((C, C), w2), pl.BlockSpec((C, 1), w2),         # wa, ba
            ],
            out_specs=pl.BlockSpec((1, C, hw_t), lambda b, s: (b, 0, s)),
        ),
        compiler_params=pltpu.CompilerParams(
            dimension_semantics=("parallel", "parallel"),
            vmem_limit_bytes=vmem_limit),
        cost_estimate=pl.CostEstimate(
            flops=flops,
            transcendentals=B * HW * NH * (T + 1),
            bytes_accessed=bytes_accessed),
    )(p["mu"], x_kv, x_q, p["sel"], p["ex"],
      p["wq"], p["bq"], p["wk"], p["bk"],
      p["wm"], p["bm"], p["wa"], p["ba"])


# ----------------------------------------------------------------------------
# Parameters / module wrapper
# ----------------------------------------------------------------------------
def _head_constants(c):
    d = N_HEAD * D_K
    gc = c // N_HEAD
    head_of_d = jnp.arange(d) // D_K
    sel = (head_of_d[None, :] == jnp.arange(N_HEAD)[:, None]).astype(jnp.float32)
    sel = sel * jnp.float32(1.0 / math.sqrt(D_K))     # fold 1/sqrt(d_k)
    head_of_c = jnp.arange(c) // gc
    ex = (head_of_c[:, None] == jnp.arange(N_HEAD)[None, :]).astype(jnp.float32)
    return sel, ex


def _init_stage_params(key, c):
    d = N_HEAD * D_K
    ks = jax.random.split(key, 8)

    def u(k, shape, fan_in):
        b = 1.0 / math.sqrt(fan_in)
        return jax.random.uniform(k, shape, jnp.float32, -b, b)

    sel, ex = _head_constants(c)
    return dict(
        wq=u(ks[0], (d, c), c), bq=u(ks[1], (d, 1), c),
        wk=u(ks[2], (d, c), c), bk=u(ks[3], (d, 1), c),
        wm=u(ks[4], (c, c), c), bm=u(ks[5], (c, 1), c),
        wa=u(ks[6], (c, c), c), ba=u(ks[7], (c, 1), c),
        sel=sel, ex=ex,
        mu=jnp.zeros((1,), jnp.float32),   # PyTorch init: mu = 0
    )


class TempCrossAttnModulesPallas:
    """JAX/Pallas re-implementation of TempCrossAttnModules.forward.

    f_evt_rec_stage_T_feats[i]: (B, T, C_i, H_i, W_i)  temporal evt-rec feats
    f_efnet_list[i]:            (B, C_i, H_i, W_i)     efnet feats (queries)
    """

    def __init__(self, key, efnet_num_channels):
        self.num_stages = len(efnet_num_channels)
        self.params = []
        for i in range(self.num_stages):
            assert efnet_num_channels[i] % N_HEAD == 0
            key, sub = jax.random.split(key)
            self.params.append(_init_stage_params(sub, efnet_num_channels[i]))

    def forward(self, f_evt_rec_stage_T_feats, f_efnet_list):
        merge_feats = []
        for i in range(self.num_stages):
            x_kv5 = f_evt_rec_stage_T_feats[i]
            x_q4 = f_efnet_list[i]
            B, T, C, H, W = x_kv5.shape
            assert x_q4.shape == (B, C, H, W)
            HW = H * W
            # dominant HBM stream (temporal KV) in bf16; queries/residual f32
            x_kv = x_kv5.reshape(B, T, C, HW).astype(jnp.bfloat16)   # free reshape
            x_q = x_q4.reshape(B, C, HW).astype(jnp.float32)         # free reshape

            if HW < 128 and B > 1:
                # small feature map: fold batch into the lane axis so stores
                # are lane-dense (unmasked).  Tiny tensors -> cheap transpose.
                x_kv_f = jnp.transpose(x_kv, (1, 2, 0, 3)).reshape(1, T, C, B * HW)
                x_q_f = jnp.transpose(x_q, (1, 0, 2)).reshape(1, C, B * HW)
                out = _tcross_attn_stage(x_kv_f, x_q_f, self.params[i])
                out = jnp.transpose(out.reshape(C, B, HW), (1, 0, 2))
            else:
                out = _tcross_attn_stage(x_kv, x_q, self.params[i])
            merge_feats.append(out.reshape(B, C, H, W))
        return merge_feats


# ----------------------------------------------------------------------------
# Pure-JAX reference (f32, HIGHEST precision) for the correctness check
# ----------------------------------------------------------------------------
def _stage_ref(p, x_kv, x_q):
    B, T, C, H, W = x_kv.shape
    nh, dk = N_HEAD, D_K
    gc = C // nh
    hp = lax.Precision.HIGHEST
    xk = x_kv.reshape(B, T, C, H * W).astype(jnp.float32)
    xq = x_q.reshape(B, C, H * W).astype(jnp.float32)
    q = jnp.einsum("dc,bcp->bdp", p["wq"], xq, precision=hp) + p["bq"][None]
    k = jnp.einsum("dc,btcp->btdp", p["wk"], xk, precision=hp) + p["bk"][None, None]
    qh = q.reshape(B, nh, dk, -1)
    kh = k.reshape(B, T, nh, dk, -1)
    s = jnp.sum(qh[:, None] * kh, axis=3) / jnp.sqrt(jnp.float32(dk))  # (B,T,nh,P)
    a = jax.nn.softmax(s, axis=1)
    vh = xk.reshape(B, T, nh, gc, -1)
    o = jnp.sum(a[:, :, :, None, :] * vh, axis=1).reshape(B, C, -1)
    h1 = jnp.maximum(
        jnp.einsum("oc,bcp->bop", p["wm"], o, precision=hp) + p["bm"][None], 0.0)
    mrg = jnp.einsum("oc,bcp->bop", p["wa"], h1, precision=hp) + p["ba"][None]
    out = (1.0 - p["mu"]) * xq + p["mu"] * mrg
    return out.reshape(B, C, H, W)


# ----------------------------------------------------------------------------
if __name__ == "__main__":
    B, T = 2, 8
    wf = 32
    num_stages = 2
    efnet_channels = [wf * 2 ** i for i in range(num_stages)]   # [32, 64]
    H0 = W0 = 16

    module = TempCrossAttnModulesPallas(jax.random.PRNGKey(0), efnet_channels)
    # The PyTorch module initializes mu to 0 (output would trivially equal
    # f_efnet); use trained-like non-zero mu so the check exercises the
    # full fused attention + mlp + 1x1-conv + blend path.
    module.params[0]["mu"] = jnp.array([0.3], jnp.float32)
    module.params[1]["mu"] = jnp.array([0.7], jnp.float32)

    dkey = jax.random.PRNGKey(0)
    f_evt_rec_stage_T_feats, f_efnet_list = [], []
    for i, c in enumerate(efnet_channels):
        h, w = H0 // (2 ** i), W0 // (2 ** i)
        dkey, k1, k2 = jax.random.split(dkey, 3)
        f_evt_rec_stage_T_feats.append(
            jax.random.normal(k1, (B, T, c, h, w), jnp.float32))
        f_efnet_list.append(jax.random.normal(k2, (B, c, h, w), jnp.float32))

    merge_feats = module.forward(f_evt_rec_stage_T_feats, f_efnet_list)
    jax.block_until_ready(merge_feats)

    # Tolerance loosened vs. the f32/HIGHEST reference because the kernel
    # streams the temporal KV tensor in bf16 and uses default MXU precision
    # (f32 accumulation) — per the performance review.
    for i in range(num_stages):
        ref = _stage_ref(module.params[i],
                         f_evt_rec_stage_T_feats[i], f_efnet_list[i])
        assert merge_feats[i].shape == f_efnet_list[i].shape
        err = jnp.max(jnp.abs(merge_feats[i] - ref))
        assert jnp.allclose(merge_feats[i], ref, rtol=4e-2, atol=4e-2), (
            f"stage {i} max err {err:.3e}")

    print("KERNEL_OK")
</pallas_src>

<mosaic_0001>
module attributes {stable_mosaic.version = 11 : i64} {
  func.func @_tcross_attn_kernel(%arg0: i32, %arg1: i32, %arg2: memref<1xf32, #tpu.memory_space<smem>>, %arg3: memref<1x8x32x128xbf16, #tpu.memory_space<vmem>>, %arg4: memref<1x32x128xf32, #tpu.memory_space<vmem>>, %arg5: memref<4x128xf32, #tpu.memory_space<vmem>>, %arg6: memref<32x4xf32, #tpu.memory_space<vmem>>, %arg7: memref<128x32xf32, #tpu.memory_space<vmem>>, %arg8: memref<128x1xf32, #tpu.memory_space<vmem>>, %arg9: memref<128x32xf32, #tpu.memory_space<vmem>>, %arg10: memref<128x1xf32, #tpu.memory_space<vmem>>, %arg11: memref<32x32xf32, #tpu.memory_space<vmem>>, %arg12: memref<32x1xf32, #tpu.memory_space<vmem>>, %arg13: memref<32x32xf32, #tpu.memory_space<vmem>>, %arg14: memref<32x1xf32, #tpu.memory_space<vmem>>, %arg15: memref<1x32x128xf32, #tpu.memory_space<vmem>>) attributes {dimension_semantics = [#tpu.dimension_semantics<parallel>, #tpu.dimension_semantics<parallel>], iteration_bounds = array<i64: 2, 2>, scalar_prefetch = 0 : i64, scratch_operands = 0 : i64, tpu.core_type = #tpu.core_type<tc>, window_params = [{transform_indices = @transform_0, window_bounds = array<i64: 1>}, {transform_indices = @transform_1, window_bounds = array<i64: 1, 8, 32, 128>}, {transform_indices = @transform_2, window_bounds = array<i64: 1, 32, 128>}, {pipeline_mode = #tpu.pipeline_mode<synchronous>, transform_indices = @transform_3, window_bounds = array<i64: 4, 128>}, {pipeline_mode = #tpu.pipeline_mode<synchronous>, transform_indices = @transform_4, window_bounds = array<i64: 32, 4>}, {pipeline_mode = #tpu.pipeline_mode<synchronous>, transform_indices = @transform_5, window_bounds = array<i64: 128, 32>}, {pipeline_mode = #tpu.pipeline_mode<synchronous>, transform_indices = @transform_6, window_bounds = array<i64: 128, 1>}, {pipeline_mode = #tpu.pipeline_mode<synchronous>, transform_indices = @transform_7, window_bounds = array<i64: 128, 32>}, {pipeline_mode = #tpu.pipeline_mode<synchronous>, transform_indices = @transform_8, window_bounds = array<i64: 128, 1>}, {pipeline_mode = #tpu.pipeline_mode<synchronous>, transform_indices = @transform_9, window_bounds = array<i64: 32, 32>}, {pipeline_mode = #tpu.pipeline_mode<synchronous>, transform_indices = @transform_10, window_bounds = array<i64: 32, 1>}, {pipeline_mode = #tpu.pipeline_mode<synchronous>, transform_indices = @transform_11, window_bounds = array<i64: 32, 32>}, {pipeline_mode = #tpu.pipeline_mode<synchronous>, transform_indices = @transform_12, window_bounds = array<i64: 32, 1>}, {transform_indices = @transform_13, window_bounds = array<i64: 1, 32, 128>}]} {
    %c0 = arith.constant 0 : index
    %c0_0 = arith.constant 0 : index
    %c0_1 = arith.constant 0 : index
    %0 = vector.load %arg4[%c0, %c0_0, %c0_1] : memref<1x32x128xf32, #tpu.memory_space<vmem>>, vector<1x32x128xf32>
    %1 = vector.shape_cast %0 : vector<1x32x128xf32> to vector<32x128xf32>
    %c0_2 = arith.constant 0 : index
    %c0_3 = arith.constant 0 : index
    %2 = vector.load %arg7[%c0_2, %c0_3] : memref<128x32xf32, #tpu.memory_space<vmem>>, vector<128x32xf32>
    %cst = arith.constant dense<0.000000e+00> : vector<128x128xf32>
    %3 = tpu.matmul %2, %1, %cst {dimension_numbers = #tpu.dot_dimension_numbers<[1], [0], [0], [1], [0, 0, 1, 1], [], []>} : vector<128x32xf32>, vector<32x128xf32>, vector<128x128xf32> -> vector<128x128xf32>
    %c0_4 = arith.constant 0 : index
    %c0_5 = arith.constant 0 : index
    %4 = vector.load %arg8[%c0_4, %c0_5] : memref<128x1xf32, #tpu.memory_space<vmem>>, vector<128x1xf32>
    %5 = vector.broadcast %4 : vector<128x1xf32> to vector<128x128xf32>
    %6 = arith.addf %3, %5 : vector<128x128xf32>
    %c0_6 = arith.constant 0 : index
    %c0_7 = arith.constant 0 : index
    %7 = vector.load %arg5[%c0_6, %c0_7] : memref<4x128xf32, #tpu.memory_space<vmem>>, vector<4x128xf32>
    %c0_8 = arith.constant 0 : index
    %c0_9 = arith.constant 0 : index
    %8 = vector.load %arg6[%c0_8, %c0_9] : memref<32x4xf32, #tpu.memory_space<vmem>>, vector<32x4xf32>
    %c0_10 = arith.constant 0 : index
    %c0_11 = arith.constant 0 : index
    %9 = vector.load %arg9[%c0_10, %c0_11] : memref<128x32xf32, #tpu.memory_space<vmem>>, vector<128x32xf32>
    %c0_12 = arith.constant 0 : index
    %c0_13 = arith.constant 0 : index
    %10 = vector.load %arg10[%c0_12, %c0_13] : memref<128x1xf32, #tpu.memory_space<vmem>>, vector<128x1xf32>
    %c0_14 = arith.constant 0 : index
    %c0_15 = arith.constant 0 : index
    %c0_16 = arith.constant 0 : index
    %c0_17 = arith.constant 0 : index
    %11 = vector.load %arg3[%c0_14, %c0_15, %c0_16, %c0_17] : memref<1x8x32x128xbf16, #tpu.memory_space<vmem>>, vector<1x1x32x128xbf16>
    %12 = vector.shape_cast %11 : vector<1x1x32x128xbf16> to vector<32x128xbf16>
    %cst_18 = arith.constant dense<0.000000e+00> : vector<128x128xf32>
    %13 = tpu.matmul %9, %12, %cst_18 {dimension_numbers = #tpu.dot_dimension_numbers<[1], [0], [0], [1], [0, 0, 1, 1], [], []>} : vector<128x32xf32>, vector<32x128xbf16>, vector<128x128xf32> -> vector<128x128xf32>
    %14 = vector.broadcast %10 : vector<128x1xf32> to vector<128x128xf32>
    %15 = arith.addf %13, %14 : vector<128x128xf32>
    %16 = arith.mulf %6, %15 : vector<128x128xf32>
    %cst_19 = arith.constant dense<0.000000e+00> : vector<4x128xf32>
    %17 = tpu.matmul %7, %16, %cst_19 {dimension_numbers = #tpu.dot_dimension_numbers<[1], [0], [0], [1], [0, 0, 1, 1], [], []>} : vector<4x128xf32>, vector<128x128xf32>, vector<4x128xf32> -> vector<4x128xf32>
    %c0_20 = arith.constant 0 : index
    %c1 = arith.constant 1 : index
    %c0_21 = arith.constant 0 : index
    %c0_22 = arith.constant 0 : index
    %18 = vector.load %arg3[%c0_20, %c1, %c0_21, %c0_22] : memref<1x8x32x128xbf16, #tpu.memory_space<vmem>>, vector<1x1x32x128xbf16>
    %19 = vector.shape_cast %18 : vector<1x1x32x128xbf16> to vector<32x128xbf16>
    %cst_23 = arith.constant dense<0.000000e+00> : vector<128x128xf32>
    %20 = tpu.matmul %9, %19, %cst_23 {dimension_numbers = #tpu.dot_dimension_numbers<[1], [0], [0], [1], [0, 0, 1, 1], [], []>} : vector<128x32xf32>, vector<32x128xbf16>, vector<128x128xf32> -> vector<128x128xf32>
    %21 = vector.broadcast %10 : vector<128x1xf32> to vector<128x128xf32>
    %22 = arith.addf %20, %21 : vector<128x128xf32>
    %23 = arith.mulf %6, %22 : vector<128x128xf32>
    %cst_24 = arith.constant dense<0.000000e+00> : vector<4x128xf32>
    %24 = tpu.matmul %7, %23, %cst_24 {dimension_numbers = #tpu.dot_dimension_numbers<[1], [0], [0], [1], [0, 0, 1, 1], [], []>} : vector<4x128xf32>, vector<128x128xf32>, vector<4x128xf32> -> vector<4x128xf32>
    %25 = arith.maximumf %17, %24 : vector<4x128xf32>
    %c0_25 = arith.constant 0 : index
    %c2 = arith.constant 2 : index
    %c0_26 = arith.constant 0 : index
    %c0_27 = arith.constant 0 : index
    %26 = vector.load %arg3[%c0_25, %c2, %c0_26, %c0_27] : memref<1x8x32x128xbf16, #tpu.memory_space<vmem>>, vector<1x1x32x128xbf16>
    %27 = vector.shape_cast %26 : vector<1x1x32x128xbf16> to vector<32x128xbf16>
    %cst_28 = arith.constant dense<0.000000e+00> : vector<128x128xf32>
    %28 = tpu.matmul %9, %27, %cst_28 {dimension_numbers = #tpu.dot_dimension_numbers<[1], [0], [0], [1], [0, 0, 1, 1], [], []>} : vector<128x32xf32>, vector<32x128xbf16>, vector<128x128xf32> -> vector<128x128xf32>
    %29 = vector.broadcast %10 : vector<128x1xf32> to vector<128x128xf32>
    %30 = arith.addf %28, %29 : vector<128x128xf32>
    %31 = arith.mulf %6, %30 : vector<128x128xf32>
    %cst_29 = arith.constant dense<0.000000e+00> : vector<4x128xf32>
    %32 = tpu.matmul %7, %31, %cst_29 {dimension_numbers = #tpu.dot_dimension_numbers<[1], [0], [0], [1], [0, 0, 1, 1], [], []>} : vector<4x128xf32>, vector<128x128xf32>, vector<4x128xf32> -> vector<4x128xf32>
    %33 = arith.maximumf %25, %32 : vector<4x128xf32>
    %c0_30 = arith.constant 0 : index
    %c3 = arith.constant 3 : index
    %c0_31 = arith.constant 0 : index
    %c0_32 = arith.constant 0 : index
    %34 = vector.load %arg3[%c0_30, %c3, %c0_31, %c0_32] : memref<1x8x32x128xbf16, #tpu.memory_space<vmem>>, vector<1x1x32x128xbf16>
    %35 = vector.shape_cast %34 : vector<1x1x32x128xbf16> to vector<32x128xbf16>
    %cst_33 = arith.constant dense<0.000000e+00> : vector<128x128xf32>
    %36 = tpu.matmul %9, %35, %cst_33 {dimension_numbers = #tpu.dot_dimension_numbers<[1], [0], [0], [1], [0, 0, 1, 1], [], []>} : vector<128x32xf32>, vector<32x128xbf16>, vector<128x128xf32> -> vector<128x128xf32>
    %37 = vector.broadcast %10 : vector<128x1xf32> to vector<128x128xf32>
    %38 = arith.addf %36, %37 : vector<128x128xf32>
    %39 = arith.mulf %6, %38 : vector<128x128xf32>
    %cst_34 = arith.constant dense<0.000000e+00> : vector<4x128xf32>
    %40 = tpu.matmul %7, %39, %cst_34 {dimension_numbers = #tpu.dot_dimension_numbers<[1], [0], [0], [1], [0, 0, 1, 1], [], []>} : vector<4x128xf32>, vector<128x128xf32>, vector<4x128xf32> -> vector<4x128xf32>
    %41 = arith.maximumf %33, %40 : vector<4x128xf32>
    %c0_35 = arith.constant 0 : index
    %c4 = arith.constant 4 : index
    %c0_36 = arith.constant 0 : index
    %c0_37 = arith.constant 0 : index
    %42 = vector.load %arg3[%c0_35, %c4, %c0_36, %c0_37] : memref<1x8x32x128xbf16, #tpu.memory_space<vmem>>, vector<1x1x32x128xbf16>
    %43 = vector.shape_cast %42 : vector<1x1x32x128xbf16> to vector<32x128xbf16>
    %cst_38 = arith.constant dense<0.000000e+00> : vector<128x128xf32>
    %44 = tpu.matmul %9, %43, %cst_38 {dimension_numbers = #tpu.dot_dimension_numbers<[1], [0], [0], [1], [0, 0, 1, 1], [], []>} : vector<128x32xf32>, vector<32x128xbf16>, vector<128x128xf32> -> vector<128x128xf32>
    %45 = vector.broadcast %10 : vector<128x1xf32> to vector<128x128xf32>
    %46 = arith.addf %44, %45 : vector<128x128xf32>
    %47 = arith.mulf %6, %46 : vector<128x128xf32>
    %cst_39 = arith.constant dense<0.000000e+00> : vector<4x128xf32>
    %48 = tpu.matmul %7, %47, %cst_39 {dimension_numbers = #tpu.dot_dimension_numbers<[1], [0], [0], [1], [0, 0, 1, 1], [], []>} : vector<4x128xf32>, vector<128x128xf32>, vector<4x128xf32> -> vector<4x128xf32>
    %49 = arith.maximumf %41, %48 : vector<4x128xf32>
    %c0_40 = arith.constant 0 : index
    %c5 = arith.constant 5 : index
    %c0_41 = arith.constant 0 : index
    %c0_42 = arith.constant 0 : index
    %50 = vector.load %arg3[%c0_40, %c5, %c0_41, %c0_42] : memref<1x8x32x128xbf16, #tpu.memory_space<vmem>>, vector<1x1x32x128xbf16>
    %51 = vector.shape_cast %50 : vector<1x1x32x128xbf16> to vector<32x128xbf16>
    %cst_43 = arith.constant dense<0.000000e+00> : vector<128x128xf32>
    %52 = tpu.matmul %9, %51, %cst_43 {dimension_numbers = #tpu.dot_dimension_numbers<[1], [0], [0], [1], [0, 0, 1, 1], [], []>} : vector<128x32xf32>, vector<32x128xbf16>, vector<128x128xf32> -> vector<128x128xf32>
    %53 = vector.broadcast %10 : vector<128x1xf32> to vector<128x128xf32>
    %54 = arith.addf %52, %53 : vector<128x128xf32>
    %55 = arith.mulf %6, %54 : vector<128x128xf32>
    %cst_44 = arith.constant dense<0.000000e+00> : vector<4x128xf32>
    %56 = tpu.matmul %7, %55, %cst_44 {dimension_numbers = #tpu.dot_dimension_numbers<[1], [0], [0], [1], [0, 0, 1, 1], [], []>} : vector<4x128xf32>, vector<128x128xf32>, vector<4x128xf32> -> vector<4x128xf32>
    %57 = arith.maximumf %49, %56 : vector<4x128xf32>
    %c0_45 = arith.constant 0 : index
    %c6 = arith.constant 6 : index
    %c0_46 = arith.constant 0 : index
    %c0_47 = arith.constant 0 : index
    %58 = vector.load %arg3[%c0_45, %c6, %c0_46, %c0_47] : memref<1x8x32x128xbf16, #tpu.memory_space<vmem>>, vector<1x1x32x128xbf16>
    %59 = vector.shape_cast %58 : vector<1x1x32x128xbf16> to vector<32x128xbf16>
    %cst_48 = arith.constant dense<0.000000e+00> : vector<128x128xf32>
    %60 = tpu.matmul %9, %59, %cst_48 {dimension_numbers = #tpu.dot_dimension_numbers<[1], [0], [0], [1], [0, 0, 1, 1], [], []>} : vector<128x32xf32>, vector<32x128xbf16>, vector<128x128xf32> -> vector<128x128xf32>
    %61 = vector.broadcast %10 : vector<128x1xf32> to vector<128x128xf32>
    %62 = arith.addf %60, %61 : vector<128x128xf32>
    %63 = arith.mulf %6, %62 : vector<128x128xf32>
    %cst_49 = arith.constant dense<0.000000e+00> : vector<4x128xf32>
    %64 = tpu.matmul %7, %63, %cst_49 {dimension_numbers = #tpu.dot_dimension_numbers<[1], [0], [0], [1], [0, 0, 1, 1], [], []>} : vector<4x128xf32>, vector<128x128xf32>, vector<4x128xf32> -> vector<4x128xf32>
    %65 = arith.maximumf %57, %64 : vector<4x128xf32>
    %c0_50 = arith.constant 0 : index
    %c7 = arith.constant 7 : index
    %c0_51 = arith.constant 0 : index
    %c0_52 = arith.constant 0 : index
    %66 = vector.load %arg3[%c0_50, %c7, %c0_51, %c0_52] : memref<1x8x32x128xbf16, #tpu.memory_space<vmem>>, vector<1x1x32x128xbf16>
    %67 = vector.shape_cast %66 : vector<1x1x32x128xbf16> to vector<32x128xbf16>
    %cst_53 = arith.constant dense<0.000000e+00> : vector<128x128xf32>
    %68 = tpu.matmul %9, %67, %cst_53 {dimension_numbers = #tpu.dot_dimension_numbers<[1], [0], [0], [1], [0, 0, 1, 1], [], []>} : vector<128x32xf32>, vector<32x128xbf16>, vector<128x128xf32> -> vector<128x128xf32>
    %69 = vector.broadcast %10 : vector<128x1xf32> to vector<128x128xf32>
    %70 = arith.addf %68, %69 : vector<128x128xf32>
    %71 = arith.mulf %6, %70 : vector<128x128xf32>
    %cst_54 = arith.constant dense<0.000000e+00> : vector<4x128xf32>
    %72 = tpu.matmul %7, %71, %cst_54 {dimension_numbers = #tpu.dot_dimension_numbers<[1], [0], [0], [1], [0, 0, 1, 1], [], []>} : vector<4x128xf32>, vector<128x128xf32>, vector<4x128xf32> -> vector<4x128xf32>
    %73 = arith.maximumf %65, %72 : vector<4x128xf32>
    %cst_55 = arith.constant 0.000000e+00 : f32
    %74 = vector.broadcast %cst_55 : f32 to vector<4x128xf32>
    %cst_56 = arith.constant 0.000000e+00 : f32
    %75 = vector.broadcast %cst_56 : f32 to vector<32x128xf32>
    %76 = arith.subf %17, %73 : vector<4x128xf32>
    %77 = math.exp %76 : vector<4x128xf32>
    %78 = arith.addf %74, %77 : vector<4x128xf32>
    %c0_57 = arith.constant 0 : index
    %c0_58 = arith.constant 0 : index
    %c0_59 = arith.constant 0 : index
    %c0_60 = arith.constant 0 : index
    %79 = vector.load %arg3[%c0_57, %c0_58, %c0_59, %c0_60] : memref<1x8x32x128xbf16, #tpu.memory_space<vmem>>, vector<1x1x32x128xbf16>
    %80 = vector.shape_cast %79 : vector<1x1x32x128xbf16> to vector<32x128xbf16>
    %cst_61 = arith.constant dense<0.000000e+00> : vector<32x128xf32>
    %81 = tpu.matmul %8, %77, %cst_61 {dimension_numbers = #tpu.dot_dimension_numbers<[1], [0], [0], [1], [0, 0, 1, 1], [], []>} : vector<32x4xf32>, vector<4x128xf32>, vector<32x128xf32> -> vector<32x128xf32>
    %82 = arith.extf %80 : vector<32x128xbf16> to vector<32x128xf32>
    %83 = arith.mulf %81, %82 : vector<32x128xf32>
    %84 = arith.addf %75, %83 : vector<32x128xf32>
    %85 = arith.subf %24, %73 : vector<4x128xf32>
    %86 = math.exp %85 : vector<4x128xf32>
    %87 = arith.addf %78, %86 : vector<4x128xf32>
    %c0_62 = arith.constant 0 : index
    %c1_63 = arith.constant 1 : index
    %c0_64 = arith.constant 0 : index
    %c0_65 = arith.constant 0 : index
    %88 = vector.load %arg3[%c0_62, %c1_63, %c0_64, %c0_65] : memref<1x8x32x128xbf16, #tpu.memory_space<vmem>>, vector<1x1x32x128xbf16>
    %89 = vector.shape_cast %88 : vector<1x1x32x128xbf16> to vector<32x128xbf16>
    %cst_66 = arith.constant dense<0.000000e+00> : vector<32x128xf32>
    %90 = tpu.matmul %8, %86, %cst_66 {dimension_numbers = #tpu.dot_dimension_numbers<[1], [0], [0], [1], [0, 0, 1, 1], [], []>} : vector<32x4xf32>, vector<4x128xf32>, vector<32x128xf32> -> vector<32x128xf32>
    %91 = arith.extf %89 : vector<32x128xbf16> to vector<32x128xf32>
    %92 = arith.mulf %90, %91 : vector<32x128xf32>
    %93 = arith.addf %84, %92 : vector<32x128xf32>
    %94 = arith.subf %32, %73 : vector<4x128xf32>
    %95 = math.exp %94 : vector<4x128xf32>
    %96 = arith.addf %87, %95 : vector<4x128xf32>
    %c0_67 = arith.constant 0 : index
    %c2_68 = arith.constant 2 : index
    %c0_69 = arith.constant 0 : index
    %c0_70 = arith.constant 0 : index
    %97 = vector.load %arg3[%c0_67, %c2_68, %c0_69, %c0_70] : memref<1x8x32x128xbf16, #tpu.memory_space<vmem>>, vector<1x1x32x128xbf16>
    %98 = vector.shape_cast %97 : vector<1x1x32x128xbf16> to vector<32x128xbf16>
    %cst_71 = arith.constant dense<0.000000e+00> : vector<32x128xf32>
    %99 = tpu.matmul %8, %95, %cst_71 {dimension_numbers = #tpu.dot_dimension_numbers<[1], [0], [0], [1], [0, 0, 1, 1], [], []>} : vector<32x4xf32>, vector<4x128xf32>, vector<32x128xf32> -> vector<32x128xf32>
    %100 = arith.extf %98 : vector<32x128xbf16> to vector<32x128xf32>
    %101 = arith.mulf %99, %100 : vector<32x128xf32>
    %102 = arith.addf %93, %101 : vector<32x128xf32>
    %103 = arith.subf %40, %73 : vector<4x128xf32>
    %104 = math.exp %103 : vector<4x128xf32>
    %105 = arith.addf %96, %104 : vector<4x128xf32>
    %c0_72 = arith.constant 0 : index
    %c3_73 = arith.constant 3 : index
    %c0_74 = arith.constant 0 : index
    %c0_75 = arith.constant 0 : index
    %106 = vector.load %arg3[%c0_72, %c3_73, %c0_74, %c0_75] : memref<1x8x32x128xbf16, #tpu.memory_space<vmem>>, vector<1x1x32x128xbf16>
    %107 = vector.shape_cast %106 : vector<1x1x32x128xbf16> to vector<32x128xbf16>
    %cst_76 = arith.constant dense<0.000000e+00> : vector<32x128xf32>
    %108 = tpu.matmul %8, %104, %cst_76 {dimension_numbers = #tpu.dot_dimension_numbers<[1], [0], [0], [1], [0, 0, 1, 1], [], []>} : vector<32x4xf32>, vector<4x128xf32>, vector<32x128xf32> -> vector<32x128xf32>
    %109 = arith.extf %107 : vector<32x128xbf16> to vector<32x128xf32>
    %110 = arith.mulf %108, %109 : vector<32x128xf32>
    %111 = arith.addf %102, %110 : vector<32x128xf32>
    %112 = arith.subf %48, %73 : vector<4x128xf32>
    %113 = math.exp %112 : vector<4x128xf32>
    %114 = arith.addf %105, %113 : vector<4x128xf32>
    %c0_77 = arith.constant 0 : index
    %c4_78 = arith.constant 4 : index
    %c0_79 = arith.constant 0 : index
    %c0_80 = arith.constant 0 : index
    %115 = vector.load %arg3[%c0_77, %c4_78, %c0_79, %c0_80] : memref<1x8x32x128xbf16, #tpu.memory_space<vmem>>, vector<1x1x32x128xbf16>
    %116 = vector.shape_cast %115 : vector<1x1x32x128xbf16> to vector<32x128xbf16>
    %cst_81 = arith.constant dense<0.000000e+00> : vector<32x128xf32>
    %117 = tpu.matmul %8, %113, %cst_81 {dimension_numbers = #tpu.dot_dimension_numbers<[1], [0], [0], [1], [0, 0, 1, 1], [], []>} : vector<32x4xf32>, vector<4x128xf32>, vector<32x128xf32> -> vector<32x128xf32>
    %118 = arith.extf %116 : vector<32x128xbf16> to vector<32x128xf32>
    %119 = arith.mulf %117, %118 : vector<32x128xf32>
    %120 = arith.addf %111, %119 : vector<32x128xf32>
    %121 = arith.subf %56, %73 : vector<4x128xf32>
    %122 = math.exp %121 : vector<4x128xf32>
    %123 = arith.addf %114, %122 : vector<4x128xf32>
    %c0_82 = arith.constant 0 : index
    %c5_83 = arith.constant 5 : index
    %c0_84 = arith.constant 0 : index
    %c0_85 = arith.constant 0 : index
    %124 = vector.load %arg3[%c0_82, %c5_83, %c0_84, %c0_85] : memref<1x8x32x128xbf16, #tpu.memory_space<vmem>>, vector<1x1x32x128xbf16>
    %125 = vector.shape_cast %124 : vector<1x1x32x128xbf16> to vector<32x128xbf16>
    %cst_86 = arith.constant dense<0.000000e+00> : vector<32x128xf32>
    %126 = tpu.matmul %8, %122, %cst_86 {dimension_numbers = #tpu.dot_dimension_numbers<[1], [0], [0], [1], [0, 0, 1, 1], [], []>} : vector<32x4xf32>, vector<4x128xf32>, vector<32x128xf32> -> vector<32x128xf32>
    %127 = arith.extf %125 : vector<32x128xbf16> to vector<32x128xf32>
    %128 = arith.mulf %126, %127 : vector<32x128xf32>
    %129 = arith.addf %120, %128 : vector<32x128xf32>
    %130 = arith.subf %64, %73 : vector<4x128xf32>
    %131 = math.exp %130 : vector<4x128xf32>
    %132 = arith.addf %123, %131 : vector<4x128xf32>
    %c0_87 = arith.constant 0 : index
    %c6_88 = arith.constant 6 : index
    %c0_89 = arith.constant 0 : index
    %c0_90 = arith.constant 0 : index
    %133 = vector.load %arg3[%c0_87, %c6_88, %c0_89, %c0_90] : memref<1x8x32x128xbf16, #tpu.memory_space<vmem>>, vector<1x1x32x128xbf16>
    %134 = vector.shape_cast %133 : vector<1x1x32x128xbf16> to vector<32x128xbf16>
    %cst_91 = arith.constant dense<0.000000e+00> : vector<32x128xf32>
    %135 = tpu.matmul %8, %131, %cst_91 {dimension_numbers = #tpu.dot_dimension_numbers<[1], [0], [0], [1], [0, 0, 1, 1], [], []>} : vector<32x4xf32>, vector<4x128xf32>, vector<32x128xf32> -> vector<32x128xf32>
    %136 = arith.extf %134 : vector<32x128xbf16> to vector<32x128xf32>
    %137 = arith.mulf %135, %136 : vector<32x128xf32>
    %138 = arith.addf %129, %137 : vector<32x128xf32>
    %139 = arith.subf %72, %73 : vector<4x128xf32>
    %140 = math.exp %139 : vector<4x128xf32>
    %141 = arith.addf %132, %140 : vector<4x128xf32>
    %c0_92 = arith.constant 0 : index
    %c7_93 = arith.constant 7 : index
    %c0_94 = arith.constant 0 : index
    %c0_95 = arith.constant 0 : index
    %142 = vector.load %arg3[%c0_92, %c7_93, %c0_94, %c0_95] : memref<1x8x32x128xbf16, #tpu.memory_space<vmem>>, vector<1x1x32x128xbf16>
    %143 = vector.shape_cast %142 : vector<1x1x32x128xbf16> to vector<32x128xbf16>
    %cst_96 = arith.constant dense<0.000000e+00> : vector<32x128xf32>
    %144 = tpu.matmul %8, %140, %cst_96 {dimension_numbers = #tpu.dot_dimension_numbers<[1], [0], [0], [1], [0, 0, 1, 1], [], []>} : vector<32x4xf32>, vector<4x128xf32>, vector<32x128xf32> -> vector<32x128xf32>
    %145 = arith.extf %143 : vector<32x128xbf16> to vector<32x128xf32>
    %146 = arith.mulf %144, %145 : vector<32x128xf32>
    %147 = arith.addf %138, %146 : vector<32x128xf32>
    %148 = tpu.reciprocal %141 {approx = true} : vector<4x128xf32> -> vector<4x128xf32>
    %cst_97 = arith.constant dense<0.000000e+00> : vector<32x128xf32>
    %149 = tpu.matmul %8, %148, %cst_97 {dimension_numbers = #tpu.dot_dimension_numbers<[1], [0], [0], [1], [0, 0, 1, 1], [], []>} : vector<32x4xf32>, vector<4x128xf32>, vector<32x128xf32> -> vector<32x128xf32>
    %150 = arith.mulf %147, %149 : vector<32x128xf32>
    %c0_98 = arith.constant 0 : index
    %c0_99 = arith.constant 0 : index
    %151 = vector.load %arg11[%c0_98, %c0_99] : memref<32x32xf32, #tpu.memory_space<vmem>>, vector<32x32xf32>
    %cst_100 = arith.constant dense<0.000000e+00> : vector<32x128xf32>
    %152 = tpu.matmul %151, %150, %cst_100 {dimension_numbers = #tpu.dot_dimension_numbers<[1], [0], [0], [1], [0, 0, 1, 1], [], []>} : vector<32x32xf32>, vector<32x128xf32>, vector<32x128xf32> -> vector<32x128xf32>
    %c0_101 = arith.constant 0 : index
    %c0_102 = arith.constant 0 : index
    %153 = vector.load %arg12[%c0_101, %c0_102] : memref<32x1xf32, #tpu.memory_space<vmem>>, vector<32x1xf32>
    %154 = vector.broadcast %153 : vector<32x1xf32> to vector<32x128xf32>
    %155 = arith.addf %152, %154 : vector<32x128xf32>
    %cst_103 = arith.constant 0.000000e+00 : f32
    %156 = vector.broadcast %cst_103 : f32 to vector<32x128xf32>
    %157 = arith.maximumf %155, %156 : vector<32x128xf32>
    %c0_104 = arith.constant 0 : index
    %c0_105 = arith.constant 0 : index
    %158 = vector.load %arg13[%c0_104, %c0_105] : memref<32x32xf32, #tpu.memory_space<vmem>>, vector<32x32xf32>
    %cst_106 = arith.constant dense<0.000000e+00> : vector<32x128xf32>
    %159 = tpu.matmul %158, %157, %cst_106 {dimension_numbers = #tpu.dot_dimension_numbers<[1], [0], [0], [1], [0, 0, 1, 1], [], []>} : vector<32x32xf32>, vector<32x128xf32>, vector<32x128xf32> -> vector<32x128xf32>
    %c0_107 = arith.constant 0 : index
    %c0_108 = arith.constant 0 : index
    %160 = vector.load %arg14[%c0_107, %c0_108] : memref<32x1xf32, #tpu.memory_space<vmem>>, vector<32x1xf32>
    %161 = vector.broadcast %160 : vector<32x1xf32> to vector<32x128xf32>
    %162 = arith.addf %159, %161 : vector<32x128xf32>
    %c0_109 = arith.constant 0 : index
    %163 = memref.load %arg2[%c0_109] : memref<1xf32, #tpu.memory_space<smem>>
    %cst_110 = arith.constant 1.000000e+00 : f32
    %164 = arith.subf %cst_110, %163 : f32
    %165 = vector.broadcast %164 : f32 to vector<32x128xf32>
    %166 = arith.mulf %165, %1 : vector<32x128xf32>
    %167 = vector.broadcast %163 : f32 to vector<32x128xf32>
    %168 = arith.mulf %167, %162 : vector<32x128xf32>
    %169 = arith.addf %166, %168 : vector<32x128xf32>
    %c0_111 = arith.constant 0 : index
    %c0_112 = arith.constant 0 : index
    %c0_113 = arith.constant 0 : index
    %170 = vector.load %arg15[%c0_111, %c0_112, %c0_113] : memref<1x32x128xf32, #tpu.memory_space<vmem>>, vector<1x32x128xf32>
    %171 = vector.shape_cast %170 : vector<1x32x128xf32> to vector<32x128xf32>
    %172 = vector.shape_cast %169 : vector<32x128xf32> to vector<1x32x128xf32>
    tpu.vector_store %arg15[%c0_111, %c0_112, %c0_113], %172 {strides = array<i32>} : memref<1x32x128xf32, #tpu.memory_space<vmem>>, vector<1x32x128xf32>,
    return
  }
  func.func @transform_0(%arg0: i32, %arg1: i32) -> i32 {
    %c0_i32 = arith.constant 0 : i32
    %c0_i32_0 = arith.constant 0 : i32
    return %c0_i32 : i32
  }
  func.func @transform_1(%arg0: i32, %arg1: i32) -> (i32, i32, i32, i32) {
    %c0_i32 = arith.constant 0 : i32
    %c0_i32_0 = arith.constant 0 : i32
    %c0_i32_1 = arith.constant 0 : i32
    return %arg0, %c0_i32, %c0_i32_0, %arg1 : i32, i32, i32, i32
  }
  func.func @transform_2(%arg0: i32, %arg1: i32) -> (i32, i32, i32) {
    %c0_i32 = arith.constant 0 : i32
    %c0_i32_0 = arith.constant 0 : i32
    return %arg0, %c0_i32, %arg1 : i32, i32, i32
  }
  func.func @transform_3(%arg0: i32, %arg1: i32) -> (i32, i32) {
    %c0_i32 = arith.constant 0 : i32
    %c0_i32_0 = arith.constant 0 : i32
    %c0_i32_1 = arith.constant 0 : i32
    return %c0_i32, %c0_i32_0 : i32, i32
  }
  func.func @transform_4(%arg0: i32, %arg1: i32) -> (i32, i32) {
    %c0_i32 = arith.constant 0 : i32
    %c0_i32_0 = arith.constant 0 : i32
    %c0_i32_1 = arith.constant 0 : i32
    return %c0_i32, %c0_i32_0 : i32, i32
  }
  func.func @transform_5(%arg0: i32, %arg1: i32) -> (i32, i32) {
    %c0_i32 = arith.constant 0 : i32
    %c0_i32_0 = arith.constant 0 : i32
    %c0_i32_1 = arith.constant 0 : i32
    return %c0_i32, %c0_i32_0 : i32, i32
  }
  func.func @transform_6(%arg0: i32, %arg1: i32) -> (i32, i32) {
    %c0_i32 = arith.constant 0 : i32
    %c0_i32_0 = arith.constant 0 : i32
    %c0_i32_1 = arith.constant 0 : i32
    return %c0_i32, %c0_i32_0 : i32, i32
  }
  func.func @transform_7(%arg0: i32, %arg1: i32) -> (i32, i32) {
    %c0_i32 = arith.constant 0 : i32
    %c0_i32_0 = arith.constant 0 : i32
    %c0_i32_1 = arith.constant 0 : i32
    return %c0_i32, %c0_i32_0 : i32, i32
  }
  func.func @transform_8(%arg0: i32, %arg1: i32) -> (i32, i32) {
    %c0_i32 = arith.constant 0 : i32
    %c0_i32_0 = arith.constant 0 : i32
    %c0_i32_1 = arith.constant 0 : i32
    return %c0_i32, %c0_i32_0 : i32, i32
  }
  func.func @transform_9(%arg0: i32, %arg1: i32) -> (i32, i32) {
    %c0_i32 = arith.constant 0 : i32
    %c0_i32_0 = arith.constant 0 : i32
    %c0_i32_1 = arith.constant 0 : i32
    return %c0_i32, %c0_i32_0 : i32, i32
  }
  func.func @transform_10(%arg0: i32, %arg1: i32) -> (i32, i32) {
    %c0_i32 = arith.constant 0 : i32
    %c0_i32_0 = arith.constant 0 : i32
    %c0_i32_1 = arith.constant 0 : i32
    return %c0_i32, %c0_i32_0 : i32, i32
  }
  func.func @transform_11(%arg0: i32, %arg1: i32) -> (i32, i32) {
    %c0_i32 = arith.constant 0 : i32
    %c0_i32_0 = arith.constant 0 : i32
    %c0_i32_1 = arith.constant 0 : i32
    return %c0_i32, %c0_i32_0 : i32, i32
  }
  func.func @transform_12(%arg0: i32, %arg1: i32) -> (i32, i32) {
    %c0_i32 = arith.constant 0 : i32
    %c0_i32_0 = arith.constant 0 : i32
    %c0_i32_1 = arith.constant 0 : i32
    return %c0_i32, %c0_i32_0 : i32, i32
  }
  func.func @transform_13(%arg0: i32, %arg1: i32) -> (i32, i32, i32) {
    %c0_i32 = arith.constant 0 : i32
    %c0_i32_0 = arith.constant 0 : i32
    return %arg0, %c0_i32, %arg1 : i32, i32, i32
  }
}

</mosaic_0001>

<bundles_post_ra>
// kernel: tpu_custom_call.1
= control target key start
LH: loop header
LB: loop body
LE: loop exit
PB: predicated region body
PF: predicated region fallthrough
CT: control target
= control target key end

     0   :  { %s7651_s0 = inlined_call_operand.<no memory space> [shape: f32[1], index: 0, kind: input, shape index: {}]   ;;  %s7652_s1 = inlined_call_operand.vmem [shape: bf16[2,8,32,256], index: 1, kind: input, shape index: {}]   ;;  %s7653_s2 = inlined_call_operand.vmem [shape: f32[2,32,256], index: 2, kind: input, shape index: {}]   ;;  %s7654_s3 = inlined_call_operand.vmem [shape: f32[4,128], index: 3, kind: input, shape index: {}]   ;;  %s7655_s4 = inlined_call_operand.vmem [shape: f32[32,4], index: 4, kind: input, shape index: {}]   ;;  %s7656_s5 = inlined_call_operand.vmem [shape: f32[128,32], index: 5, kind: input, shape index: {}]   ;;  %s7657_s6 = inlined_call_operand.vmem [shape: f32[128,1], index: 6, kind: input, shape index: {}]   ;;  %s7658_s7 = inlined_call_operand.vmem [shape: f32[128,32], index: 7, kind: input, shape index: {}]   ;;  %s7659_s8 = inlined_call_operand.vmem [shape: f32[128,1], index: 8, kind: input, shape index: {}]   ;;  %s7660_s9 = inlined_call_operand.hbm [shape: f32[32,32], index: 9, kind: input, shape index: {}]   ;;  %s7661_s10 = inlined_call_operand.vmem [shape: f32[32,1], index: 10, kind: input, shape index: {}]   ;;  %s7662_s11 = inlined_call_operand.hbm [shape: f32[32,32], index: 11, kind: input, shape index: {}]   ;;  %s7663_s12 = inlined_call_operand.vmem [shape: f32[32,1], index: 12, kind: input, shape index: {}]   ;;  %s7664_s13 = inlined_call_operand.hbm [shape: f32[2,32,256], index: 13, kind: output, shape index: {}]  }
   0x1   :  { %7681 = sst [smem:[#allocation35_spill]] %s7655_s4 }
   0x2   :  { %7682 = sst [smem:[#allocation36_spill]] %s7660_s9 }
   0x3   :  { %7683 = sst [smem:[#allocation37_spill]] %s7664_s13 }
   0x4   :  { %18 = sst [smem:[#allocation2]] %s7651_s0 }
   0x5   :  { %19 = vsyncpa [#allocation6], 0 }
   0x6   :  { %20 = vsyncpa [#allocation9], 0 }
   0x7   :  { %21 = vsyncpa [#allocation7], 0 }
   0x8   :  { %23 = vsyncpa [#allocation7 + $0x1], 0  ;;  %s5961_s27 = smov 0   ;;  %s5963_s28 = smov 0  }
   0x9   :  { %s5965_s29 = smov 0   ;;  %s5967_s30 = smov 0  }
   0xa   :  { %s5969_s14 = smov 0   ;;  %s5971_s15 = smov 0  }
   0xb   :  { %s5973_s16 = smov 0   ;;  %s5975_s17 = smov 0  }
   0xc LB: > { %7684 = sst [smem:[#allocation14_spill]] %s5847_s27  ;;  %s4289_s0 = sadd.s32 4294967295, %s5875_s17   ;;  %s5875_s17 = sphi %s5975_s17, %s29_s17   ;;  %s5871_s16 = sphi %s5973_s16, %s7745_s16   ;;  %s5867_s15 = sphi %s5971_s15, %s7744_s15   ;;  %s5863_s14 = sphi %s5969_s14, %s7743_s14   ;;  %s5859_s30 = sphi %s5967_s30, %s7742_s30   ;;  %s5855_s29 = sphi %s5965_s29, %s7741_s29   ;;  %s5851_s28 = sphi %s5963_s28, %s7740_s28   ;;  %s5847_s27 = sphi %s5961_s27, %s7739_s27  }
   0xd   : > { %7685 = sst [smem:[#allocation15_spill]] %s5859_s30  ;;  %s4290_s18 = sadd.s32 4294967294, %s5875_s17  }
   0xe   : > { %7686 = sst [smem:[#allocation16_spill]] %s5863_s14  ;;  %s38_s19 = sadd.s32 1, %s5867_s15 }
   0xf   : > { %s41_s20 = sadd.s32 1, %s5871_s16  ;;  %p39_p0 = scmp.ge.s32.totalorder %s38_s19, 2 }
  0x10   : > { %s71_s21 = sadd.s32 1, %s5855_s29  ;;  %p78_p1 = scmp.ne.s32.totalorder %s5855_s29, %s5851_s28 }
  0x11   : > { %p79_p2 = scmp.eq.s32.totalorder %s5875_s17, 0  ;;  %s7747_s19 = smov (%p39_p0, %s38_s19), 0 }
  0x12   : > { %7687 = sst [smem:[#allocation17_spill]] %s7747_s19  ;;  %s7749_s20 = smov (!%p39_p0, %s41_s20), %s5871_s16 }
  0x13   : > { %s67_s22 = ssub.s32 %s5867_s15, %s7747_s19  ;;  %p6014_p3 = por %p79_p2, %p78_p1 }
  0x14   : > { %p43_p4 = scmp.ge.s32.totalorder %s7749_s20, 2  ;;  %p348_p5 = scmp.eq.s32.totalorder %s4289_s0, 3 }
  0x15   : > { %p353_p6 = scmp.ne.s32.totalorder %s5851_s28, %s5847_s27  ;;  %p354_p7 = scmp.eq.s32.totalorder %s4290_s18, 3 }
  0x16   : > { %s7751_s20 = smov (%p43_p4, %s7749_s20), 0  ;;  %p6022_p8 = por %p348_p5, %p78_p1 }
  0x17   : > { %7689 = sst [smem:[#allocation18_spill]] %s7751_s20  ;;  %p6026_p9 = por %p354_p7, %p353_p6 }
  0x18   : > { %s7690_s24 = scalar_select %p6022_p8, 1, 0 }
  0x19   : > { %s7692_s25 = scalar_select %p6026_p9, 1, 0 }
  0x1a   : > { %7691 = sst [smem:[#allocation19_spill]] %s7690_s24  ;;  %s66_s26 = ssub.s32 %s5871_s16, %s7751_s20 }
  0x1b   : > { %7693 = sst [smem:[#allocation20_spill]] %s7692_s25  ;;  %p4291_p10 = scmp.ge.s32.totalorder %s5875_s17, 1 }
  0x1c   : > { %s68_s19 = sor.u32 %s67_s22, %s66_s26  ;;  %p361_p11 = scmp.lt.s32.totalorder %s5875_s17, 5 }
  0x1d   : > { %p69_p12 = scmp.eq.s32.totalorder %s68_s19, 0  ;;  %p6038_p0 = scmp.eq.s32.totalorder %s4289_s0, 0 }
  0x1e   : > { %p6034_p13 = pnand %p4291_p10, %p361_p11  ;;  %s5877_s25 = smov [#allocation5]  }
  0x1f   : > { %s6043_s27 = scalar_select %p69_p12, %s5855_s29, %s71_s21  }
  0x20   : > { %p5560_p1 = pneg %p6034_p13  ;;  %s394_s20 = sshll.u32 %s5877_s25, 4  ;;  %s395_s20 = int_to_ptr.vmem [resolvable:$true] %s394_s20 }
  0x21   : > { %7696 = sst [smem:[#allocation21_spill]] %s6043_s27  ;;  %s5878_s22 = smov [#allocation8]  }
  0x22   : > { %p6049_p2 = pnand %p6038_p0, %p5560_p1  ;;  %s410_s0 = sshll.u32 %s5878_s22, 4  ;;  %s411_s0 = int_to_ptr.vmem [resolvable:$true] %s410_s0 }
  0x23   : > { %s5734_s26 = scalar_lea.vmem %s395_s20, 512  ;;  %p5742_p10 = scmp.lt.s32.totalorder %s395_s20, %s395_s20 }
  0x24   : > { %p5725_p4 = pneg %p6049_p2  ;;  %p5735_p5 = scmp.ne.s32.totalorder %s395_s20, %s5734_s26 }
  0x25   : > { %p5743_p11 = scmp.lt.s32.totalorder %s5734_s26, %s5734_s26 }
  0x26   : > { %p5737_p6 = pnand %p5735_p5, %p5725_p4 }
  0x27   : > { %p5744_p12 = por %p5743_p11, %p5742_p10 }
  0x28   : > { %p5738_p7 = pneg %p5737_p6 }
  0x2a   : > { %p5745_p9 = pnand %p5744_p12, %p5738_p7 }
  0x2c   : > { %5748 = shalt.err (!%p5745_p9)
}
  0x2d   : > { %s5879_s21 = smov 128   ;;  %s5880_s25 = smov 8  }
  0x2e   : > { %s7698_s9 = sld [smem:[#allocation36_spill]]  ;;  %s5760_s24 = scalar_lea.vmem %s411_s0, 512 }
  0x2f   : > { %p5761_p1 = scmp.ne.s32.totalorder %s411_s0, %s5760_s24  ;;  %p5768_p8 = scmp.lt.s32.totalorder %s411_s0, %s411_s0 }
  0x30   : > { %p5769_p10 = scmp.lt.s32.totalorder %s5760_s24, %s5760_s24 }
  0x31   : > { %p5763_p5 = pnand %p5761_p1, %p5725_p4 }
  0x32   : > { %p5770_p7 = por %p5769_p10, %p5768_p8 }
  0x33   : > { %p5764_p6 = pneg %p5763_p5 }
  0x34   : > { %5563 = dma.hbm_to_vmem [thread:$0]  (!%p6049_p2), %s7698_s9, 512, %s395_s20, [#allocation6], %s5879_s21, %s5879_s21, %s5880_s25  }
  0x35   : > { %p5771_p9 = pnand %p5770_p7, %p5764_p6 }
  0x37   : > { %5774 = shalt.err (!%p5771_p9)
}
  0x38   : > { %5566 = dma.hbm_to_vmem [thread:$0]  (!%p6049_p2), %s7662_s11, 512, %s411_s0, [#allocation9], %s5879_s21, %s5879_s21, %s5880_s25  }
  0x39   : > { %p4294_p11 = scmp.ge.s32.totalorder %s5875_s17, 4 }
  0x3b   : > { %423 = sbr.rel (%p4294_p11) target bundleno = 99 (0x63), region = 60 }
  0x40   : > { %426 = sbr.rel (!%p6014_p3) target bundleno = 91 (0x5b), region = 64  ;;  %s428_s27 = sand.u32 (%p6014_p3), 1, %s5855_s29  }
  0x41   : > { %s4296_s20 = sshll.u32 (%p6014_p3), %s5871_s16, 6  ;;  %s4295_s24 = sshll.u32 (%p6014_p3), %s428_s27, 7 }
  0x42   : > { %s432_s22 = sadd.s32 (%p6014_p3), %s5867_s15, %s4296_s20  ;;  %s6085_s30 = scalar_lea.vmem (%p6014_p3), [#allocation3], %s4295_s24 }
  0x43   : > { %s4297_s9 = sshll.u32 (%p6014_p3), %s432_s22, 2 }
  0x44   : > { %s6080_s4 = scalar_lea.vmem (%p6014_p3), %s7652_s1, %s4297_s9 }
  0x45   : > { %v451_v0 = vld [vmem:[%s6080_s4] sm:$0xf]  ;;  %v453_v1 = vld [vmem:[%s6080_s4 + $0x8] sm:$0xf]  ;;  %v455_v2 = vld [vmem:[%s6080_s4 + $0x10] sm:$0xf] }
  0x46   : > { %452 = vst [vmem:[%s6085_s30] sm:$0xf] %v451_v0  ;;  %454 = vst [vmem:[%s6085_s30 + $0x4] sm:$0xf] %v453_v1  ;;  %v457_v3 = vld [vmem:[%s6080_s4 + $0x18] sm:$0xf] }
  0x47   : > { %456 = vst [vmem:[%s6085_s30 + $0x8] sm:$0xf] %v455_v2  ;;  %v459_v4 = vld [vmem:[%s6080_s4 + $0x20] sm:$0xf]  ;;  %v461_v5 = vld [vmem:[%s6080_s4 + $0x28] sm:$0xf] }
  0x48   : > { %458 = vst [vmem:[%s6085_s30 + $0xc] sm:$0xf] %v457_v3  ;;  %460 = vst [vmem:[%s6085_s30 + $0x10] sm:$0xf] %v459_v4  ;;  %v463_v6 = vld [vmem:[%s6080_s4 + $0x30] sm:$0xf] }
  0x49   : > { %462 = vst [vmem:[%s6085_s30 + $0x14] sm:$0xf] %v461_v5  ;;  %v465_v7 = vld [vmem:[%s6080_s4 + $0x38] sm:$0xf]  ;;  %v467_v8 = vld [vmem:[%s6080_s4 + $0x40] sm:$0xf] }
  0x4a   : > { %464 = vst [vmem:[%s6085_s30 + $0x18] sm:$0xf] %v463_v6  ;;  %466 = vst [vmem:[%s6085_s30 + $0x1c] sm:$0xf] %v465_v7  ;;  %v469_v9 = vld [vmem:[%s6080_s4 + $0x48] sm:$0xf] }
  0x4b   : > { %468 = vst [vmem:[%s6085_s30 + $0x20] sm:$0xf] %v467_v8  ;;  %v471_v10 = vld [vmem:[%s6080_s4 + $0x50] sm:$0xf]  ;;  %v473_v11 = vld [vmem:[%s6080_s4 + $0x58] sm:$0xf] }
  0x4c   : > { %470 = vst [vmem:[%s6085_s30 + $0x24] sm:$0xf] %v469_v9  ;;  %472 = vst [vmem:[%s6085_s30 + $0x28] sm:$0xf] %v471_v10  ;;  %v475_v12 = vld [vmem:[%s6080_s4 + $0x60] sm:$0xf] }
  0x4d   : > { %474 = vst [vmem:[%s6085_s30 + $0x2c] sm:$0xf] %v473_v11  ;;  %v477_v13 = vld [vmem:[%s6080_s4 + $0x68] sm:$0xf]  ;;  %v479_v14 = vld [vmem:[%s6080_s4 + $0x70] sm:$0xf] }
  0x4e   : > { %476 = vst [vmem:[%s6085_s30 + $0x30] sm:$0xf] %v475_v12  ;;  %478 = vst [vmem:[%s6085_s30 + $0x34] sm:$0xf] %v477_v13  ;;  %v481_v15 = vld [vmem:[%s6080_s4 + $0x78] sm:$0xf] }
  0x4f   : > { %480 = vst [vmem:[%s6085_s30 + $0x38] sm:$0xf] %v479_v14  ;;  %v483_v16 = vld [vmem:[%s6080_s4 + $0x80] sm:$0xf]  ;;  %v485_v17 = vld [vmem:[%s6080_s4 + $0x88] sm:$0xf] }
  0x50   : > { %482 = vst [vmem:[%s6085_s30 + $0x3c] sm:$0xf] %v481_v15  ;;  %484 = vst [vmem:[%s6085_s30 + $0x40] sm:$0xf] %v483_v16  ;;  %v487_v18 = vld [vmem:[%s6080_s4 + $0x90] sm:$0xf] }
  0x51   : > { %486 = vst [vmem:[%s6085_s30 + $0x44] sm:$0xf] %v485_v17  ;;  %v489_v19 = vld [vmem:[%s6080_s4 + $0x98] sm:$0xf]  ;;  %v491_v20 = vld [vmem:[%s6080_s4 + $0xa0] sm:$0xf] }
  0x52   : > { %488 = vst [vmem:[%s6085_s30 + $0x48] sm:$0xf] %v487_v18  ;;  %490 = vst [vmem:[%s6085_s30 + $0x4c] sm:$0xf] %v489_v19  ;;  %v493_v21 = vld [vmem:[%s6080_s4 + $0xa8] sm:$0xf] }
  0x53   : > { %492 = vst [vmem:[%s6085_s30 + $0x50] sm:$0xf] %v491_v20  ;;  %v495_v22 = vld [vmem:[%s6080_s4 + $0xb0] sm:$0xf]  ;;  %v497_v23 = vld [vmem:[%s6080_s4 + $0xb8] sm:$0xf] }
  0x54   : > { %494 = vst [vmem:[%s6085_s30 + $0x54] sm:$0xf] %v493_v21  ;;  %496 = vst [vmem:[%s6085_s30 + $0x58] sm:$0xf] %v495_v22  ;;  %v499_v24 = vld [vmem:[%s6080_s4 + $0xc0] sm:$0xf] }
  0x55   : > { %498 = vst [vmem:[%s6085_s30 + $0x5c] sm:$0xf] %v497_v23  ;;  %v501_v25 = vld [vmem:[%s6080_s4 + $0xc8] sm:$0xf]  ;;  %v503_v26 = vld [vmem:[%s6080_s4 + $0xd0] sm:$0xf] }
  0x56   : > { %500 = vst [vmem:[%s6085_s30 + $0x60] sm:$0xf] %v499_v24  ;;  %502 = vst [vmem:[%s6085_s30 + $0x64] sm:$0xf] %v501_v25  ;;  %v505_v27 = vld [vmem:[%s6080_s4 + $0xd8] sm:$0xf] }
  0x57   : > { %504 = vst [vmem:[%s6085_s30 + $0x68] sm:$0xf] %v503_v26  ;;  %v507_v28 = vld [vmem:[%s6080_s4 + $0xe0] sm:$0xf]  ;;  %v509_v29 = vld [vmem:[%s6080_s4 + $0xe8] sm:$0xf] }
  0x58   : > { %506 = vst [vmem:[%s6085_s30 + $0x6c] sm:$0xf] %v505_v27  ;;  %508 = vst [vmem:[%s6085_s30 + $0x70] sm:$0xf] %v507_v28  ;;  %v511_v30 = vld [vmem:[%s6080_s4 + $0xf0] sm:$0xf] }
  0x59   : > { %510 = vst [vmem:[%s6085_s30 + $0x74] sm:$0xf] %v509_v29  ;;  %v513_v31 = vld [vmem:[%s6080_s4 + $0xf8] sm:$0xf]  ;;  %512 = vst [vmem:[%s6085_s30 + $0x78] sm:$0xf] %v511_v30 }
  0x5a   : > { %514 = vst [vmem:[%s6085_s30 + $0x7c] sm:$0xf] %v513_v31 }
  0x5b PF: > { %602 = sbr.rel (!%p6014_p3) target bundleno = 99 (0x63), region = 105  ;;  %s604_s9 = sand.u32 (%p6014_p3), 1, %s5855_s29  }
  0x5c   : > { %s4299_s14 = sshll.u32 (%p6014_p3), %s5871_s16, 3  ;;  %s4298_s0 = sshll.u32 (%p6014_p3), %s604_s9, 5 }
  0x5d   : > { %s608_s21 = sadd.s32 (%p6014_p3), %s5867_s15, %s4299_s14  ;;  %s606_s4 = scalar_lea.vmem (%p6014_p3), [#allocation4], %s4298_s0 }
  0x5e   : > { %s4300_s25 = sshll.u32 (%p6014_p3), %s608_s21, 3 }
  0x5f   : > { %s610_s20 = scalar_lea.vmem (%p6014_p3), %s7653_s2, %s4300_s25 }
  0x60   : > { %v645_v32 = vld [vmem:[%s610_s20] sm:$0xff]  ;;  %v647_v33 = vld [vmem:[%s610_s20 + $0x10] sm:$0xff] }
  0x61   : > { %v649_v34 = vld [vmem:[%s610_s20 + $0x20] sm:$0xff]  ;;  %646 = vst [vmem:[%s606_s4] sm:$0xff] %v645_v32  ;;  %648 = vst [vmem:[%s606_s4 + $0x8] sm:$0xff] %v647_v33  ;;  %v651_v35 = vld [vmem:[%s610_s20 + $0x30] sm:$0xff] }
  0x62   : > { %650 = vst [vmem:[%s606_s4 + $0x10] sm:$0xff] %v649_v34  ;;  %652 = vst [vmem:[%s606_s4 + $0x18] sm:$0xff] %v651_v35 }
  0x63 PF: > { %661 = sbr.rel (%p6034_p13) target bundleno = 1487 (0x5cf), region = 143 }
  0x68   : > { %s6159_s23 = sand.u32 1, %s5851_s28  }
  0x69   : > { %s4302_s24 = sshll.u32 %s6159_s23, 7  ;;  %s4303_s22 = sshll.u32 %s6159_s23, 5 }
  0x6a   : > { %s6163_s19 = scalar_lea.vmem [#allocation3], %s4302_s24  ;;  %s6167_s30 = scalar_lea.vmem [#allocation4], %s4303_s22 }
  0x6b   : > { %5834 = dma.done.wait (%p6038_p0), [#allocation6], 512  }
  0x6c   : > { %5836 = vsyncadd (%p6038_p0), [#allocation6], 4294966784 }
  0x6d   : > { %5838 = dma.done.wait (%p6038_p0), [#allocation9], 512  }
  0x6e   : > { %5840 = vsyncadd (%p6038_p0), [#allocation9], 4294966784  ;;  %v5881_v36 = vmov 0   ;;  %v730_v37 = vld [vmem:[%s6167_s30 + $0x18] sm:$0xff]  ;;  %v761_v39 = vld [vmem:[%s7657_s6 + $0x70] sm:$0xff]  ;;  %vm843_vm0 = vcmask 261120  }
  0x6f   : > { %5651 = vset.pattern.permute.xlu1 %v5881_v36  ;;  %5650 = vset.pattern.permute.xlu0 %v5881_v36  ;;  %v762_v38 = vld [vmem:[%s7657_s6 + $0x78] sm:$0xff]  ;;  %v729_v40 = vld [vmem:[%s6167_s30 + $0x10] sm:$0xff]  ;;  %v1076_v41 = vld [vmem:[%s6163_s19 + $0x8] sm:$0xff]   ;;  %vm5883_vm1 = vmmov 0   ;;  %s7726_s25 = sld [smem:[#allocation35_spill]]  ;;  %vm2940_vm2 = vcmask 31744  }
  0x70   : > { %4914 = vmatprep.subr.mxu0 %v730_v37  ;;  %840 = vperm.xlu0 %5650, %v762_v38   ;;  %v728_v42 = vld [vmem:[%s6167_s30 + $0x8] sm:$0xff]  ;;  %v1073_v43 = vld [vmem:[%s7659_s8 + $0x78] sm:$0xff]  ;;  %v1072_v44 = vld [vmem:[%s7659_s8 + $0x70] sm:$0xff]  ;;  %vm2953_vm3 = vcmask 1043456   ;;  %s4129_s9 = sld [smem:[#allocation2]]  ;;  %s725_s26 = scalar_lea.vmem [#allocation10], %s4303_s22 }
  0x71   : > { %835 = vperm.xlu1 %5651, %v761_v39   ;;  %4915 = vmatpush3.msra.mxu0 %v730_v37  ;;  %v1074_v45 = vld [vmem:[%s6163_s19] sm:$0xff]   ;;  %v732_v48 = vld [vmem:[%s7656_s5 + $0x8] sm:$0xff]  ;;  %v733_v53 = vld [vmem:[%s7656_s5 + $0x10] sm:$0xff]  ;;  %s7728_s0 = sld [smem:[#allocation15_spill]]  ;;  %s4164_s27 = sshll.u32 %s725_s26, 4  ;;  %s7593_s27 = int_to_ptr.vmem [resolvable:$true] %s4164_s27 }
  0x72   : > { %4916 = vmatprep.subr.mxu0 %v729_v40  ;;  %4946 = vmatprep.subr.bf16.mxu1 %v1076_v41  ;;  %v727_v46 = vld [vmem:[%s6167_s30] sm:$0xff]  ;;  %v1071_v50 = vld [vmem:[%s7659_s8 + $0x68] sm:$0xff]  ;;  %v6227_v54 = vld [vmem:[%s7658_s7 + $0x10] sm:$0xff]  ;;  %s7729_s20 = sld [smem:[#allocation19_spill]] }
  0x73   : > { %4917 = vmatpush3.msra.mxu0 %v729_v40  ;;  %4947 = vmatpush3.bf16.msra.mxu1 %v1076_v41  ;;  %v731_v47 = vld [vmem:[%s7656_s5] sm:$0xff]  ;;  %v760_v51 = vld [vmem:[%s7657_s6 + $0x68] sm:$0xff]  ;;  %v734_v55 = vld [vmem:[%s7656_s5 + $0x18] sm:$0xff] }
  0x74   : > { %4918 = vmatprep.subr.mxu0 %v728_v42  ;;  %1155 = vperm.xlu0 %5650, %v1073_v43   ;;  %v6204_v49 = vld [vmem:[%s7658_s7] sm:$0xff]  ;;  %v6216_v52 = vld [vmem:[%s7658_s7 + $0x8] sm:$0xff]  ;;  %v6246_v58 = vld [vmem:[%s7658_s7 + $0x18] sm:$0xff] }
  0x75   : > { %1150 = vperm.xlu1 %5651, %v1072_v44   ;;  %4919 = vmatpush3.msra.mxu0 %v728_v42  ;;  %v1070_v56 = vld [vmem:[%s7659_s8 + $0x60] sm:$0xff]  ;;  %v736_v61 = vld [vmem:[%s7656_s5 + $0x28] sm:$0xff]  ;;  %v1069_v62 = vld [vmem:[%s7659_s8 + $0x58] sm:$0xff] }
  0x76   : > { %4948 = vmatprep.subr.bf16.mxu1 %v1074_v45  ;;  %4920 = vmatprep.subr.mxu0 %v727_v46  ;;  %v759_v57 = vld [vmem:[%s7657_s6 + $0x60] sm:$0xff]  ;;  %v758_v63 = vld [vmem:[%s7657_s6 + $0x58] sm:$0xff]  ;;  %v6274_v0 = vld [vmem:[%s7658_s7 + $0x28] sm:$0xff]  ;;  %s4130_s14 = ssub.f32 1.0, %s4129_s9 }
  0x77   : > { %4922 = vmatprep.mubr.msk.f32.mxu0 %vm843_vm0, %v731_v47  ;;  %4921 = vmatpush3.msra.mxu0 %v727_v46  ;;  %v735_v59 = vld [vmem:[%s7656_s5 + $0x20] sm:$0xff]  ;;  %v737_v1 = vld [vmem:[%s7656_s5 + $0x30] sm:$0xff]  ;;  %v4343_v2 = vld [vmem:[%s6163_s19 + $0x18] sm:$0xff]  }
  0x78   : > { %4949 = vmatpush3.bf16.msra.mxu1 %v1074_v45  ;;  %4923 = vmatmul.mubr.msk.f32.vlgmr.msra.gmra.mxu0 %vm843_vm0, %v732_v48  ;;  %v6255_v60 = vld [vmem:[%s7658_s7 + $0x20] sm:$0xff]  ;;  %v6284_v3 = vld [vmem:[%s7658_s7 + $0x30] sm:$0xff]  ;;  %v738_v4 = vld [vmem:[%s7656_s5 + $0x38] sm:$0xff]  ;;  %p7732_p8 = scmp.ne.s32.totalorder %s7729_s20, 0 }
  0x79   : > { %4950 = vmatprep.mubr.msk.f32.mxu1 %vm843_vm0, %v6204_v49  ;;  %1145 = vperm.xlu1 %5651, %v1071_v50   ;;  %v4341_v5 = vld [vmem:[%s6163_s19 + $0x10] sm:$0xff]   ;;  %v6304_v8 = vld [vmem:[%s7658_s7 + $0x38] sm:$0xff]  ;;  %v739_v9 = vld [vmem:[%s7656_s5 + $0x40] sm:$0xff] }
  0x7a   : > { %830 = vperm.xlu0 %5650, %v760_v51   ;;  %4925 = vmatprep.mubr.msk.f32.mxu0 %vm843_vm0, %v733_v53  ;;  %v1068_v6 = vld [vmem:[%s7659_s8 + $0x50] sm:$0xff]  ;;  %v6313_v10 = vld [vmem:[%s7658_s7 + $0x40] sm:$0xff]  ;;  %v740_v11 = vld [vmem:[%s7656_s5 + $0x48] sm:$0xff] }
  0x7b   : > { %4951 = vmatmul.mubr.msk.f32.vlgmr.msra.gmra.mxu1 %vm843_vm0, %v6216_v52  ;;  %v757_v7 = vld [vmem:[%s7657_s6 + $0x50] sm:$0xff]  ;;  %5009 = vmatprep.subr.bf16.mxu1 %v4343_v2  ;;  %v1067_v12 = vld [vmem:[%s7659_s8 + $0x48] sm:$0xff]  ;;  %v742_v18 = vld [vmem:[%s7656_s5 + $0x58] sm:$0xff] }
  0x7c   : > { %4953 = vmatprep.mubr.msk.f32.mxu1 %vm843_vm0, %v6227_v54  ;;  %4926 = vmatmul.mubr.msk.f32.gmra.mxu0 %vm843_vm0, %v734_v55  ;;  %v756_v13 = vld [vmem:[%s7657_s6 + $0x48] sm:$0xff]  ;;  %v741_v16 = vld [vmem:[%s7656_s5 + $0x50] sm:$0xff]  ;;  %v1066_v19 = vld [vmem:[%s7659_s8 + $0x40] sm:$0xff] }
  0x7d   : > { %1140 = vperm.xlu1 %5651, %v1070_v56   ;;  %4928 = vmatprep.mubr.msk.f32.mxu0 %vm843_vm0, %v735_v59  ;;  %v4365_v14 = vld [vmem:[%s6163_s19 + $0x28] sm:$0xff]   ;;  %v6342_v17 = vld [vmem:[%s7658_s7 + $0x50] sm:$0xff]  ;;  %v755_v20 = vld [vmem:[%s7657_s6 + $0x40] sm:$0xff] }
  0x7e   : > { %825 = vperm.xlu0 %5650, %v759_v57   ;;  %5010 = vmatpush3.bf16.msra.mxu1 %v4343_v2  ;;  %v6333_v15 = vld [vmem:[%s7658_s7 + $0x48] sm:$0xff]  ;;  %v6361_v21 = vld [vmem:[%s7658_s7 + $0x58] sm:$0xff]  ;;  %v743_v22 = vld [vmem:[%s7656_s5 + $0x60] sm:$0xff]  ;;  %v7674_v2 = vmov 0.0  }
  0x7f   : > { %4954 = vmatmul.mubr.msk.f32.gmra.mxu1 %vm843_vm0, %v6246_v58  ;;  %5011 = vmatprep.subr.bf16.mxu1 %v4341_v5  ;;  %7699 = vst [vmem:[#allocation22_spill] sm:$0xff] %v6361_v21  ;;  %v6370_v23 = vld [vmem:[%s7658_s7 + $0x60] sm:$0xff]  ;;  %v744_v24 = vld [vmem:[%s7656_s5 + $0x68] sm:$0xff]  ;;  %v1065_v25 = vld [vmem:[%s7659_s8 + $0x38] sm:$0xff] }
  0x80   : > { %4956 = vmatprep.mubr.msk.f32.mxu1 %vm843_vm0, %v6255_v60  ;;  %4929 = vmatmul.mubr.msk.f32.gmra.mxu0 %vm843_vm0, %v736_v61  ;;  %7700 = vst [vmem:[#allocation23_spill] sm:$0xff] %v6370_v23  ;;  %v754_v26 = vld [vmem:[%s7657_s6 + $0x38] sm:$0xff]  ;;  %v6389_v27 = vld [vmem:[%s7658_s7 + $0x68] sm:$0xff]  ;;  %v745_v28 = vld [vmem:[%s7656_s5 + $0x70] sm:$0xff] }
  0x81   : > { %1135 = vperm.xlu1 %5651, %v1069_v62   ;;  %4931 = vmatprep.mubr.msk.f32.mxu0 %vm843_vm0, %v737_v1  ;;  %7701 = vst [vmem:[#allocation24_spill] sm:$0xff] %v6389_v27  ;;  %v6398_v29 = vld [vmem:[%s7658_s7 + $0x70] sm:$0xff]  ;;  %v746_v30 = vld [vmem:[%s7656_s5 + $0x78] sm:$0xff]  ;;  %v4363_v34 = vld [vmem:[%s6163_s19 + $0x20] sm:$0xff]  }
  0x82   : > { %820 = vperm.xlu0 %5650, %v758_v63   ;;  %5012 = vmatpush3.bf16.msra.mxu1 %v4341_v5  ;;  %7702 = vst [vmem:[#allocation25_spill] sm:$0xff] %v6398_v29  ;;  %v1064_v31 = vld [vmem:[%s7659_s8 + $0x30] sm:$0xff]  ;;  %v6417_v33 = vld [vmem:[%s7658_s7 + $0x78] sm:$0xff]  ;;  %v1063_v35 = vld [vmem:[%s7659_s8 + $0x28] sm:$0xff] }
  0x83   : > { %4957 = vmatmul.mubr.msk.f32.gmra.mxu1 %vm843_vm0, %v6274_v0  ;;  %5072 = vmatprep.subr.bf16.mxu1 %v4365_v14  ;;  %v753_v32 = vld [vmem:[%s7657_s6 + $0x30] sm:$0xff]  ;;  %7703 = vst [vmem:[#allocation26_spill] sm:$0xff] %v6417_v33  ;;  %v752_v36 = vld [vmem:[%s7657_s6 + $0x28] sm:$0xff]  ;;  %v4387_v37 = vld [vmem:[%s6163_s19 + $0x38] sm:$0xff]  }
  0x84   : > { %4959 = vmatprep.mubr.msk.f32.mxu1 %vm843_vm0, %v6284_v3  ;;  %4932 = vmatmul.mubr.msk.f32.gmra.mxu0 %vm843_vm0, %v738_v4  ;;  %v1062_v38 = vld [vmem:[%s7659_s8 + $0x20] sm:$0xff]  ;;  %v1061_v40 = vld [vmem:[%s7659_s8 + $0x18] sm:$0xff]  ;;  %v1060_v42 = vld [vmem:[%s7659_s8 + $0x10] sm:$0xff] }
  0x85   : > { %1130 = vperm.xlu1 %5651, %v1068_v6   ;;  %4934 = vmatprep.mubr.msk.f32.mxu0 %vm843_vm0, %v739_v9  ;;  %v751_v39 = vld [vmem:[%s7657_s6 + $0x20] sm:$0xff]  ;;  %v750_v41 = vld [vmem:[%s7657_s6 + $0x18] sm:$0xff]  ;;  %v749_v43 = vld [vmem:[%s7657_s6 + $0x10] sm:$0xff] }
  0x86   : > { %815 = vperm.xlu0 %5650, %v757_v7   ;;  %v1059_v44 = vld [vmem:[%s7659_s8 + $0x8] sm:$0xff]  ;;  %v1058_v46 = vld [vmem:[%s7659_s8] sm:$0xff]  ;;  %v3881_v48 = vld [vmem:[%s7661_s10 + $0x10] sm:$0xff]  ;;  %4974 = vmatprep.subr.mxu0 %v7674_v2 }
  0x87   : > { %4960 = vmatmul.mubr.msk.f32.gmra.mxu1 %vm843_vm0, %v6304_v8  ;;  %v748_v45 = vld [vmem:[%s7657_s6 + $0x8] sm:$0xff]  ;;  %v747_v47 = vld [vmem:[%s7657_s6] sm:$0xff]  ;;  %v3882_v50 = vld [vmem:[%s7661_s10 + $0x18] sm:$0xff] }
  0x88   : > { %4962 = vmatprep.mubr.msk.f32.mxu1 %vm843_vm0, %v6313_v10  ;;  %4935 = vmatmul.mubr.msk.f32.gmra.mxu0 %vm843_vm0, %v740_v11  ;;  %v3879_v51 = vld [vmem:[%s7661_s10] sm:$0xff]  ;;  %v3880_v53 = vld [vmem:[%s7661_s10 + $0x8] sm:$0xff]  ;;  %v4385_v55 = vld [vmem:[%s6163_s19 + $0x30] sm:$0xff]  }
  0x89   : > { %1125 = vperm.xlu1 %5651, %v1067_v12   ;;  %4937 = vmatprep.mubr.msk.f32.mxu0 %vm843_vm0, %v741_v16  ;;  %v4009_v56 = vld [vmem:[%s7663_s12 + $0x8] sm:$0xff]  ;;  %v4008_v57 = vld [vmem:[%s7663_s12] sm:$0xff]  ;;  %v4011_v61 = vld [vmem:[%s7663_s12 + $0x18] sm:$0xff] }
  0x8a   : > { %810 = vperm.xlu0 %5650, %v756_v13   ;;  %v4409_v59 = vld [vmem:[%s6163_s19 + $0x48] sm:$0xff]   ;;  %v4010_v62 = vld [vmem:[%s7663_s12 + $0x10] sm:$0xff]  ;;  %v4407_v63 = vld [vmem:[%s6163_s19 + $0x40] sm:$0xff]  }
  0x8b   : > { %4963 = vmatmul.mubr.msk.f32.gmra.mxu1 %vm843_vm0, %v6333_v15  ;;  %v4431_v1 = vld [vmem:[%s6163_s19 + $0x58] sm:$0xff]   ;;  %v4429_v4 = vld [vmem:[%s6163_s19 + $0x50] sm:$0xff]   ;;  %v4453_v5 = vld [vmem:[%s6163_s19 + $0x68] sm:$0xff]  }
  0x8c   : > { %4965 = vmatprep.mubr.msk.f32.mxu1 %vm843_vm0, %v6342_v17  ;;  %4938 = vmatmul.mubr.msk.f32.gmra.mxu0 %vm843_vm0, %v742_v18  ;;  %v4451_v6 = vld [vmem:[%s6163_s19 + $0x60] sm:$0xff]   ;;  %v4475_v9 = vld [vmem:[%s6163_s19 + $0x78] sm:$0xff]  }
  0x8d   : > { %1120 = vperm.xlu1 %5651, %v1066_v19   ;;  %4940 = vmatprep.mubr.msk.f32.mxu0 %vm843_vm0, %v743_v22 }
  0x8e   : > { %805 = vperm.xlu0 %5650, %v755_v20  }
  0x8f   : > { %4966 = vmatmul.mubr.msk.f32.gmra.mxu1 %vm843_vm0, %v6361_v21 }
  0x90   : > { %4968 = vmatprep.mubr.msk.f32.mxu1 %vm843_vm0, %v6370_v23  ;;  %4941 = vmatmul.mubr.msk.f32.gmra.mxu0 %vm843_vm0, %v744_v24  ;;  %v4473_v24 = vld [vmem:[%s6163_s19 + $0x70] sm:$0xff]  }
  0x91   : > { %1115 = vperm.xlu1 %5651, %v1065_v25   ;;  %4943 = vmatprep.mubr.msk.f32.mxu0 %vm843_vm0, %v745_v28 }
  0x92   : > { %800 = vperm.xlu0 %5650, %v754_v26  }
  0x93   : > { %4969 = vmatmul.mubr.msk.f32.gmra.mxu1 %vm843_vm0, %v6389_v27 }
  0x94   : > { %4971 = vmatprep.mubr.msk.f32.mxu1 %vm843_vm0, %v6398_v29  ;;  %4944 = vmatmul.mubr.msk.f32.gmra.mxu0 %vm843_vm0, %v746_v30 }
  0x95   : > { %1110 = vperm.xlu1 %5651, %v1064_v31   ;;  %5006 = vmatprep.mubr.msk.f32.mxu0 %vm5883_vm1, %v7674_v2 }
  0x96   : > { %795 = vperm.xlu0 %5650, %v753_v32  }
  0x97   : > { %4972 = vmatmul.mubr.msk.f32.gmra.mxu1 %vm843_vm0, %v6417_v33 }
  0x98   : > { %5013 = vmatprep.mubr.msk.f32.mxu1 %vm843_vm0, %v6204_v49 }
  0x99   : > { %1105 = vperm.xlu1 %5651, %v1063_v35  }
  0x9a   : > { %790 = vperm.xlu0 %5650, %v752_v36  }
  0x9b   : > { %5014 = vmatmul.mubr.msk.f32.vlgmr.msra.gmra.mxu1 %vm843_vm0, %v6216_v52 }
  0x9c   : > { %5016 = vmatprep.mubr.msk.f32.mxu1 %vm843_vm0, %v6227_v54  ;;  %5073 = vmatpush3.bf16.msra.mxu1 %v4365_v14 }
  0x9d   : > { %5074 = vmatprep.subr.bf16.mxu1 %v4363_v34  ;;  %1100 = vperm.xlu1 %5651, %v1062_v38  }
  0x9e   : > { %785 = vperm.xlu0 %5650, %v751_v39  }
  0x9f   : > { %5017 = vmatmul.mubr.msk.f32.gmra.mxu1 %vm843_vm0, %v6246_v58 }
  0xa0   : > { %5019 = vmatprep.mubr.msk.f32.mxu1 %vm843_vm0, %v6255_v60  ;;  %5075 = vmatpush3.bf16.msra.mxu1 %v4363_v34 }
  0xa1   : > { %5135 = vmatprep.subr.bf16.mxu1 %v4387_v37  ;;  %1095 = vperm.xlu1 %5651, %v1061_v40  }
  0xa2   : > { %780 = vperm.xlu0 %5650, %v750_v41  }
  0xa3   : > { %5020 = vmatmul.mubr.msk.f32.gmra.mxu1 %vm843_vm0, %v6274_v0 }
  0xa4   : > { %5022 = vmatprep.mubr.msk.f32.mxu1 %vm843_vm0, %v6284_v3 }
  0xa5   : > { %1090 = vperm.xlu1 %5651, %v1060_v42  }
  0xa6   : > { %775 = vperm.xlu0 %5650, %v749_v43  }
  0xa7   : > { %5023 = vmatmul.mubr.msk.f32.gmra.mxu1 %vm843_vm0, %v6304_v8 }
  0xa8   : > { %5025 = vmatprep.mubr.msk.f32.mxu1 %vm843_vm0, %v6313_v10 }
  0xa9   : > { %1085 = vperm.xlu1 %5651, %v1059_v44  }
  0xaa   : > { %770 = vperm.xlu0 %5650, %v748_v45  }
  0xab   : > { %5026 = vmatmul.mubr.msk.f32.gmra.mxu1 %vm843_vm0, %v6333_v15 }
  0xac   : > { %5028 = vmatprep.mubr.msk.f32.mxu1 %vm843_vm0, %v6342_v17 }
  0xad   : > { %1080 = vperm.xlu1 %5651, %v1058_v46  }
  0xae   : > { %765 = vperm.xlu0 %5650, %v747_v47  }
  0xaf   : > { %5029 = vmatmul.mubr.msk.f32.gmra.mxu1 %vm843_vm0, %v6361_v21 }
  0xb0   : > { %5031 = vmatprep.mubr.msk.f32.mxu1 %vm843_vm0, %v6370_v23 }
  0xb1   : > { %3895 = vperm.xlu1 %5651, %v3881_v48  }
  0xb2   : > { %3900 = vperm.xlu0 %5650, %v3882_v50  }
  0xb3   : > { %5032 = vmatmul.mubr.msk.f32.gmra.mxu1 %vm843_vm0, %v6389_v27 }
  0xb4   : > { %5034 = vmatprep.mubr.msk.f32.mxu1 %vm843_vm0, %v6398_v29 }
  0xb5   : > { %3885 = vperm.xlu1 %5651, %v3879_v51  }
  0xb6   : > { %3890 = vperm.xlu0 %5650, %v3880_v53  }
  0xb7   : > { %5035 = vmatmul.mubr.msk.f32.gmra.mxu1 %vm843_vm0, %v6417_v33 }
  0xb8   : > { %5076 = vmatprep.mubr.msk.f32.mxu1 %vm843_vm0, %v6204_v49 }
  0xb9   : > { %4019 = vperm.xlu1 %5651, %v4009_v56  }
  0xba   : > { %4014 = vperm.xlu0 %5650, %v4008_v57  }
  0xbb   : > { %5077 = vmatmul.mubr.msk.f32.vlgmr.msra.gmra.mxu1 %vm843_vm0, %v6216_v52 }
  0xbc   : > { %5079 = vmatprep.mubr.msk.f32.mxu1 %vm843_vm0, %v6227_v54  ;;  %5136 = vmatpush3.bf16.msra.mxu1 %v4387_v37 }
  0xbd   : > { %5137 = vmatprep.subr.bf16.mxu1 %v4385_v55  ;;  %4029 = vperm.xlu1 %5651, %v4011_v61  }
  0xbe   : > { %4024 = vperm.xlu0 %5650, %v4010_v62  }
  0xbf   : > { %5080 = vmatmul.mubr.msk.f32.gmra.mxu1 %vm843_vm0, %v6246_v58 }
  0xc0   : > { %5082 = vmatprep.mubr.msk.f32.mxu1 %vm843_vm0, %v6255_v60  ;;  %5138 = vmatpush3.bf16.msra.mxu1 %v4385_v55 }
  0xc1   : > { %5198 = vmatprep.subr.bf16.mxu1 %v4409_v59 }
  0xc3   : > { %5083 = vmatmul.mubr.msk.f32.gmra.mxu1 %vm843_vm0, %v6274_v0 }
  0xc4   : > { %5085 = vmatprep.mubr.msk.f32.mxu1 %vm843_vm0, %v6284_v3 }
  0xc7   : > { %5086 = vmatmul.mubr.msk.f32.gmra.mxu1 %vm843_vm0, %v6304_v8 }
  0xc8   : > { %5088 = vmatprep.mubr.msk.f32.mxu1 %vm843_vm0, %v6313_v10 }
  0xcb   : > { %5089 = vmatmul.mubr.msk.f32.gmra.mxu1 %vm843_vm0, %v6333_v15 }
  0xcc   : > { %5091 = vmatprep.mubr.msk.f32.mxu1 %vm843_vm0, %v6342_v17 }
  0xcf   : > { %5092 = vmatmul.mubr.msk.f32.gmra.mxu1 %vm843_vm0, %v6361_v21 }
  0xd0   : > { %5094 = vmatprep.mubr.msk.f32.mxu1 %vm843_vm0, %v6370_v23 }
  0xd3   : > { %5095 = vmatmul.mubr.msk.f32.gmra.mxu1 %vm843_vm0, %v6389_v27 }
  0xd4   : > { %5097 = vmatprep.mubr.msk.f32.mxu1 %vm843_vm0, %v6398_v29 }
  0xd7   : > { %5098 = vmatmul.mubr.msk.f32.gmra.mxu1 %vm843_vm0, %v6417_v33 }
  0xd8   : > { %5139 = vmatprep.mubr.msk.f32.mxu1 %vm843_vm0, %v6204_v49 }
  0xdb   : > { %5140 = vmatmul.mubr.msk.f32.vlgmr.msra.gmra.mxu1 %vm843_vm0, %v6216_v52 }
  0xdc   : > { %5142 = vmatprep.mubr.msk.f32.mxu1 %vm843_vm0, %v6227_v54  ;;  %5199 = vmatpush3.bf16.msra.mxu1 %v4409_v59 }
  0xdd   : > { %5200 = vmatprep.subr.bf16.mxu1 %v4407_v63 }
  0xdf   : > { %5143 = vmatmul.mubr.msk.f32.gmra.mxu1 %vm843_vm0, %v6246_v58 }
  0xe0   : > { %5145 = vmatprep.mubr.msk.f32.mxu1 %vm843_vm0, %v6255_v60  ;;  %5201 = vmatpush3.bf16.msra.mxu1 %v4407_v63 }
  0xe1   : > { %5261 = vmatprep.subr.bf16.mxu1 %v4431_v1 }
  0xe3   : > { %5146 = vmatmul.mubr.msk.f32.gmra.mxu1 %vm843_vm0, %v6274_v0 }
  0xe4   : > { %5148 = vmatprep.mubr.msk.f32.mxu1 %vm843_vm0, %v6284_v3 }
  0xe7   : > { %5149 = vmatmul.mubr.msk.f32.gmra.mxu1 %vm843_vm0, %v6304_v8 }
  0xe8   : > { %5151 = vmatprep.mubr.msk.f32.mxu1 %vm843_vm0, %v6313_v10 }
  0xeb   : > { %5152 = vmatmul.mubr.msk.f32.gmra.mxu1 %vm843_vm0, %v6333_v15  ;;  %v6627_v11 = vpop.permute.xlu0 %840 }
  0xec   : > { %5154 = vmatprep.mubr.msk.f32.mxu1 %vm843_vm0, %v6342_v17  ;;  %v6624_v7 = vpop.permute.xlu1 %835 }
  0xef   : > { %5155 = vmatmul.mubr.msk.f32.gmra.mxu1 %vm843_vm0, %v6361_v21  ;;  %v6639_v13 = vpop.permute.xlu0 %1155 }
  0xf0   : > { %5157 = vmatprep.mubr.msk.f32.mxu1 %vm843_vm0, %v6370_v23  ;;  %v6633_v12 = vpop.permute.xlu1 %1150 }
  0xf3   : > { %5158 = vmatmul.mubr.msk.f32.gmra.mxu1 %vm843_vm0, %v6389_v27 }
  0xf4   : > { %5160 = vmatprep.mubr.msk.f32.mxu1 %vm843_vm0, %v6398_v29  ;;  %v6645_v14 = vpop.permute.xlu1 %1145 }
  0xf5   : > { %v6647_v16 = vpop.permute.xlu0 %830 }
  0xf7   : > { %5161 = vmatmul.mubr.msk.f32.gmra.mxu1 %vm843_vm0, %v6417_v33 }
  0xf8   : > { %5202 = vmatprep.mubr.msk.f32.mxu1 %vm843_vm0, %v6204_v49  ;;  %v6653_v18 = vpop.permute.xlu1 %1140 }
  0xf9   : > { %v6659_v19 = vpop.permute.xlu0 %825 }
  0xfb   : > { %5203 = vmatmul.mubr.msk.f32.vlgmr.msra.gmra.mxu1 %vm843_vm0, %v6216_v52 }
  0xfc   : > { %5205 = vmatprep.mubr.msk.f32.mxu1 %vm843_vm0, %v6227_v54  ;;  %5262 = vmatpush3.bf16.msra.mxu1 %v4431_v1  ;;  %v6665_v20 = vpop.permute.xlu1 %1135 }
  0xfd   : > { %5263 = vmatprep.subr.bf16.mxu1 %v4429_v4  ;;  %v6667_v22 = vpop.permute.xlu0 %820 }
  0xff   : > { %5206 = vmatmul.mubr.msk.f32.gmra.mxu1 %vm843_vm0, %v6246_v58 }
 0x100   : > { %5208 = vmatprep.mubr.msk.f32.mxu1 %vm843_vm0, %v6255_v60  ;;  %5264 = vmatpush3.bf16.msra.mxu1 %v4429_v4  ;;  %v6674_v25 = vpop.permute.xlu1 %1130 }
 0x101   : > { %5324 = vmatprep.subr.bf16.mxu1 %v4453_v5  ;;  %v6680_v26 = vpop.permute.xlu0 %815 }
 0x103   : > { %5209 = vmatmul.mubr.msk.f32.gmra.mxu1 %vm843_vm0, %v6274_v0 }
 0x104   : > { %5211 = vmatprep.mubr.msk.f32.mxu1 %vm843_vm0, %v6284_v3  ;;  %v6692_v32 = vpop.permute.xlu1 %1125 }
 0x105   : > { %v6698_v36 = vpop.permute.xlu0 %810 }
 0x107   : > { %5212 = vmatmul.mubr.msk.f32.gmra.mxu1 %vm843_vm0, %v6304_v8 }
 0x108   : > { %5214 = vmatprep.mubr.msk.f32.mxu1 %vm843_vm0, %v6313_v10  ;;  %v6712_v41 = vpop.permute.xlu1 %1120 }
 0x109   : > { %v6722_v44 = vpop.permute.xlu0 %805 }
 0x10b   : > { %5215 = vmatmul.mubr.msk.f32.gmra.mxu1 %vm843_vm0, %v6333_v15 }
 0x10c   : > { %5217 = vmatprep.mubr.msk.f32.mxu1 %vm843_vm0, %v6342_v17  ;;  %v6736_v50 = vpop.permute.xlu1 %1115 }
 0x10d   : > { %v6742_v55 = vpop.permute.xlu0 %800 }
 0x10f   : > { %5218 = vmatmul.mubr.msk.f32.gmra.mxu1 %vm843_vm0, %v6361_v21 }
 0x110   : > { %5220 = vmatprep.mubr.msk.f32.mxu1 %vm843_vm0, %v6370_v23  ;;  %v6752_v62 = vpop.permute.xlu1 %1110 }
 0x111   : > { %v6758_v4 = vpop.permute.xlu0 %795 }
 0x113   : > { %5221 = vmatmul.mubr.msk.f32.gmra.mxu1 %vm843_vm0, %v6389_v27 }
 0x114   : > { %5223 = vmatprep.mubr.msk.f32.mxu1 %vm843_vm0, %v6398_v29  ;;  %v6764_v2 = vpop.permute.xlu1 %1105 }
 0x117   : > { %5224 = vmatmul.mubr.msk.f32.gmra.mxu1 %vm843_vm0, %v6417_v33 }
 0x118   : > { %5265 = vmatprep.mubr.msk.f32.mxu1 %vm843_vm0, %v6204_v49 }
 0x11b   : > { %5266 = vmatmul.mubr.msk.f32.vlgmr.msra.gmra.mxu1 %vm843_vm0, %v6216_v52 }
 0x11c   : > { %5268 = vmatprep.mubr.msk.f32.mxu1 %vm843_vm0, %v6227_v54  ;;  %5325 = vmatpush3.bf16.msra.mxu1 %v4453_v5 }
 0x11d   : > { %5326 = vmatprep.subr.bf16.mxu1 %v4451_v6 }
 0x11f   : > { %5269 = vmatmul.mubr.msk.f32.gmra.mxu1 %vm843_vm0, %v6246_v58 }
 0x120   : > { %5271 = vmatprep.mubr.msk.f32.mxu1 %vm843_vm0, %v6255_v60  ;;  %5327 = vmatpush3.bf16.msra.mxu1 %v4451_v6 }
 0x121   : > { %5387 = vmatprep.subr.bf16.mxu1 %v4475_v9 }
 0x123   : > { %5272 = vmatmul.mubr.msk.f32.gmra.mxu1 %vm843_vm0, %v6274_v0 }
 0x124   : > { %5274 = vmatprep.mubr.msk.f32.mxu1 %vm843_vm0, %v6284_v3 }
 0x127   : > { %5275 = vmatmul.mubr.msk.f32.gmra.mxu1 %vm843_vm0, %v6304_v8 }
 0x128   : > { %5277 = vmatprep.mubr.msk.f32.mxu1 %vm843_vm0, %v6313_v10 }
 0x12b   : > { %5278 = vmatmul.mubr.msk.f32.gmra.mxu1 %vm843_vm0, %v6333_v15 }
 0x12c   : > { %5280 = vmatprep.mubr.msk.f32.mxu1 %vm843_vm0, %v6342_v17 }
 0x12f   : > { %5281 = vmatmul.mubr.msk.f32.gmra.mxu1 %vm843_vm0, %v6361_v21 }
 0x130   : > { %5283 = vmatprep.mubr.msk.f32.mxu1 %vm843_vm0, %v6370_v23 }
 0x133   : > { %5284 = vmatmul.mubr.msk.f32.gmra.mxu1 %vm843_vm0, %v6389_v27 }
 0x134   : > { %5286 = vmatprep.mubr.msk.f32.mxu1 %vm843_vm0, %v6398_v29 }
 0x137   : > { %5287 = vmatmul.mubr.msk.f32.gmra.mxu1 %vm843_vm0, %v6417_v33 }
 0x138   : > { %5328 = vmatprep.mubr.msk.f32.mxu1 %vm843_vm0, %v6204_v49  ;;  %v6682_v28 = vpop.f32.mrf.mxu0 }
 0x139   : > { %7704 = vst [vmem:[#allocation27_spill] sm:$0xff] %v6682_v28  ;;  %v6766_v28 = vpop.permute.xlu0 %790 }
 0x13a   : > { %v6688_v31 = vpop.f32.mrf.mxu0 }
 0x13b   : > { %v6684_v30 = vpop.f32.mrf.mxu1  ;;  %5329 = vmatmul.mubr.msk.f32.vlgmr.msra.gmra.mxu1 %vm843_vm0, %v6216_v52  ;;  %7706 = vst [vmem:[#allocation29_spill] sm:$0xff] %v6688_v31 }
 0x13c   : > { %7705 = vst [vmem:[#allocation28_spill] sm:$0xff] %v6684_v30  ;;  %5331 = vmatprep.mubr.msk.f32.mxu1 %vm843_vm0, %v6227_v54  ;;  %5388 = vmatpush3.bf16.msra.mxu1 %v4475_v9  ;;  %v6696_v35 = vpop.f32.mrf.mxu0 }
 0x13d   : > { %v6694_v34 = vpop.f32.mrf.mxu1  ;;  %5389 = vmatprep.subr.bf16.mxu1 %v4473_v24  ;;  %7708 = vst [vmem:[#allocation31_spill] sm:$0xff] %v6696_v35 }
 0x13e   : > { %7707 = vst [vmem:[#allocation30_spill] sm:$0xff] %v6694_v34  ;;  %v6704_v38 = vpop.f32.mrf.mxu0 }
 0x13f   : > { %v6700_v37 = vpop.f32.mrf.mxu1  ;;  %5332 = vmatmul.mubr.msk.f32.gmra.mxu1 %vm843_vm0, %v6246_v58  ;;  %7709 = vst [vmem:[#allocation32_spill] sm:$0xff] %v6704_v38 }
 0x140   : > { %5334 = vmatprep.mubr.msk.f32.mxu1 %vm843_vm0, %v6255_v60  ;;  %5390 = vmatpush3.bf16.msra.mxu1 %v4473_v24  ;;  %v6710_v40 = vpop.f32.mrf.mxu0 }
 0x141   : > { %v6708_v39 = vpop.f32.mrf.mxu1 }
 0x142   : > { %7710 = vst [vmem:[#allocation33_spill] sm:$0xff] %v6708_v39  ;;  %v6718_v43 = vpop.f32.mrf.mxu0 }
 0x143   : > { %v6714_v42 = vpop.f32.mrf.mxu1  ;;  %5335 = vmatmul.mubr.msk.f32.gmra.mxu1 %vm843_vm0, %v6274_v0  ;;  %7711 = vst [vmem:[#allocation34_spill] sm:$0xff] %v6718_v43 }
 0x144   : > { %5337 = vmatprep.mubr.msk.f32.mxu1 %vm843_vm0, %v6284_v3  ;;  %v6726_v46 = vpop.f32.mrf.mxu0 }
 0x145   : > { %v6724_v45 = vpop.f32.mrf.mxu1 }
 0x146   : > { %v6732_v48 = vpop.f32.mrf.mxu0 }
 0x147   : > { %v6728_v47 = vpop.f32.mrf.mxu1  ;;  %5338 = vmatmul.mubr.msk.f32.gmra.mxu1 %vm843_vm0, %v6304_v8 }
 0x148   : > { %5340 = vmatprep.mubr.msk.f32.mxu1 %vm843_vm0, %v6313_v10  ;;  %v6740_v53 = vpop.f32.mrf.mxu0 }
 0x149   : > { %v6738_v51 = vpop.f32.mrf.mxu1 }
 0x14a   : > { %v6746_v57 = vpop.f32.mrf.mxu0 }
 0x14b   : > { %v4964_v56 = vpop.f32.mrf.mxu1  ;;  %5341 = vmatmul.mubr.msk.f32.gmra.mxu1 %vm843_vm0, %v6333_v15 }
 0x14c   : > { %5343 = vmatprep.mubr.msk.f32.mxu1 %vm843_vm0, %v6342_v17  ;;  %v4939_v61 = vpop.f32.mrf.mxu0 }
 0x14d   : > { %v6750_v59 = vpop.f32.mrf.mxu1 }
 0x14e   : > { %v1008_v1 = vpop.f32.mrf.mxu0 }
 0x14f   : > { %v4967_v63 = vpop.f32.mrf.mxu1  ;;  %5344 = vmatmul.mubr.msk.f32.gmra.mxu1 %vm843_vm0, %v6361_v21 }
 0x150   : > { %5346 = vmatprep.mubr.msk.f32.mxu1 %vm843_vm0, %v6370_v23  ;;  %v4942_v6 = vpop.f32.mrf.mxu0 }
 0x151   : > { %v1302_v5 = vpop.f32.mrf.mxu1 }
 0x152   : > { %v1018_v24 = vpop.f32.mrf.mxu0 }
 0x153   : > { %v4970_v9 = vpop.f32.mrf.mxu1  ;;  %5347 = vmatmul.mubr.msk.f32.gmra.mxu1 %vm843_vm0, %v6389_v27 }
 0x154   : > { %5349 = vmatprep.mubr.msk.f32.mxu1 %vm843_vm0, %v6398_v29  ;;  %v4945_v34 = vpop.f32.mrf.mxu0  ;;  %v1318_v39 = vadd.f32 %v4970_v9, %v6645_v14 }
 0x155   : > { %v1312_v31 = vpop.f32.mrf.mxu1  ;;  %v6771_v30 = vadd.f32 %v4945_v34, %v6627_v11  ;;  %v6789_v34 = vadd.f32 %v4942_v6, %v6647_v16 }
 0x156   : > { %v1028_v23 = vpop.f32.mrf.mxu0 }
 0x157   : > { %v4973_v38 = vpop.f32.mrf.mxu1  ;;  %5350 = vmatmul.mubr.msk.f32.gmra.mxu1 %vm843_vm0, %v6417_v33  ;;  %v6778_v35 = vadd.f32 %v1028_v23, %v6624_v7  ;;  %v6782_v33 = vpop.permute.xlu1 %1100  ;;  %v1308_v7 = vadd.f32 %v4967_v63, %v6665_v20  ;;  %v1344_v16 = vmul.f32 %v1318_v39, %v6789_v34  ;;  %v1298_v63 = vadd.f32 %v4964_v56, %v6692_v32 }
 0x158   : > { %v1328_v27 = vadd.f32 %v4973_v38, %v6639_v13  ;;  %5391 = vmatprep.mubr.msk.f32.mxu1 %vm843_vm0, %v6204_v49  ;;  %v1313_v49 = vadd.f32 %v1312_v31, %v6653_v18  ;;  %v6795_v23 = vpop.permute.xlu0 %785  ;;  %v1303_v31 = vadd.f32 %v1302_v5, %v6674_v25  ;;  %v1293_v56 = vadd.f32 %v6750_v59, %v6712_v41 }
 0x159   : > { %v1322_v29 = vpop.f32.mrf.mxu1 }
 0x15a   : > { %v1346_v21 = vmul.f32 %v1328_v27, %v6771_v30  ;;  %v1323_v43 = vadd.f32 %v1322_v29, %v6633_v12  ;;  %v7712_v27 = vmov 0.0  }
 0x15b   : > { %v6784_v11 = vpop.f32.mrf.mxu1  ;;  %5392 = vmatmul.mubr.msk.f32.vlgmr.msra.gmra.mxu1 %vm843_vm0, %v6216_v52  ;;  %v6802_v52 = vadd.f32 %v1018_v24, %v6659_v19  ;;  %v6817_v19 = vpop.permute.xlu1 %1095 }
 0x15c   : > { %v1345_v38 = vmul.f32 %v1323_v43, %v6778_v35  ;;  %4975 = vmatpush3.msra.mxu0 %v1346_v21  ;;  %5394 = vmatprep.mubr.msk.f32.mxu1 %vm843_vm0, %v6227_v54  ;;  %v6811_v54 = vadd.f32 %v4939_v61, %v6667_v22  ;;  %v781_v61 = vpop.permute.xlu0 %780 }
 0x15d   : > { %4976 = vmatprep.subr.mxu0 %v7712_v27  ;;  %v6798_v29 = vpop.f32.mrf.mxu1  ;;  %v1343_v43 = vmul.f32 %v1313_v49, %v6802_v52 }
 0x15e   : > { %4977 = vmatpush3.msra.mxu0 %v1345_v38  ;;  %v1342_v22 = vmul.f32 %v1308_v7, %v6811_v54  ;;  %v7714_v38 = vld [vmem:[#allocation22_spill] sm:$0xff]  ;;  %v7715_v7 = vld [vmem:[#allocation31_spill] sm:$0xff] }
 0x15f   : > { %4978 = vmatprep.subr.mxu0 %v7712_v27  ;;  %v6806_v21 = vpop.f32.mrf.mxu1  ;;  %5395 = vmatmul.mubr.msk.f32.gmra.mxu1 %vm843_vm0, %v6246_v58  ;;  %v6824_v58 = vadd.f32 %v1008_v1, %v6680_v26  ;;  %v6851_v59 = vpop.permute.xlu1 %1090 }
 0x160   : > { %4979 = vmatpush3.msra.mxu0 %v1344_v16  ;;  %5397 = vmatprep.mubr.msk.f32.mxu1 %vm843_vm0, %v6255_v60  ;;  %v6834_v60 = vadd.f32 %v6740_v53, %v6698_v36  ;;  %v6848_v36 = vadd.f32 %v6746_v57, %v6722_v44  ;;  %v1283_v44 = vadd.f32 %v6738_v51, %v6752_v62  ;;  %v776_v57 = vpop.permute.xlu0 %775 }
 0x161   : > { %4980 = vmatprep.subr.mxu0 %v7712_v27  ;;  %v6820_v39 = vpop.f32.mrf.mxu1  ;;  %v1341_v26 = vmul.f32 %v1303_v31, %v6824_v58  ;;  %v6907_v16 = vadd.f32 %v7715_v7, %v781_v61  ;;  %v7716_v31 = vld [vmem:[#allocation33_spill] sm:$0xff] }
 0x162   : > { %4981 = vmatpush3.msra.mxu0 %v1343_v43  ;;  %v1340_v53 = vmul.f32 %v1298_v63, %v6834_v60 }
 0x163   : > { %4982 = vmatprep.subr.mxu0 %v7712_v27  ;;  %v6828_v5 = vpop.f32.mrf.mxu1  ;;  %5398 = vmatmul.mubr.msk.f32.gmra.mxu1 %vm843_vm0, %v6274_v0  ;;  %v1288_v0 = vadd.f32 %v6728_v47, %v6736_v50  ;;  %v1339_v47 = vmul.f32 %v1293_v56, %v6848_v36 }
 0x164   : > { %4983 = vmatpush3.msra.mxu0 %v1342_v22  ;;  %5400 = vmatprep.mubr.msk.f32.mxu1 %vm843_vm0, %v6284_v3  ;;  %v6860_v3 = vadd.f32 %v6726_v46, %v6742_v55  ;;  %v6874_v46 = vadd.f32 %v6732_v48, %v6758_v4  ;;  %v6891_v4 = vpop.permute.xlu1 %1085  ;;  %v771_v49 = vpop.permute.xlu0 %770  ;;  %v7718_v22 = vld [vmem:[#allocation28_spill] sm:$0xff] }
 0x165   : > { %4984 = vmatprep.subr.mxu0 %v7712_v27  ;;  %v6842_v1 = vpop.f32.mrf.mxu1  ;;  %v1258_v56 = vadd.f32 %v7718_v22, %v6891_v4  ;;  %v6947_v22 = vld [vmem:[%s7654_s3] sm:$0xf] }
 0x166   : > { %4985 = vmatpush3.msra.mxu0 %v1341_v26  ;;  %v1338_v51 = vmul.f32 %v1288_v0, %v6860_v3  ;;  %v1337_v48 = vmul.f32 %v1283_v44, %v6874_v46  ;;  %v7719_v26 = vld [vmem:[#allocation32_spill] sm:$0xff] }
 0x167   : > { %4986 = vmatprep.subr.mxu0 %v7712_v27  ;;  %v6854_v6 = vpop.f32.mrf.mxu1  ;;  %5401 = vmatmul.mubr.msk.f32.gmra.mxu1 %vm843_vm0, %v6304_v8  ;;  %v1278_v8 = vadd.f32 %v6714_v42, %v6764_v2  ;;  %v1273_v42 = vadd.f32 %v6724_v45, %v6782_v33  ;;  %v6918_v0 = vadd.f32 %v7719_v26, %v776_v57 }
 0x168   : > { %4987 = vmatpush3.msra.mxu0 %v1340_v53  ;;  %5403 = vmatprep.mubr.msk.f32.mxu1 %vm843_vm0, %v6313_v10  ;;  %v6884_v10 = vadd.f32 %v6710_v40, %v6766_v28  ;;  %v7713_v28 = vld [vmem:[#allocation34_spill] sm:$0xff]  ;;  %v6921_v53 = vpop.permute.xlu1 %1080 }
 0x169   : > { %4988 = vmatprep.subr.mxu0 %v7712_v27  ;;  %v6868_v9 = vpop.f32.mrf.mxu1  ;;  %v6900_v40 = vadd.f32 %v7713_v28, %v6795_v23  ;;  %v7717_v23 = vld [vmem:[#allocation23_spill] sm:$0xff]  ;;  %v7723_v28 = vld [vmem:[#allocation25_spill] sm:$0xff] }
 0x16a   : > { %4989 = vmatpush3.msra.mxu0 %v1339_v47  ;;  %v1336_v45 = vmul.f32 %v1278_v8, %v6884_v10  ;;  %v7720_v47 = vld [vmem:[#allocation24_spill] sm:$0xff]  ;;  %v7721_v8 = vld [vmem:[#allocation27_spill] sm:$0xff] }
 0x16b   : > { %4990 = vmatprep.subr.mxu0 %v7712_v27  ;;  %v6878_v55 = vpop.f32.mrf.mxu1  ;;  %5404 = vmatmul.mubr.msk.f32.gmra.mxu1 %vm843_vm0, %v6333_v15  ;;  %v1268_v15 = vadd.f32 %v6700_v37, %v6817_v19  ;;  %v1263_v37 = vadd.f32 %v7716_v31, %v6851_v59  ;;  %v1335_v43 = vmul.f32 %v1273_v42, %v6900_v40  ;;  %v7722_v42 = vld [vmem:[#allocation30_spill] sm:$0xff] }
 0x16c   : > { %4991 = vmatpush3.msra.mxu0 %v1338_v51  ;;  %5406 = vmatprep.mubr.msk.f32.mxu1 %vm843_vm0, %v6342_v17  ;;  %v6927_v51 = vadd.f32 %v7721_v8, %v771_v49 }
 0x16d   : > { %4992 = vmatprep.subr.mxu0 %v7712_v27  ;;  %v6894_v24 = vpop.f32.mrf.mxu1  ;;  %v1334_v61 = vmul.f32 %v1268_v15, %v6907_v16  ;;  %v1333_v57 = vmul.f32 %v1263_v37, %v6918_v0  ;;  %v766_v15 = vpop.permute.xlu0 %765 }
 0x16e   : > { %4993 = vmatpush3.msra.mxu0 %v1337_v48  ;;  %v1253_v48 = vadd.f32 %v7722_v42, %v6921_v53  ;;  %v1332_v31 = vmul.f32 %v1258_v56, %v6927_v51 }
 0x16f   : > { %4994 = vmatprep.subr.mxu0 %v7712_v27  ;;  %v5030_v17 = vpop.f32.mrf.mxu1  ;;  %5407 = vmatmul.mubr.msk.f32.gmra.mxu1 %vm843_vm0, %v7714_v38  ;;  %v7724_v38 = vld [vmem:[#allocation29_spill] sm:$0xff] }
 0x170   : > { %4995 = vmatpush3.msra.mxu0 %v1336_v45  ;;  %5409 = vmatprep.mubr.msk.f32.mxu1 %vm843_vm0, %v7717_v23  ;;  %v6936_v7 = vadd.f32 %v7724_v38, %v766_v15 }
 0x171   : > { %4996 = vmatprep.subr.mxu0 %v7712_v27  ;;  %v1518_v63 = vpop.f32.mrf.mxu1 }
 0x172   : > { %4997 = vmatpush3.msra.mxu0 %v1335_v43  ;;  %v7725_v43 = vld [vmem:[#allocation26_spill] sm:$0xff]  ;;  %v1331_v37 = vmul.f32 %v1253_v48, %v6936_v7 }
 0x173   : > { %4998 = vmatprep.subr.mxu0 %v7712_v27  ;;  %v5033_v44 = vpop.f32.mrf.mxu1  ;;  %5410 = vmatmul.mubr.msk.f32.gmra.mxu1 %vm843_vm0, %v7720_v47 }
 0x174   : > { %4999 = vmatpush3.msra.mxu0 %v1334_v61  ;;  %5412 = vmatprep.mubr.msk.f32.mxu1 %vm843_vm0, %v7723_v28  ;;  %v1534_v26 = vadd.f32 %v5033_v44, %v6645_v14 }
 0x175   : > { %5000 = vmatprep.subr.mxu0 %v7712_v27  ;;  %v1528_v45 = vpop.f32.mrf.mxu1 }
 0x176   : > { %5001 = vmatpush3.msra.mxu0 %v1333_v57  ;;  %v1529_v42 = vadd.f32 %v1528_v45, %v6653_v18  ;;  %v1524_v57 = vadd.f32 %v5030_v17, %v6665_v20  ;;  %v1560_v28 = vmul.f32 %v1534_v26, %v6789_v34  ;;  %v1519_v45 = vadd.f32 %v1518_v63, %v6674_v25 }
 0x177   : > { %5002 = vmatprep.subr.mxu0 %v7712_v27  ;;  %v5036_v49 = vpop.f32.mrf.mxu1  ;;  %5413 = vmatmul.mubr.msk.f32.gmra.mxu1 %vm843_vm0, %v7725_v43  ;;  %v1509_v63 = vadd.f32 %v6894_v24, %v6712_v41  ;;  %v1499_v24 = vadd.f32 %v6868_v9, %v6752_v62 }
 0x178   : > { %v1544_v23 = vadd.f32 %v5036_v49, %v6639_v13  ;;  %5003 = vmatpush3.msra.mxu0 %v1332_v31  ;;  %v1559_v38 = vmul.f32 %v1529_v42, %v6802_v52  ;;  %v1514_v49 = vadd.f32 %v6878_v55, %v6692_v32  ;;  %v1558_v17 = vmul.f32 %v1524_v57, %v6811_v54 }
 0x179   : > { %5004 = vmatprep.subr.mxu0 %v7712_v27  ;;  %v1538_v56 = vpop.f32.mrf.mxu1  ;;  %v1504_v55 = vadd.f32 %v6854_v6, %v6736_v50  ;;  %v1494_v6 = vadd.f32 %v6828_v5, %v6764_v2  ;;  %v1489_v57 = vadd.f32 %v6842_v1, %v6782_v33  ;;  %v1553_v9 = vmul.f32 %v1499_v24, %v6874_v46 }
 0x17a   : > { %v1562_v61 = vmul.f32 %v1544_v23, %v6771_v30  ;;  %v1539_v47 = vadd.f32 %v1538_v56, %v6633_v12  ;;  %5005 = vmatpush3.msra.mxu0 %v1331_v37  ;;  %v1557_v37 = vmul.f32 %v1519_v45, %v6824_v58  ;;  %v1556_v56 = vmul.f32 %v1514_v49, %v6834_v60 }
 0x17b   : > { %5007 = vmatmul.mubr.f32.vlgmr.msra.gmra.mxu0 %v6947_v22  ;;  %5037 = vmatprep.subr.mxu0 %v7712_v27  ;;  %v6955_v8 = vpop.f32.mrf.mxu1  ;;  %v1554_v42 = vmul.f32 %v1504_v55, %v6860_v3  ;;  %v1484_v45 = vadd.f32 %v6806_v21, %v6817_v19  ;;  %v1552_v5 = vmul.f32 %v1494_v6, %v6884_v10 }
 0x17c   : > { %v1561_v48 = vmul.f32 %v1539_v47, %v6778_v35  ;;  %5038 = vmatpush3.msra.mxu0 %v1562_v61  ;;  %5069 = vmatprep.mubr.msk.f32.mxu0 %vm5883_vm1, %v7712_v27  ;;  %v1555_v61 = vmul.f32 %v1509_v63, %v6848_v36  ;;  %v1479_v49 = vadd.f32 %v6820_v39, %v6851_v59 }
 0x17d   : > { %5039 = vmatprep.subr.mxu0 %v7712_v27  ;;  %v6962_v44 = vpop.f32.mrf.mxu1  ;;  %v1551_v1 = vmul.f32 %v1489_v57, %v6900_v40  ;;  %v1474_v63 = vadd.f32 %v6784_v11, %v6891_v4  ;;  %v1550_v21 = vmul.f32 %v1484_v45, %v6907_v16  ;;  %v1469_v55 = vadd.f32 %v6798_v29, %v6921_v53 }
 0x17e   : > { %5040 = vmatpush3.msra.mxu0 %v1561_v48  ;;  %v1549_v39 = vmul.f32 %v1479_v49, %v6918_v0 }
 0x17f   : > { %5041 = vmatprep.subr.mxu0 %v7712_v27  ;;  %v6967_v15 = vpop.f32.mrf.mxu1  ;;  %v1548_v24 = vmul.f32 %v1474_v63, %v6927_v51 }
 0x180   : > { %5042 = vmatpush3.msra.mxu0 %v1560_v28 }
 0x181   : > { %5043 = vmatprep.subr.mxu0 %v7712_v27  ;;  %v6972_v31 = vpop.f32.mrf.mxu1 }
 0x182   : > { %5044 = vmatpush3.msra.mxu0 %v1559_v38 }
 0x183   : > { %5045 = vmatprep.subr.mxu0 %v7712_v27  ;;  %v6978_v43 = vpop.f32.mrf.mxu1 }
 0x184   : > { %5046 = vmatpush3.msra.mxu0 %v1558_v17 }
 0x185   : > { %5047 = vmatprep.subr.mxu0 %v7712_v27  ;;  %v6984_v23 = vpop.f32.mrf.mxu1 }
 0x186   : > { %5048 = vmatpush3.msra.mxu0 %v1557_v37 }
 0x187   : > { %5049 = vmatprep.subr.mxu0 %v7712_v27  ;;  %v6990_v26 = vpop.f32.mrf.mxu1 }
 0x188   : > { %5050 = vmatpush3.msra.mxu0 %v1556_v56 }
 0x189   : > { %5051 = vmatprep.subr.mxu0 %v7712_v27  ;;  %v6996_v47 = vpop.f32.mrf.mxu1 }
 0x18a   : > { %5052 = vmatpush3.msra.mxu0 %v1555_v61  ;;  %v1547_v61 = vmul.f32 %v1469_v55, %v6936_v7 }
 0x18b   : > { %5053 = vmatprep.subr.mxu0 %v7712_v27  ;;  %v5090_v48 = vpop.f32.mrf.mxu1 }
 0x18c   : > { %5054 = vmatpush3.msra.mxu0 %v1554_v42 }
 0x18d   : > { %5055 = vmatprep.subr.mxu0 %v7712_v27  ;;  %v1725_v28 = vpop.f32.mrf.mxu1 }
 0x18e   : > { %5056 = vmatpush3.msra.mxu0 %v1553_v9 }
 0x18f   : > { %5057 = vmatprep.subr.mxu0 %v7712_v27  ;;  %v5093_v38 = vpop.f32.mrf.mxu1 }
 0x190   : > { %5058 = vmatpush3.msra.mxu0 %v1552_v5  ;;  %v1741_v63 = vadd.f32 %v5093_v38, %v6665_v20 }
 0x191   : > { %5059 = vmatprep.subr.mxu0 %v7712_v27  ;;  %v1735_v17 = vpop.f32.mrf.mxu1 }
 0x192   : > { %5060 = vmatpush3.msra.mxu0 %v1551_v1  ;;  %v1736_v55 = vadd.f32 %v1735_v17, %v6674_v25  ;;  %v1775_v38 = vmul.f32 %v1741_v63, %v6811_v54  ;;  %v1706_v63 = vadd.f32 %v6984_v23, %v6782_v33 }
 0x193   : > { %5061 = vmatprep.subr.mxu0 %v7712_v27  ;;  %v5096_v37 = vpop.f32.mrf.mxu1 }
 0x194   : > { %5062 = vmatpush3.msra.mxu0 %v1550_v21  ;;  %v1751_v42 = vadd.f32 %v5096_v37, %v6645_v14  ;;  %v1774_v17 = vmul.f32 %v1736_v55, %v6824_v58  ;;  %v1701_v55 = vadd.f32 %v6967_v15, %v6817_v19  ;;  %v1768_v23 = vmul.f32 %v1706_v63, %v6900_v40 }
 0x195   : > { %5063 = vmatprep.subr.mxu0 %v7712_v27  ;;  %v1745_v56 = vpop.f32.mrf.mxu1 }
 0x196   : > { %5064 = vmatpush3.msra.mxu0 %v1549_v39  ;;  %v1746_v5 = vadd.f32 %v1745_v56, %v6653_v18  ;;  %v1777_v21 = vmul.f32 %v1751_v42, %v6789_v34  ;;  %v1767_v15 = vmul.f32 %v1701_v55, %v6907_v16 }
 0x197   : > { %5065 = vmatprep.subr.mxu0 %v7712_v27  ;;  %v5099_v11 = vpop.f32.mrf.mxu1 }
 0x198   : > { %v1761_v6 = vadd.f32 %v5099_v11, %v6639_v13  ;;  %5066 = vmatpush3.msra.mxu0 %v1548_v24  ;;  %v1776_v39 = vmul.f32 %v1746_v5, %v6802_v52  ;;  %v1731_v24 = vadd.f32 %v5090_v48, %v6692_v32 }
 0x199   : > { %5067 = vmatprep.subr.mxu0 %v7712_v27  ;;  %v1755_v29 = vpop.f32.mrf.mxu1 }
 0x19a   : > { %v1779_v57 = vmul.f32 %v1761_v6, %v6771_v30  ;;  %v1756_v9 = vadd.f32 %v1755_v29, %v6633_v12  ;;  %5068 = vmatpush3.msra.mxu0 %v1547_v61  ;;  %v1726_v61 = vadd.f32 %v1725_v28, %v6712_v41  ;;  %v1721_v29 = vadd.f32 %v6990_v26, %v6736_v50 }
 0x19b   : > { %5070 = vmatmul.mubr.f32.vlgmr.msra.gmra.mxu0 %v6947_v22  ;;  %5100 = vmatprep.subr.mxu0 %v7712_v27  ;;  %v7032_v45 = vpop.f32.mrf.mxu1  ;;  %v1773_v48 = vmul.f32 %v1731_v24, %v6834_v60  ;;  %v1716_v28 = vadd.f32 %v6996_v47, %v6752_v62  ;;  %v1711_v26 = vadd.f32 %v6978_v43, %v6764_v2 }
 0x19c   : > { %v1778_v49 = vmul.f32 %v1756_v9, %v6778_v35  ;;  %5101 = vmatpush3.msra.mxu0 %v1779_v57  ;;  %5132 = vmatprep.mubr.msk.f32.mxu0 %vm5883_vm1, %v7712_v27  ;;  %v1772_v57 = vmul.f32 %v1726_v61, %v6848_v36  ;;  %v1771_v5 = vmul.f32 %v1721_v29, %v6860_v3 }
 0x19d   : > { %5102 = vmatprep.subr.mxu0 %v7712_v27  ;;  %v7039_v1 = vpop.f32.mrf.mxu1  ;;  %v1770_v47 = vmul.f32 %v1716_v28, %v6874_v46  ;;  %v1769_v43 = vmul.f32 %v1711_v26, %v6884_v10  ;;  %v1696_v24 = vadd.f32 %v6972_v31, %v6851_v59  ;;  %v1691_v61 = vadd.f32 %v6955_v8, %v6891_v4 }
 0x19e   : > { %5103 = vmatpush3.msra.mxu0 %v1778_v49  ;;  %v1686_v29 = vadd.f32 %v6962_v44, %v6921_v53 }
 0x19f   : > { %5104 = vmatprep.subr.mxu0 %v7712_v27  ;;  %v7044_v37 = vpop.f32.mrf.mxu1  ;;  %v1766_v31 = vmul.f32 %v1696_v24, %v6918_v0  ;;  %v1765_v28 = vmul.f32 %v1691_v61, %v6927_v51 }
 0x1a0   : > { %5105 = vmatpush3.msra.mxu0 %v1777_v21 }
 0x1a1   : > { %5106 = vmatprep.subr.mxu0 %v7712_v27  ;;  %v7049_v56 = vpop.f32.mrf.mxu1 }
 0x1a2   : > { %5107 = vmatpush3.msra.mxu0 %v1776_v39 }
 0x1a3   : > { %5108 = vmatprep.subr.mxu0 %v7712_v27  ;;  %v7054_v11 = vpop.f32.mrf.mxu1 }
 0x1a4   : > { %5109 = vmatpush3.msra.mxu0 %v1775_v38 }
 0x1a5   : > { %5110 = vmatprep.subr.mxu0 %v7712_v27  ;;  %v7059_v6 = vpop.f32.mrf.mxu1 }
 0x1a6   : > { %5111 = vmatpush3.msra.mxu0 %v1774_v17 }
 0x1a7   : > { %5112 = vmatprep.subr.mxu0 %v7712_v27  ;;  %v7065_v42 = vpop.f32.mrf.mxu1 }
 0x1a8   : > { %5113 = vmatpush3.msra.mxu0 %v1773_v48 }
 0x1a9   : > { %5114 = vmatprep.subr.mxu0 %v7712_v27  ;;  %v7071_v9 = vpop.f32.mrf.mxu1 }
 0x1aa   : > { %5115 = vmatpush3.msra.mxu0 %v1772_v57  ;;  %v1764_v57 = vmul.f32 %v1686_v29, %v6936_v7 }
 0x1ab   : > { %5116 = vmatprep.subr.mxu0 %v7712_v27  ;;  %v5153_v49 = vpop.f32.mrf.mxu1 }
 0x1ac   : > { %5117 = vmatpush3.msra.mxu0 %v1771_v5 }
 0x1ad   : > { %5118 = vmatprep.subr.mxu0 %v7712_v27  ;;  %v1942_v21 = vpop.f32.mrf.mxu1 }
 0x1ae   : > { %5119 = vmatpush3.msra.mxu0 %v1770_v47 }
 0x1af   : > { %5120 = vmatprep.subr.mxu0 %v7712_v27  ;;  %v5156_v39 = vpop.f32.mrf.mxu1 }
 0x1b0   : > { %5121 = vmatpush3.msra.mxu0 %v1769_v43  ;;  %v1958_v61 = vadd.f32 %v5156_v39, %v6665_v20 }
 0x1b1   : > { %5122 = vmatprep.subr.mxu0 %v7712_v27  ;;  %v1952_v38 = vpop.f32.mrf.mxu1 }
 0x1b2   : > { %5123 = vmatpush3.msra.mxu0 %v1768_v23  ;;  %v1953_v29 = vadd.f32 %v1952_v38, %v6674_v25  ;;  %v1992_v39 = vmul.f32 %v1958_v61, %v6811_v54  ;;  %v1923_v61 = vadd.f32 %v7059_v6, %v6782_v33 }
 0x1b3   : > { %5124 = vmatprep.subr.mxu0 %v7712_v27  ;;  %v5159_v17 = vpop.f32.mrf.mxu1 }
 0x1b4   : > { %5125 = vmatpush3.msra.mxu0 %v1767_v15  ;;  %v1968_v5 = vadd.f32 %v5159_v17, %v6645_v14  ;;  %v1991_v38 = vmul.f32 %v1953_v29, %v6824_v58  ;;  %v1918_v29 = vadd.f32 %v7044_v37, %v6817_v19  ;;  %v1985_v6 = vmul.f32 %v1923_v61, %v6900_v40 }
 0x1b5   : > { %5126 = vmatprep.subr.mxu0 %v7712_v27  ;;  %v1962_v48 = vpop.f32.mrf.mxu1 }
 0x1b6   : > { %5127 = vmatpush3.msra.mxu0 %v1766_v31  ;;  %v1963_v43 = vadd.f32 %v1962_v48, %v6653_v18  ;;  %v1994_v15 = vmul.f32 %v1968_v5, %v6789_v34  ;;  %v1984_v37 = vmul.f32 %v1918_v29, %v6907_v16 }
 0x1b7   : > { %5128 = vmatprep.subr.mxu0 %v7712_v27  ;;  %v5162_v8 = vpop.f32.mrf.mxu1 }
 0x1b8   : > { %v1978_v26 = vadd.f32 %v5162_v8, %v6639_v13  ;;  %5129 = vmatpush3.msra.mxu0 %v1765_v28  ;;  %v1993_v31 = vmul.f32 %v1963_v43, %v6802_v52  ;;  %v1948_v28 = vadd.f32 %v5153_v49, %v6692_v32 }
 0x1b9   : > { %5130 = vmatprep.subr.mxu0 %v7712_v27  ;;  %v1972_v44 = vpop.f32.mrf.mxu1 }
 0x1ba   : > { %v1996_v63 = vmul.f32 %v1978_v26, %v6771_v30  ;;  %v1973_v47 = vadd.f32 %v1972_v44, %v6633_v12  ;;  %5131 = vmatpush3.msra.mxu0 %v1764_v57  ;;  %v1943_v57 = vadd.f32 %v1942_v21, %v6712_v41  ;;  %v1938_v44 = vadd.f32 %v7065_v42, %v6736_v50 }
 0x1bb   : > { %5133 = vmatmul.mubr.f32.vlgmr.msra.gmra.mxu0 %v6947_v22  ;;  %5163 = vmatprep.subr.mxu0 %v7712_v27  ;;  %v7107_v55 = vpop.f32.mrf.mxu1  ;;  %v1990_v49 = vmul.f32 %v1948_v28, %v6834_v60  ;;  %v1933_v21 = vadd.f32 %v7071_v9, %v6752_v62  ;;  %v1928_v42 = vadd.f32 %v7054_v11, %v6764_v2 }
 0x1bc   : > { %v1995_v24 = vmul.f32 %v1973_v47, %v6778_v35  ;;  %5164 = vmatpush3.msra.mxu0 %v1996_v63  ;;  %5195 = vmatprep.mubr.msk.f32.mxu0 %vm5883_vm1, %v7712_v27  ;;  %v1989_v63 = vmul.f32 %v1943_v57, %v6848_v36  ;;  %v1988_v43 = vmul.f32 %v1938_v44, %v6860_v3 }
 0x1bd   : > { %5165 = vmatprep.subr.mxu0 %v7712_v27  ;;  %v7114_v23 = vpop.f32.mrf.mxu1  ;;  %v1987_v9 = vmul.f32 %v1933_v21, %v6874_v46  ;;  %v1986_v11 = vmul.f32 %v1928_v42, %v6884_v10  ;;  %v1913_v28 = vadd.f32 %v7049_v56, %v6851_v59  ;;  %v1908_v57 = vadd.f32 %v7032_v45, %v6891_v4 }
 0x1be   : > { %5166 = vmatpush3.msra.mxu0 %v1995_v24  ;;  %v1903_v44 = vadd.f32 %v7039_v1, %v6921_v53 }
 0x1bf   : > { %5167 = vmatprep.subr.mxu0 %v7712_v27  ;;  %v7119_v17 = vpop.f32.mrf.mxu1  ;;  %v1983_v56 = vmul.f32 %v1913_v28, %v6918_v0  ;;  %v1982_v21 = vmul.f32 %v1908_v57, %v6927_v51 }
 0x1c0   : > { %5168 = vmatpush3.msra.mxu0 %v1994_v15 }
 0x1c1   : > { %5169 = vmatprep.subr.mxu0 %v7712_v27  ;;  %v7124_v48 = vpop.f32.mrf.mxu1 }
 0x1c2   : > { %5170 = vmatpush3.msra.mxu0 %v1993_v31 }
 0x1c3   : > { %5171 = vmatprep.subr.mxu0 %v7712_v27  ;;  %v7129_v8 = vpop.f32.mrf.mxu1 }
 0x1c4   : > { %5172 = vmatpush3.msra.mxu0 %v1992_v39 }
 0x1c5   : > { %5173 = vmatprep.subr.mxu0 %v7712_v27  ;;  %v7134_v26 = vpop.f32.mrf.mxu1 }
 0x1c6   : > { %5174 = vmatpush3.msra.mxu0 %v1991_v38 }
 0x1c7   : > { %5175 = vmatprep.subr.mxu0 %v7712_v27  ;;  %v7140_v5 = vpop.f32.mrf.mxu1 }
 0x1c8   : > { %5176 = vmatpush3.msra.mxu0 %v1990_v49 }
 0x1c9   : > { %5177 = vmatprep.subr.mxu0 %v7712_v27  ;;  %v7146_v47 = vpop.f32.mrf.mxu1 }
 0x1ca   : > { %5178 = vmatpush3.msra.mxu0 %v1989_v63  ;;  %v1981_v63 = vmul.f32 %v1903_v44, %v6936_v7 }
 0x1cb   : > { %5179 = vmatprep.subr.mxu0 %v7712_v27  ;;  %v5216_v24 = vpop.f32.mrf.mxu1 }
 0x1cc   : > { %5180 = vmatpush3.msra.mxu0 %v1988_v43 }
 0x1cd   : > { %5181 = vmatprep.subr.mxu0 %v7712_v27  ;;  %v2159_v15 = vpop.f32.mrf.mxu1 }
 0x1ce   : > { %5182 = vmatpush3.msra.mxu0 %v1987_v9 }
 0x1cf   : > { %5183 = vmatprep.subr.mxu0 %v7712_v27  ;;  %v5219_v31 = vpop.f32.mrf.mxu1 }
 0x1d0   : > { %5184 = vmatpush3.msra.mxu0 %v1986_v11  ;;  %v2175_v57 = vadd.f32 %v5219_v31, %v6665_v20 }
 0x1d1   : > { %5185 = vmatprep.subr.mxu0 %v7712_v27  ;;  %v2169_v39 = vpop.f32.mrf.mxu1 }
 0x1d2   : > { %5186 = vmatpush3.msra.mxu0 %v1985_v6  ;;  %v2170_v44 = vadd.f32 %v2169_v39, %v6674_v25  ;;  %v2209_v31 = vmul.f32 %v2175_v57, %v6811_v54  ;;  %v2140_v57 = vadd.f32 %v7134_v26, %v6782_v33 }
 0x1d3   : > { %5187 = vmatprep.subr.mxu0 %v7712_v27  ;;  %v5222_v38 = vpop.f32.mrf.mxu1 }
 0x1d4   : > { %5188 = vmatpush3.msra.mxu0 %v1984_v37  ;;  %v2185_v43 = vadd.f32 %v5222_v38, %v6645_v14  ;;  %v2208_v39 = vmul.f32 %v2170_v44, %v6824_v58  ;;  %v2135_v44 = vadd.f32 %v7119_v17, %v6817_v19  ;;  %v2202_v26 = vmul.f32 %v2140_v57, %v6900_v40 }
 0x1d5   : > { %5189 = vmatprep.subr.mxu0 %v7712_v27  ;;  %v2179_v49 = vpop.f32.mrf.mxu1 }
 0x1d6   : > { %5190 = vmatpush3.msra.mxu0 %v1983_v56  ;;  %v2180_v11 = vadd.f32 %v2179_v49, %v6653_v18  ;;  %v2211_v37 = vmul.f32 %v2185_v43, %v6789_v34  ;;  %v2201_v17 = vmul.f32 %v2135_v44, %v6907_v16 }
 0x1d7   : > { %5191 = vmatprep.subr.mxu0 %v7712_v27  ;;  %v5225_v45 = vpop.f32.mrf.mxu1 }
 0x1d8   : > { %v2195_v42 = vadd.f32 %v5225_v45, %v6639_v13  ;;  %5192 = vmatpush3.msra.mxu0 %v1982_v21  ;;  %v2210_v56 = vmul.f32 %v2180_v11, %v6802_v52  ;;  %v2165_v21 = vadd.f32 %v5216_v24, %v6692_v32 }
 0x1d9   : > { %5193 = vmatprep.subr.mxu0 %v7712_v27  ;;  %v2189_v1 = vpop.f32.mrf.mxu1 }
 0x1da   : > { %v2213_v61 = vmul.f32 %v2195_v42, %v6771_v30  ;;  %v2190_v9 = vadd.f32 %v2189_v1, %v6633_v12  ;;  %5194 = vmatpush3.msra.mxu0 %v1981_v63  ;;  %v2160_v63 = vadd.f32 %v2159_v15, %v6712_v41  ;;  %v2155_v1 = vadd.f32 %v7140_v5, %v6736_v50 }
 0x1db   : > { %5196 = vmatmul.mubr.f32.vlgmr.msra.gmra.mxu0 %v6947_v22  ;;  %5226 = vmatprep.subr.mxu0 %v7712_v27  ;;  %v7182_v29 = vpop.f32.mrf.mxu1  ;;  %v2207_v24 = vmul.f32 %v2165_v21, %v6834_v60  ;;  %v2150_v15 = vadd.f32 %v7146_v47, %v6752_v62  ;;  %v2145_v5 = vadd.f32 %v7129_v8, %v6764_v2 }
 0x1dc   : > { %v2212_v28 = vmul.f32 %v2190_v9, %v6778_v35  ;;  %5227 = vmatpush3.msra.mxu0 %v2213_v61  ;;  %5258 = vmatprep.mubr.msk.f32.mxu0 %vm5883_vm1, %v7712_v27  ;;  %v2206_v61 = vmul.f32 %v2160_v63, %v6848_v36  ;;  %v2205_v11 = vmul.f32 %v2155_v1, %v6860_v3 }
 0x1dd   : > { %5228 = vmatprep.subr.mxu0 %v7712_v27  ;;  %v7189_v6 = vpop.f32.mrf.mxu1  ;;  %v2204_v47 = vmul.f32 %v2150_v15, %v6874_v46  ;;  %v2203_v8 = vmul.f32 %v2145_v5, %v6884_v10  ;;  %v2130_v21 = vadd.f32 %v7124_v48, %v6851_v59  ;;  %v2125_v63 = vadd.f32 %v7107_v55, %v6891_v4 }
 0x1de   : > { %5229 = vmatpush3.msra.mxu0 %v2212_v28  ;;  %v2120_v1 = vadd.f32 %v7114_v23, %v6921_v53 }
 0x1df   : > { %5230 = vmatprep.subr.mxu0 %v7712_v27  ;;  %v7194_v38 = vpop.f32.mrf.mxu1  ;;  %v2200_v48 = vmul.f32 %v2130_v21, %v6918_v0  ;;  %v2199_v15 = vmul.f32 %v2125_v63, %v6927_v51 }
 0x1e0   : > { %5231 = vmatpush3.msra.mxu0 %v2211_v37 }
 0x1e1   : > { %5232 = vmatprep.subr.mxu0 %v7712_v27  ;;  %v7199_v49 = vpop.f32.mrf.mxu1 }
 0x1e2   : > { %5233 = vmatpush3.msra.mxu0 %v2210_v56 }
 0x1e3   : > { %5234 = vmatprep.subr.mxu0 %v7712_v27  ;;  %v7204_v45 = vpop.f32.mrf.mxu1 }
 0x1e4   : > { %5235 = vmatpush3.msra.mxu0 %v2209_v31 }
 0x1e5   : > { %5236 = vmatprep.subr.mxu0 %v7712_v27  ;;  %v7209_v42 = vpop.f32.mrf.mxu1 }
 0x1e6   : > { %5237 = vmatpush3.msra.mxu0 %v2208_v39 }
 0x1e7   : > { %5238 = vmatprep.subr.mxu0 %v7712_v27  ;;  %v7215_v43 = vpop.f32.mrf.mxu1 }
 0x1e8   : > { %5239 = vmatpush3.msra.mxu0 %v2207_v24 }
 0x1e9   : > { %5240 = vmatprep.subr.mxu0 %v7712_v27  ;;  %v7221_v9 = vpop.f32.mrf.mxu1 }
 0x1ea   : > { %5241 = vmatpush3.msra.mxu0 %v2206_v61  ;;  %v2198_v61 = vmul.f32 %v2120_v1, %v6936_v7 }
 0x1eb   : > { %5242 = vmatprep.subr.mxu0 %v7712_v27  ;;  %v5279_v28 = vpop.f32.mrf.mxu1 }
 0x1ec   : > { %5243 = vmatpush3.msra.mxu0 %v2205_v11 }
 0x1ed   : > { %5244 = vmatprep.subr.mxu0 %v7712_v27  ;;  %v2376_v37 = vpop.f32.mrf.mxu1 }
 0x1ee   : > { %5245 = vmatpush3.msra.mxu0 %v2204_v47 }
 0x1ef   : > { %5246 = vmatprep.subr.mxu0 %v7712_v27  ;;  %v5282_v56 = vpop.f32.mrf.mxu1 }
 0x1f0   : > { %5247 = vmatpush3.msra.mxu0 %v2203_v8  ;;  %v2392_v63 = vadd.f32 %v5282_v56, %v6665_v20 }
 0x1f1   : > { %5248 = vmatprep.subr.mxu0 %v7712_v27  ;;  %v2386_v31 = vpop.f32.mrf.mxu1 }
 0x1f2   : > { %5249 = vmatpush3.msra.mxu0 %v2202_v26  ;;  %v2387_v1 = vadd.f32 %v2386_v31, %v6674_v25  ;;  %v2426_v56 = vmul.f32 %v2392_v63, %v6811_v54  ;;  %v2357_v63 = vadd.f32 %v7209_v42, %v6782_v33 }
 0x1f3   : > { %5250 = vmatprep.subr.mxu0 %v7712_v27  ;;  %v5285_v39 = vpop.f32.mrf.mxu1 }
 0x1f4   : > { %5251 = vmatpush3.msra.mxu0 %v2201_v17  ;;  %v2402_v11 = vadd.f32 %v5285_v39, %v6645_v14  ;;  %v2425_v31 = vmul.f32 %v2387_v1, %v6824_v58  ;;  %v2352_v1 = vadd.f32 %v7194_v38, %v6817_v19  ;;  %v2419_v42 = vmul.f32 %v2357_v63, %v6900_v40 }
 0x1f5   : > { %5252 = vmatprep.subr.mxu0 %v7712_v27  ;;  %v2396_v24 = vpop.f32.mrf.mxu1 }
 0x1f6   : > { %5253 = vmatpush3.msra.mxu0 %v2200_v48  ;;  %v2397_v8 = vadd.f32 %v2396_v24, %v6653_v18  ;;  %v2428_v17 = vmul.f32 %v2402_v11, %v6789_v34  ;;  %v2418_v38 = vmul.f32 %v2352_v1, %v6907_v16 }
 0x1f7   : > { %5254 = vmatprep.subr.mxu0 %v7712_v27  ;;  %v5288_v55 = vpop.f32.mrf.mxu1 }
 0x1f8   : > { %v2412_v5 = vadd.f32 %v5288_v55, %v6639_v13  ;;  %5255 = vmatpush3.msra.mxu0 %v2199_v15  ;;  %v2427_v48 = vmul.f32 %v2397_v8, %v6802_v52  ;;  %v2382_v15 = vadd.f32 %v5279_v28, %v6692_v32 }
 0x1f9   : > { %5256 = vmatprep.subr.mxu0 %v7712_v27  ;;  %v2406_v23 = vpop.f32.mrf.mxu1 }
 0x1fa   : > { %v2430_v57 = vmul.f32 %v2412_v5, %v6771_v30  ;;  %v2407_v47 = vadd.f32 %v2406_v23, %v6633_v12  ;;  %5257 = vmatpush3.msra.mxu0 %v2198_v61  ;;  %v2377_v61 = vadd.f32 %v2376_v37, %v6712_v41  ;;  %v2372_v23 = vadd.f32 %v7215_v43, %v6736_v50 }
 0x1fb   : > { %5259 = vmatmul.mubr.f32.vlgmr.msra.gmra.mxu0 %v6947_v22  ;;  %5289 = vmatprep.subr.mxu0 %v7712_v27  ;;  %v7257_v44 = vpop.f32.mrf.mxu1  ;;  %v2424_v28 = vmul.f32 %v2382_v15, %v6834_v60  ;;  %v2367_v37 = vadd.f32 %v7221_v9, %v6752_v62  ;;  %v2362_v43 = vadd.f32 %v7204_v45, %v6764_v2 }
 0x1fc   : > { %v2429_v21 = vmul.f32 %v2407_v47, %v6778_v35  ;;  %5290 = vmatpush3.msra.mxu0 %v2430_v57  ;;  %5321 = vmatprep.mubr.msk.f32.mxu0 %vm5883_vm1, %v7712_v27  ;;  %v2423_v57 = vmul.f32 %v2377_v61, %v6848_v36  ;;  %v2422_v8 = vmul.f32 %v2372_v23, %v6860_v3 }
 0x1fd   : > { %5291 = vmatprep.subr.mxu0 %v7712_v27  ;;  %v7264_v26 = vpop.f32.mrf.mxu1  ;;  %v2421_v9 = vmul.f32 %v2367_v37, %v6874_v46  ;;  %v2420_v45 = vmul.f32 %v2362_v43, %v6884_v10  ;;  %v2347_v15 = vadd.f32 %v7199_v49, %v6851_v59  ;;  %v2342_v61 = vadd.f32 %v7182_v29, %v6891_v4 }
 0x1fe   : > { %5292 = vmatpush3.msra.mxu0 %v2429_v21  ;;  %v2337_v23 = vadd.f32 %v7189_v6, %v6921_v53 }
 0x1ff   : > { %5293 = vmatprep.subr.mxu0 %v7712_v27  ;;  %v7269_v39 = vpop.f32.mrf.mxu1  ;;  %v2417_v49 = vmul.f32 %v2347_v15, %v6918_v0  ;;  %v2416_v37 = vmul.f32 %v2342_v61, %v6927_v51 }
 0x200   : > { %5294 = vmatpush3.msra.mxu0 %v2428_v17 }
 0x201   : > { %5295 = vmatprep.subr.mxu0 %v7712_v27  ;;  %v7274_v24 = vpop.f32.mrf.mxu1 }
 0x202   : > { %5296 = vmatpush3.msra.mxu0 %v2427_v48 }
 0x203   : > { %5297 = vmatprep.subr.mxu0 %v7712_v27  ;;  %v7279_v55 = vpop.f32.mrf.mxu1 }
 0x204   : > { %5298 = vmatpush3.msra.mxu0 %v2426_v56 }
 0x205   : > { %5299 = vmatprep.subr.mxu0 %v7712_v27  ;;  %v7284_v5 = vpop.f32.mrf.mxu1 }
 0x206   : > { %5300 = vmatpush3.msra.mxu0 %v2425_v31 }
 0x207   : > { %5301 = vmatprep.subr.mxu0 %v7712_v27  ;;  %v7290_v11 = vpop.f32.mrf.mxu1 }
 0x208   : > { %5302 = vmatpush3.msra.mxu0 %v2424_v28 }
 0x209   : > { %5303 = vmatprep.subr.mxu0 %v7712_v27  ;;  %v7296_v47 = vpop.f32.mrf.mxu1 }
 0x20a   : > { %5304 = vmatpush3.msra.mxu0 %v2423_v57  ;;  %v2415_v57 = vmul.f32 %v2337_v23, %v6936_v7 }
 0x20b   : > { %5305 = vmatprep.subr.mxu0 %v7712_v27  ;;  %v5342_v21 = vpop.f32.mrf.mxu1 }
 0x20c   : > { %5306 = vmatpush3.msra.mxu0 %v2422_v8 }
 0x20d   : > { %5307 = vmatprep.subr.mxu0 %v7712_v27  ;;  %v2593_v17 = vpop.f32.mrf.mxu1 }
 0x20e   : > { %5308 = vmatpush3.msra.mxu0 %v2421_v9 }
 0x20f   : > { %5309 = vmatprep.subr.mxu0 %v7712_v27  ;;  %v5345_v48 = vpop.f32.mrf.mxu1 }
 0x210   : > { %5310 = vmatpush3.msra.mxu0 %v2420_v45  ;;  %v2609_v61 = vadd.f32 %v5345_v48, %v6665_v20 }
 0x211   : > { %5311 = vmatprep.subr.mxu0 %v7712_v27  ;;  %v2603_v56 = vpop.f32.mrf.mxu1 }
 0x212   : > { %5312 = vmatpush3.msra.mxu0 %v2419_v42  ;;  %v2604_v23 = vadd.f32 %v2603_v56, %v6674_v25  ;;  %v2643_v48 = vmul.f32 %v2609_v61, %v6811_v54  ;;  %v2574_v61 = vadd.f32 %v7284_v5, %v6782_v33 }
 0x213   : > { %5313 = vmatprep.subr.mxu0 %v7712_v27  ;;  %v5348_v31 = vpop.f32.mrf.mxu1 }
 0x214   : > { %5314 = vmatpush3.msra.mxu0 %v2418_v38  ;;  %v2619_v8 = vadd.f32 %v5348_v31, %v6645_v14  ;;  %v2642_v56 = vmul.f32 %v2604_v23, %v6824_v58  ;;  %v2569_v23 = vadd.f32 %v7269_v39, %v6817_v19  ;;  %v2636_v5 = vmul.f32 %v2574_v61, %v6900_v40 }
 0x215   : > { %5315 = vmatprep.subr.mxu0 %v7712_v27  ;;  %v2613_v28 = vpop.f32.mrf.mxu1 }
 0x216   : > { %5316 = vmatpush3.msra.mxu0 %v2417_v49  ;;  %v2614_v45 = vadd.f32 %v2613_v28, %v6653_v18  ;;  %v2645_v38 = vmul.f32 %v2619_v8, %v6789_v34  ;;  %v2635_v39 = vmul.f32 %v2569_v23, %v6907_v16 }
 0x217   : > { %5317 = vmatprep.subr.mxu0 %v7712_v27  ;;  %v5351_v29 = vpop.f32.mrf.mxu1 }
 0x218   : > { %v2629_v43 = vadd.f32 %v5351_v29, %v6639_v13  ;;  %5318 = vmatpush3.msra.mxu0 %v2416_v37  ;;  %v2644_v49 = vmul.f32 %v2614_v45, %v6802_v52  ;;  %v2599_v37 = vadd.f32 %v5342_v21, %v6692_v32 }
 0x219   : > { %5319 = vmatprep.subr.mxu0 %v7712_v27  ;;  %v2623_v6 = vpop.f32.mrf.mxu1 }
 0x21a   : > { %v2647_v63 = vmul.f32 %v2629_v43, %v6771_v30  ;;  %v2624_v9 = vadd.f32 %v2623_v6, %v6633_v12  ;;  %5320 = vmatpush3.msra.mxu0 %v2415_v57  ;;  %v2594_v57 = vadd.f32 %v2593_v17, %v6712_v41  ;;  %v2589_v6 = vadd.f32 %v7290_v11, %v6736_v50 }
 0x21b   : > { %5322 = vmatmul.mubr.f32.vlgmr.msra.gmra.mxu0 %v6947_v22  ;;  %5352 = vmatprep.subr.mxu0 %v7712_v27  ;;  %v7332_v1 = vpop.f32.mrf.mxu1  ;;  %v2641_v21 = vmul.f32 %v2599_v37, %v6834_v60  ;;  %v2584_v17 = vadd.f32 %v7296_v47, %v6752_v62  ;;  %v2579_v11 = vadd.f32 %v7279_v55, %v6764_v2 }
 0x21c   : > { %v2646_v15 = vmul.f32 %v2624_v9, %v6778_v35  ;;  %5353 = vmatpush3.msra.mxu0 %v2647_v63  ;;  %5384 = vmatprep.mubr.msk.f32.mxu0 %vm5883_vm1, %v7712_v27  ;;  %v2640_v63 = vmul.f32 %v2594_v57, %v6848_v36  ;;  %v2639_v45 = vmul.f32 %v2589_v6, %v6860_v3 }
 0x21d   : > { %5354 = vmatprep.subr.mxu0 %v7712_v27  ;;  %v7339_v42 = vpop.f32.mrf.mxu1  ;;  %v2638_v47 = vmul.f32 %v2584_v17, %v6874_v46  ;;  %v2637_v55 = vmul.f32 %v2579_v11, %v6884_v10  ;;  %v2564_v37 = vadd.f32 %v7274_v24, %v6851_v59  ;;  %v2559_v57 = vadd.f32 %v7257_v44, %v6891_v4 }
 0x21e   : > { %5355 = vmatpush3.msra.mxu0 %v2646_v15  ;;  %v2554_v6 = vadd.f32 %v7264_v26, %v6921_v53 }
 0x21f   : > { %5356 = vmatprep.subr.mxu0 %v7712_v27  ;;  %v7344_v31 = vpop.f32.mrf.mxu1  ;;  %v2634_v24 = vmul.f32 %v2564_v37, %v6918_v0  ;;  %v2633_v17 = vmul.f32 %v2559_v57, %v6927_v51 }
 0x220   : > { %5357 = vmatpush3.msra.mxu0 %v2645_v38 }
 0x221   : > { %5358 = vmatprep.subr.mxu0 %v7712_v27  ;;  %v7349_v28 = vpop.f32.mrf.mxu1 }
 0x222   : > { %5359 = vmatpush3.msra.mxu0 %v2644_v49 }
 0x223   : > { %5360 = vmatprep.subr.mxu0 %v7712_v27  ;;  %v7354_v29 = vpop.f32.mrf.mxu1 }
 0x224   : > { %5361 = vmatpush3.msra.mxu0 %v2643_v48 }
 0x225   : > { %5362 = vmatprep.subr.mxu0 %v7712_v27  ;;  %v7359_v43 = vpop.f32.mrf.mxu1 }
 0x226   : > { %5363 = vmatpush3.msra.mxu0 %v2642_v56 }
 0x227   : > { %5364 = vmatprep.subr.mxu0 %v7712_v27  ;;  %v7365_v8 = vpop.f32.mrf.mxu1 }
 0x228   : > { %5365 = vmatpush3.msra.mxu0 %v2641_v21 }
 0x229   : > { %5366 = vmatprep.subr.mxu0 %v7712_v27  ;;  %v7371_v9 = vpop.f32.mrf.mxu1 }
 0x22a   : > { %5367 = vmatpush3.msra.mxu0 %v2640_v63  ;;  %v2632_v63 = vmul.f32 %v2554_v6, %v6936_v7 }
 0x22b   : > { %5368 = vmatprep.subr.mxu0 %v7712_v27  ;;  %v5405_v15 = vpop.f32.mrf.mxu1 }
 0x22c   : > { %5369 = vmatpush3.msra.mxu0 %v2639_v45 }
 0x22d   : > { %5370 = vmatprep.subr.mxu0 %v7712_v27  ;;  %v2810_v38 = vpop.f32.mrf.mxu1 }
 0x22e   : > { %5371 = vmatpush3.msra.mxu0 %v2638_v47 }
 0x22f   : > { %5372 = vmatprep.subr.mxu0 %v7712_v27  ;;  %v5408_v49 = vpop.f32.mrf.mxu1 }
 0x230   : > { %5373 = vmatpush3.msra.mxu0 %v2637_v55 }
 0x231   : > { %5374 = vmatprep.subr.mxu0 %v7712_v27  ;;  %v2820_v48 = vpop.f32.mrf.mxu1 }
 0x232   : > { %5375 = vmatpush3.msra.mxu0 %v2636_v5 }
 0x233   : > { %5376 = vmatprep.subr.mxu0 %v7712_v27  ;;  %v5411_v56 = vpop.f32.mrf.mxu1 }
 0x234   : > { %5377 = vmatpush3.msra.mxu0 %v2635_v39  ;;  %v2836_v45 = vadd.f32 %v5411_v56, %v6645_v14 }
 0x235   : > { %5378 = vmatprep.subr.mxu0 %v7712_v27  ;;  %v2830_v21 = vpop.f32.mrf.mxu1 }
 0x236   : > { %5379 = vmatpush3.msra.mxu0 %v2634_v24  ;;  %v2831_v55 = vadd.f32 %v2830_v21, %v6653_v18 }
 0x237   : > { %5380 = vmatprep.subr.mxu0 %v7712_v27  ;;  %v5414_v44 = vpop.f32.mrf.mxu1 }
 0x238   : > { %v2846_v11 = vadd.f32 %v5414_v44, %v6639_v13  ;;  %5381 = vmatpush3.msra.mxu0 %v2633_v17  ;;  %v2861_v18 = vmul.f32 %v2831_v55, %v6802_v52 }
 0x239   : > { %5382 = vmatprep.subr.mxu0 %v7712_v27  ;;  %v2840_v26 = vpop.f32.mrf.mxu1 }
 0x23a   : > { %v2864_v61 = vmul.f32 %v2846_v11, %v6771_v30  ;;  %v2841_v47 = vadd.f32 %v2840_v26, %v6633_v12  ;;  %5383 = vmatpush3.msra.mxu0 %v2632_v63  ;;  %v2826_v12 = vadd.f32 %v5408_v49, %v6665_v20  ;;  %v2862_v30 = vmul.f32 %v2836_v45, %v6789_v34 }
 0x23b   : > { %v7405_v23 = vpop.f32.mrf.mxu0  ;;  %5385 = vmatmul.mubr.f32.vlgmr.msra.gmra.mxu0 %v6947_v22  ;;  %5415 = vmatprep.subr.mxu0 %v7712_v27  ;;  %v2821_v22 = vadd.f32 %v2820_v48, %v6674_v25  ;;  %v2811_v20 = vadd.f32 %v2810_v38, %v6712_v41  ;;  %v2806_v25 = vadd.f32 %v7365_v8, %v6736_v50 }
 0x23c   : > { %v2863_v13 = vmul.f32 %v2841_v47, %v6778_v35  ;;  %5416 = vmatpush3.msra.mxu0 %v2864_v61  ;;  %5447 = vmatprep.mubr.msk.f32.mxu0 %vm5883_vm1, %v7712_v27  ;;  %v2816_v35 = vadd.f32 %v5405_v15, %v6692_v32  ;;  %v2860_v37 = vmul.f32 %v2826_v12, %v6811_v54 }
 0x23d   : > { %v5008_v14 = vpop.f32.mrf.mxu0  ;;  %5417 = vmatprep.subr.mxu0 %v7712_v27  ;;  %v2859_v34 = vmul.f32 %v2821_v22, %v6824_v58  ;;  %v2801_v32 = vadd.f32 %v7371_v9, %v6752_v62  ;;  %v2857_v54 = vmul.f32 %v2811_v20, %v6848_v36  ;;  %v2796_v41 = vadd.f32 %v7354_v29, %v6764_v2  ;;  %v7479_v22 = vld [vmem:[%s7726_s25 + $0x8] sm:$0xff] }
 0x23e   : > { %5418 = vmatpush3.msra.mxu0 %v2863_v13  ;;  %v2858_v52 = vmul.f32 %v2816_v35, %v6834_v60  ;;  %v2856_v58 = vmul.f32 %v2806_v25, %v6860_v3  ;;  %v2791_v50 = vadd.f32 %v7359_v43, %v6782_v33  ;;  %v2786_v62 = vadd.f32 %v7344_v31, %v6817_v19  ;;  %v7468_v31 = vld [vmem:[%s7726_s25] sm:$0xff]  ;;  %v1040_v25 = vld [vmem:[%s7726_s25 + $0x10] sm:$0xff] }
 0x23f   : > { %5419 = vmatprep.subr.mxu0 %v7712_v27  ;;  %v2855_v60 = vmul.f32 %v2801_v32, %v6874_v46  ;;  %v2854_v36 = vmul.f32 %v2796_v41, %v6884_v10  ;;  %v2781_v2 = vadd.f32 %v7349_v28, %v6851_v59  ;;  %v2776_v33 = vadd.f32 %v7332_v1, %v6891_v4  ;;  %v1041_v32 = vld [vmem:[%s7726_s25 + $0x18] sm:$0xff] }
 0x240   : > { %5420 = vmatpush3.msra.mxu0 %v2862_v30  ;;  %v2853_v3 = vmul.f32 %v2791_v50, %v6900_v40  ;;  %v2852_v46 = vmul.f32 %v2786_v62, %v6907_v16  ;;  %v2771_v19 = vadd.f32 %v7339_v42, %v6921_v53  ;;  %v5702_v16 = vld [vmem:[%s7654_s3] sm:$0xf]  ;;  %5452 = vmatprep.mubr.msk.f32.mxu1 %vm2940_vm2, %v7468_v31 }
 0x241   : > { %5421 = vmatprep.subr.mxu0 %v7712_v27  ;;  %v2851_v10 = vmul.f32 %v2781_v2, %v6918_v0  ;;  %v2850_v59 = vmul.f32 %v2776_v33, %v6927_v51  ;;  %v3875_v33 = vld [vmem:[#allocation5] sm:$0xff] }
 0x242   : > { %5422 = vmatpush3.msra.mxu0 %v2861_v18  ;;  %v2849_v4 = vmul.f32 %v2771_v19, %v6936_v7 }
 0x243   : > { %5423 = vmatprep.subr.mxu0 %v7712_v27 }
 0x244   : > { %5424 = vmatpush3.msra.mxu0 %v2860_v37 }
 0x245   : > { %5425 = vmatprep.subr.mxu0 %v7712_v27 }
 0x246   : > { %5426 = vmatpush3.msra.mxu0 %v2859_v34 }
 0x247   : > { %5427 = vmatprep.subr.mxu0 %v7712_v27 }
 0x248   : > { %5428 = vmatpush3.msra.mxu0 %v2858_v52 }
 0x249   : > { %5429 = vmatprep.subr.mxu0 %v7712_v27 }
 0x24a   : > { %5430 = vmatpush3.msra.mxu0 %v2857_v54 }
 0x24b   : > { %5431 = vmatprep.subr.mxu0 %v7712_v27 }
 0x24c   : > { %5432 = vmatpush3.msra.mxu0 %v2856_v58 }
 0x24d   : > { %5433 = vmatprep.subr.mxu0 %v7712_v27 }
 0x24e   : > { %5434 = vmatpush3.msra.mxu0 %v2855_v60 }
 0x24f   : > { %5435 = vmatprep.subr.mxu0 %v7712_v27 }
 0x250   : > { %5436 = vmatpush3.msra.mxu0 %v2854_v36 }
 0x251   : > { %5437 = vmatprep.subr.mxu0 %v7712_v27 }
 0x252   : > { %5438 = vmatpush3.msra.mxu0 %v2853_v3 }
 0x253   : > { %5439 = vmatprep.subr.mxu0 %v7712_v27 }
 0x254   : > { %5440 = vmatpush3.msra.mxu0 %v2852_v46 }
 0x255   : > { %5441 = vmatprep.subr.mxu0 %v7712_v27 }
 0x256   : > { %5442 = vmatpush3.msra.mxu0 %v2851_v10 }
 0x257   : > { %5443 = vmatprep.subr.mxu0 %v7712_v27 }
 0x258   : > { %5444 = vmatpush3.msra.mxu0 %v2850_v59 }
 0x259   : > { %5445 = vmatprep.subr.mxu0 %v7712_v27 }
 0x25a   : > { %5446 = vmatpush3.msra.mxu0 %v2849_v4 }
 0x25b   : > { %v1629_v40 = vpop.f32.mrf.mxu0  ;;  %5448 = vmatmul.mubr.f32.vlgmr.msra.gmra.mxu0 %v5702_v16 }
 0x25c   : > { %5460 = vmatprep.mubr.msk.f32.mxu0 %vm2940_vm2, %v7468_v31  ;;  %v1633_v9 = vmax.f32 %v7405_v23, %v1629_v40 }
 0x25d   : > { %v5071_v0 = vpop.f32.mrf.mxu0 }
 0x27b   : > { %v1846_v53 = vpop.f32.mrf.mxu0 }
 0x27c   : > { %v1850_v15 = vmax.f32 %v1633_v9, %v1846_v53 }
 0x27d   : > { %v5134_v1 = vpop.f32.mrf.mxu0 }
 0x27e   : > { %v5703_v1 = vld [vmem:[%s6163_s19 + $0x8] sm:$0xff]  }
 0x29b   : > { %v2063_v42 = vpop.f32.mrf.mxu0 }
 0x29c   : > { %v2067_v38 = vmax.f32 %v1850_v15, %v2063_v42  ;;  %v5706_v15 = vld [vmem:[%s6163_s19] sm:$0xff]  }
 0x29d   : > { %v5197_v51 = vpop.f32.mrf.mxu0 }
 0x29e   : > { %v5704_v51 = vld [vmem:[%s6163_s19 + $0x18] sm:$0xff]  }
 0x2bb   : > { %v2280_v27 = vpop.f32.mrf.mxu0 }
 0x2bc   : > { %v2284_v49 = vmax.f32 %v2067_v38, %v2280_v27  ;;  %v3043_v38 = vunpack.c.h.bf16 %v5706_v15 }
 0x2bd   : > { %v5260_v7 = vpop.f32.mrf.mxu0 }
 0x2db   : > { %v2497_v28 = vpop.f32.mrf.mxu0 }
 0x2dc   : > { %v2501_v5 = vmax.f32 %v2284_v49, %v2497_v28 }
 0x2dd   : > { %v5323_v29 = vpop.f32.mrf.mxu0 }
 0x2de   : > { %v3148_v29 = vunpack.c.l.bf16 %v5704_v51 }
 0x2fb   : > { %v2714_v43 = vpop.f32.mrf.mxu0 }
 0x2fc   : > { %v2718_v48 = vmax.f32 %v2501_v5, %v2714_v43 }
 0x2fd   : > { %v5386_v8 = vpop.f32.mrf.mxu0 }
 0x31b   : > { %v2931_v57 = vpop.f32.mrf.mxu0 }
 0x31c   : > { %v2935_v39 = vmax.f32 %v2718_v48, %v2931_v57  ;;  %v5707_v48 = vld [vmem:[%s6163_s19 + $0x10] sm:$0xff]  }
 0x31d   : > { %v5449_v56 = vpop.f32.mrf.mxu0 }
 0x31e   : > { %v2936_v6 = vsub.f32 %v7405_v23, %v2935_v39  ;;  %v3054_v24 = vsub.f32 %v1629_v40, %v2935_v39  ;;  %v3158_v21 = vsub.f32 %v1846_v53, %v2935_v39  ;;  %v3262_v17 = vsub.f32 %v2063_v42, %v2935_v39 }
 0x31f   : > { %v3366_v44 = vsub.f32 %v2280_v27, %v2935_v39  ;;  %v3470_v26 = vsub.f32 %v2497_v28, %v2935_v39  ;;  %v3574_v13 = vsub.f32 %v2714_v43, %v2935_v39  ;;  %v3678_v14 = vsub.f32 %v2931_v57, %v2935_v39  ;;  %v5705_v43 = vld [vmem:[%s6163_s19 + $0x28] sm:$0xff]  }
 0x320   : > { %v2937_v63 = vmul.f32 1.442695, %v2936_v6  ;;  %v3055_v11 = vmul.f32 1.442695, %v3054_v24  ;;  %v3159_v45 = vmul.f32 1.442695, %v3158_v21  ;;  %v3045_v42 = vunpack.c.h.bf16 %v5703_v1 }
 0x321   : > { %v3263_v61 = vmul.f32 1.442695, %v3262_v17  ;;  %v3367_v47 = vmul.f32 1.442695, %v3366_v44  ;;  %v3471_v55 = vmul.f32 1.442695, %v3470_v26  ;;  %v3044_v28 = vunpack.c.l.bf16 %v5703_v1 }
 0x322   : > { %5684 = vpow2.f32 %v2937_v63  ;;  %v3575_v23 = vmul.f32 1.442695, %v3574_v13  ;;  %v3679_v12 = vmul.f32 1.442695, %v3678_v14  ;;  %v3253_v8 = vunpack.c.h.bf16 %v5705_v43  ;;  %v5708_v17 = vld [vmem:[%s6163_s19 + $0x20] sm:$0xff]  }
 0x323   : > { %5686 = vpow2.f32 %v3055_v11  ;;  %v3147_v57 = vunpack.c.h.bf16 %v5707_v48  ;;  %v3252_v56 = vunpack.c.l.bf16 %v5705_v43  ;;  %v3042_v24 = vunpack.c.l.bf16 %v5706_v15 }
 0x324   : > { %5688 = vpow2.f32 %v3159_v45  ;;  %v3146_v21 = vunpack.c.l.bf16 %v5707_v48  ;;  %v3251_v44 = vunpack.c.h.bf16 %v5708_v17  ;;  %v3250_v13 = vunpack.c.l.bf16 %v5708_v17 }
 0x325   : > { %5690 = vpow2.f32 %v3263_v61  ;;  %v5709_v61 = vld [vmem:[%s6163_s19 + $0x38] sm:$0xff]  }
 0x326   : > { %5692 = vpow2.f32 %v3367_v47  ;;  %v3357_v47 = vunpack.c.h.bf16 %v5709_v61 }
 0x327   : > { %5694 = vpow2.f32 %v3471_v55 }
 0x328   : > { %5696 = vpow2.f32 %v3575_v23  ;;  %v3356_v23 = vunpack.c.l.bf16 %v5709_v61 }
 0x329   : > { %5698 = vpow2.f32 %v3679_v12  ;;  %v5710_v12 = vld [vmem:[%s6163_s19 + $0x48] sm:$0xff]  }
 0x32f   : > { %v5685_v30 = vpop.eup %5684 }
 0x330   : > { %v5687_v18 = vpop.eup %5686  ;;  %5450 = vmatprep.subr.msk.mxu1 %vm2953_vm3, %v5685_v30 }
 0x331   : > { %v3057_v35 = vadd.f32 %v5687_v18, %v5685_v30  ;;  %5458 = vmatprep.subr.msk.mxu0 %vm2953_vm3, %v5687_v18  ;;  %5451 = vmatpush3.msk.msra.mxu1 %vm2953_vm3, %v5685_v30  ;;  %v5689_v37 = vpop.eup %5688  ;;  %v3461_v30 = vunpack.c.h.bf16 %v5710_v12 }
 0x332   : > { %5459 = vmatpush3.msk.msra.mxu0 %vm2953_vm3, %v5687_v18  ;;  %5453 = vmatmul.mubr.msk.f32.vlgmr.msra.gmra.mxu1 %vm2940_vm2, %v7479_v22  ;;  %v5691_v20 = vpop.eup %5690 }
 0x333   : > { %v3161_v34 = vadd.f32 %v5689_v37, %v3057_v35  ;;  %5461 = vmatmul.mubr.msk.f32.vlgmr.msra.gmra.mxu0 %vm2940_vm2, %v7479_v22  ;;  %5466 = vmatprep.subr.msk.mxu1 %vm2953_vm3, %v5689_v37  ;;  %v5693_v52 = vpop.eup %5692 }
 0x334   : > { %5474 = vmatprep.subr.msk.mxu0 %vm2953_vm3, %v5691_v20  ;;  %5467 = vmatpush3.msk.msra.mxu1 %vm2953_vm3, %v5689_v37  ;;  %v5695_v54 = vpop.eup %5694 }
 0x335   : > { %v3265_v41 = vadd.f32 %v5691_v20, %v3161_v34  ;;  %5475 = vmatpush3.msk.msra.mxu0 %vm2953_vm3, %v5691_v20  ;;  %5482 = vmatprep.subr.msk.mxu1 %vm2953_vm3, %v5693_v52  ;;  %v5697_v60 = vpop.eup %5696 }
 0x336   : > { %5490 = vmatprep.subr.msk.mxu0 %vm2953_vm3, %v5695_v54  ;;  %5455 = vmatprep.mubr.msk.f32.mxu1 %vm2940_vm2, %v1040_v25  ;;  %v5699_v36 = vpop.eup %5698 }
 0x337   : > { %v3369_v58 = vadd.f32 %v5693_v52, %v3265_v41  ;;  %5463 = vmatprep.mubr.msk.f32.mxu0 %vm2940_vm2, %v1040_v25  ;;  %5456 = vmatmul.mubr.msk.f32.gmra.mxu1 %vm2940_vm2, %v1041_v32  ;;  %v3460_v41 = vunpack.c.l.bf16 %v5710_v12 }
 0x338   : > { %5464 = vmatmul.mubr.msk.f32.gmra.mxu0 %vm2940_vm2, %v1041_v32  ;;  %5468 = vmatprep.mubr.msk.f32.mxu1 %vm2940_vm2, %v7468_v31 }
 0x339   : > { %v3473_v50 = vadd.f32 %v5695_v54, %v3369_v58  ;;  %5476 = vmatprep.mubr.msk.f32.mxu0 %vm2940_vm2, %v7468_v31 }
 0x33b   : > { %v3577_v62 = vadd.f32 %v5697_v60, %v3473_v50  ;;  %5469 = vmatmul.mubr.msk.f32.vlgmr.msra.gmra.mxu1 %vm2940_vm2, %v7479_v22 }
 0x33c   : > { %5477 = vmatmul.mubr.msk.f32.vlgmr.msra.gmra.mxu0 %vm2940_vm2, %v7479_v22  ;;  %5483 = vmatpush3.msk.msra.mxu1 %vm2953_vm3, %v5693_v52  ;;  %v5711_v52 = vld [vmem:[%s6163_s19 + $0x30] sm:$0xff]  }
 0x33d   : > { %v3681_v2 = vadd.f32 %v5699_v36, %v3577_v62  ;;  %5491 = vmatpush3.msk.msra.mxu0 %vm2953_vm3, %v5695_v54  ;;  %5498 = vmatprep.subr.msk.mxu1 %vm2953_vm3, %v5697_v60 }
 0x33e   : > { %5506 = vmatprep.subr.msk.mxu0 %vm2953_vm3, %v5699_v36  ;;  %5471 = vmatprep.mubr.msk.f32.mxu1 %vm2940_vm2, %v1040_v25 }
 0x33f   : > { %5700 = vrcp.f32 %v3681_v2  ;;  %5479 = vmatprep.mubr.msk.f32.mxu0 %vm2940_vm2, %v1040_v25  ;;  %5472 = vmatmul.mubr.msk.f32.gmra.mxu1 %vm2940_vm2, %v1041_v32 }
 0x340   : > { %5480 = vmatmul.mubr.msk.f32.gmra.mxu0 %vm2940_vm2, %v1041_v32  ;;  %5484 = vmatprep.mubr.msk.f32.mxu1 %vm2940_vm2, %v7468_v31 }
 0x341   : > { %5492 = vmatprep.mubr.msk.f32.mxu0 %vm2940_vm2, %v7468_v31 }
 0x343   : > { %5485 = vmatmul.mubr.msk.f32.vlgmr.msra.gmra.mxu1 %vm2940_vm2, %v7479_v22 }
 0x344   : > { %5493 = vmatmul.mubr.msk.f32.vlgmr.msra.gmra.mxu0 %vm2940_vm2, %v7479_v22  ;;  %5499 = vmatpush3.msk.msra.mxu1 %vm2953_vm3, %v5697_v60 }
 0x345   : > { %5507 = vmatpush3.msk.msra.mxu0 %vm2953_vm3, %v5699_v36  ;;  %5487 = vmatprep.mubr.msk.f32.mxu1 %vm2940_vm2, %v1040_v25 }
 0x346   : > { %5495 = vmatprep.mubr.msk.f32.mxu0 %vm2940_vm2, %v1040_v25 }
 0x347   : > { %5488 = vmatmul.mubr.msk.f32.gmra.mxu1 %vm2940_vm2, %v1041_v32 }
 0x348   : > { %5500 = vmatprep.mubr.msk.f32.mxu1 %vm2940_vm2, %v7468_v31  ;;  %5496 = vmatmul.mubr.msk.f32.gmra.mxu0 %vm2940_vm2, %v1041_v32 }
 0x349   : > { %5508 = vmatprep.mubr.msk.f32.mxu0 %vm2940_vm2, %v7468_v31 }
 0x34b   : > { %5501 = vmatmul.mubr.msk.f32.vlgmr.msra.gmra.mxu1 %vm2940_vm2, %v7479_v22 }
 0x34c   : > { %v5701_v3 = vpop.eup %5700  ;;  %5503 = vmatprep.mubr.msk.f32.mxu1 %vm2940_vm2, %v1040_v25  ;;  %5509 = vmatmul.mubr.msk.f32.vlgmr.msra.gmra.mxu0 %vm2940_vm2, %v7479_v22 }
 0x34d   : > { %5514 = vmatprep.subr.msk.mxu1 %vm2953_vm3, %v5701_v3  ;;  %5511 = vmatprep.mubr.msk.f32.mxu0 %vm2940_vm2, %v1040_v25 }
 0x34e   : > { %5515 = vmatpush3.msk.msra.mxu1 %vm2953_vm3, %v5701_v3  ;;  %v3354_v3 = vunpack.c.l.bf16 %v5711_v52 }
 0x34f   : > { %5504 = vmatmul.mubr.msk.f32.gmra.mxu1 %vm2940_vm2, %v1041_v32 }
 0x350   : > { %5516 = vmatprep.mubr.msk.f32.mxu1 %vm2940_vm2, %v7468_v31  ;;  %5512 = vmatmul.mubr.msk.f32.gmra.mxu0 %vm2940_vm2, %v1041_v32  ;;  %v3149_v31 = vunpack.c.h.bf16 %v5704_v51 }
 0x351   : > { %5530 = vmatprep.mubr.msk.f32.mxu0 %vm843_vm0, %v3875_v33  ;;  %v5712_v33 = vld [vmem:[%s6163_s19 + $0x40] sm:$0xff]  }
 0x353   : > { %5517 = vmatmul.mubr.msk.f32.vlgmr.msra.gmra.mxu1 %vm2940_vm2, %v7479_v22 }
 0x354   : > { %5519 = vmatprep.mubr.msk.f32.mxu1 %vm2940_vm2, %v1040_v25 }
 0x357   : > { %5520 = vmatmul.mubr.msk.f32.gmra.mxu1 %vm2940_vm2, %v1041_v32  ;;  %v3355_v32 = vunpack.c.h.bf16 %v5711_v52 }
 0x3f2   : > { %v5454_v46 = vpop.f32.mrf.mxu1 }
 0x3f3   : > { %v5462_v19 = vpop.f32.mrf.mxu0  ;;  %v3047_v22 = vmul.f32 %v5454_v46, %v3043_v38  ;;  %v3459_v46 = vunpack.c.h.bf16 %v5712_v33 }
 0x3f4   : > { %v3023_v10 = vpop.f32.mrf.mxu1  ;;  %v3151_v18 = vmul.f32 %v5462_v19, %v3147_v57  ;;  %v5715_v57 = vld [vmem:[%s6163_s19 + $0x68] sm:$0xff]  }
 0x3f5   : > { %v3127_v59 = vpop.f32.mrf.mxu0  ;;  %v3046_v34 = vmul.f32 %v3042_v24, %v3023_v10 }
 0x3f6   : > { %v3150_v25 = vmul.f32 %v3146_v21, %v3127_v59 }
 0x3f7   : > { %v5457_v4 = vpop.f32.mrf.mxu1 }
 0x3f8   : > { %v5465_v40 = vpop.f32.mrf.mxu0  ;;  %v3049_v5 = vmul.f32 %v5457_v4, %v3045_v42  ;;  %v5713_v4 = vld [vmem:[%s6163_s19 + $0x58] sm:$0xff]   ;;  %v3154_v42 = vadd.f32 %v3150_v25, %v3046_v34 }
 0x3f9   : > { %v3033_v16 = vpop.f32.mrf.mxu1  ;;  %v3153_v39 = vmul.f32 %v5465_v40, %v3149_v31  ;;  %v3565_v40 = vunpack.c.h.bf16 %v5713_v4  ;;  %v3564_v31 = vunpack.c.l.bf16 %v5713_v4 }
 0x3fa   : > { %v3137_v0 = vpop.f32.mrf.mxu0  ;;  %v3048_v11 = vmul.f32 %v3044_v28, %v3033_v16  ;;  %v3155_v16 = vadd.f32 %v3151_v18, %v3047_v22 }
 0x3fb   : > { %v5470_v53 = vpop.f32.mrf.mxu1  ;;  %v3152_v26 = vmul.f32 %v3148_v29, %v3137_v0  ;;  %v3157_v35 = vadd.f32 %v3153_v39, %v3049_v5  ;;  %v3669_v39 = vunpack.c.h.bf16 %v5715_v57 }
 0x3fc   : > { %v7558_v27 = vpop.f32.mrf.mxu0  ;;  %v3255_v58 = vmul.f32 %v5470_v53, %v3251_v44  ;;  %v3458_v53 = vunpack.c.l.bf16 %v5712_v33 }
 0x3fd   : > { %v3231_v7 = vpop.f32.mrf.mxu1  ;;  %v3156_v50 = vadd.f32 %v3152_v26, %v3048_v11 }
 0x3fe   : > { %v7561_v9 = vpop.f32.mrf.mxu0  ;;  %v3254_v2 = vmul.f32 %v3250_v13, %v3231_v7  ;;  %v3259_v28 = vadd.f32 %v3255_v58, %v3155_v16  ;;  %v3359_v7 = vmul.f32 %v7558_v27, %v3355_v32  ;;  %v5717_v13 = vld [vmem:[%s6163_s19 + $0x78] sm:$0xff]  }
 0x3ff   : > { %v5473_v49 = vpop.f32.mrf.mxu1  ;;  %v3358_v38 = vmul.f32 %v3354_v3, %v7561_v9  ;;  %v3772_v22 = vunpack.c.l.bf16 %v5717_v13 }
 0x400   : > { %v5481_v6 = vpop.f32.mrf.mxu0  ;;  %v3257_v45 = vmul.f32 %v5473_v49, %v3253_v8  ;;  %v3258_v15 = vadd.f32 %v3254_v2, %v3154_v42  ;;  %v5714_v49 = vld [vmem:[%s6163_s19 + $0x50] sm:$0xff]   ;;  %v3363_v61 = vadd.f32 %v3359_v7, %v3259_v28 }
 0x401   : > { %v3241_v63 = vpop.f32.mrf.mxu1  ;;  %v3361_v62 = vmul.f32 %v5481_v6, %v3357_v47  ;;  %v3563_v5 = vunpack.c.h.bf16 %v5714_v49  ;;  %v3562_v27 = vunpack.c.l.bf16 %v5714_v49  ;;  %v3876_v49 = vld [vmem:[#allocation5 + $0x8] sm:$0xff] }
 0x402   : > { %v3345_v55 = vpop.f32.mrf.mxu0  ;;  %v3256_v37 = vmul.f32 %v3252_v56, %v3241_v63  ;;  %v3261_v60 = vadd.f32 %v3257_v45, %v3157_v35  ;;  %v5716_v63 = vld [vmem:[%s6163_s19 + $0x60] sm:$0xff]   ;;  %v3668_v45 = vunpack.c.l.bf16 %v5715_v57  ;;  %v3362_v12 = vadd.f32 %v3358_v38, %v3258_v15 }
 0x403   : > { %v5486_v14 = vpop.f32.mrf.mxu1  ;;  %v3360_v59 = vmul.f32 %v3356_v23, %v3345_v55  ;;  %v3667_v11 = vunpack.c.h.bf16 %v5716_v63  ;;  %v3773_v23 = vunpack.c.h.bf16 %v5717_v13  ;;  %v4004_v57 = vld [vmem:[#allocation8] sm:$0xff]  ;;  %v4005_v13 = vld [vmem:[#allocation8 + $0x8] sm:$0xff] }
 0x404   : > { %v5494_v20 = vpop.f32.mrf.mxu0  ;;  %v3260_v10 = vadd.f32 %v3256_v37, %v3156_v50  ;;  %v3365_v29 = vadd.f32 %v3361_v62, %v3261_v60  ;;  %v3463_v56 = vmul.f32 %v5486_v14, %v3459_v46  ;;  %5544 = vmatprep.mubr.msk.f32.mxu1 %vm843_vm0, %v4004_v57 }
 0x405   : > { %v3439_v54 = vpop.f32.mrf.mxu1  ;;  %v3567_v35 = vmul.f32 %v5494_v20, %v3563_v5  ;;  %v3877_v5 = vld [vmem:[#allocation5 + $0x10] sm:$0xff] }
 0x406   : > { %v3543_v36 = vpop.f32.mrf.mxu0  ;;  %v3364_v6 = vadd.f32 %v3360_v59, %v3260_v10  ;;  %v3462_v44 = vmul.f32 %v3458_v53, %v3439_v54  ;;  %v3467_v18 = vadd.f32 %v3463_v56, %v3363_v61 }
 0x407   : > { %v5489_v19 = vpop.f32.mrf.mxu1  ;;  %v3566_v32 = vmul.f32 %v3562_v27, %v3543_v36 }
 0x408   : > { %v3465_v0 = vmul.f32 %v5489_v19, %v3461_v30  ;;  %v5497_v1 = vpop.f32.mrf.mxu0  ;;  %v3666_v30 = vunpack.c.l.bf16 %v5716_v63  ;;  %v3466_v52 = vadd.f32 %v3462_v44, %v3362_v12  ;;  %v3571_v4 = vadd.f32 %v3567_v35, %v3467_v18  ;;  %v4007_v12 = vld [vmem:[#allocation8 + $0x18] sm:$0xff] }
 0x409   : > { %v3449_v51 = vpop.f32.mrf.mxu1  ;;  %v3569_v21 = vmul.f32 %v5497_v1, %v3565_v40  ;;  %v4136_v35 = vstv %s4129_s9  ;;  %s4150_s9 = scalar_lea.sflag [#allocation7], %s6159_s23 }
 0x40a   : > { %v3464_v43 = vmul.f32 %v3460_v41, %v3449_v51  ;;  %v3553_v8 = vpop.f32.mrf.mxu0  ;;  %v3469_v24 = vadd.f32 %v3465_v0, %v3365_v29  ;;  %v5718_v41 = vld [vmem:[%s6163_s19 + $0x70] sm:$0xff]   ;;  %v3570_v59 = vadd.f32 %v3566_v32, %v3466_v52  ;;  %s7727_s19 = sld [smem:[#allocation16_spill]]  ;;  %v5720_v32 = vld [vmem:[%s6167_s30] sm:$0xff] }
 0x40b   : > { %v5502_v48 = vpop.f32.mrf.mxu1  ;;  %v3568_v9 = vmul.f32 %v3564_v31, %v3553_v8  ;;  %v3771_v58 = vunpack.c.h.bf16 %v5718_v41  ;;  %v3770_v46 = vunpack.c.l.bf16 %v5718_v41 }
 0x40c   : > { %v5510_v17 = vpop.f32.mrf.mxu0  ;;  %v3468_v47 = vadd.f32 %v3464_v43, %v3364_v6  ;;  %v3573_v37 = vadd.f32 %v3569_v21, %v3469_v24  ;;  %v3671_v54 = vmul.f32 %v5502_v48, %v3667_v11  ;;  %v3878_v48 = vld [vmem:[#allocation5 + $0x18] sm:$0xff]  ;;  %v3896_v6 = vpop.permute.xlu1 %3895 }
 0x40d   : > { %v3647_v26 = vpop.f32.mrf.mxu1  ;;  %v3775_v1 = vmul.f32 %v5510_v17, %v3771_v58 }
 0x40e   : > { %v3751_v55 = vpop.f32.mrf.mxu0  ;;  %v3572_v60 = vadd.f32 %v3568_v9, %v3468_v47  ;;  %v3670_v40 = vmul.f32 %v3666_v30, %v3647_v26  ;;  %v3675_v0 = vadd.f32 %v3671_v54, %v3571_v4  ;;  %v4131_v30 = vstv %s4130_s14  ;;  %s5775_s14 = scalar_lea.vmem %s7593_s27, 512 }
 0x40f   : > { %v5505_v14 = vpop.f32.mrf.mxu1  ;;  %v3774_v51 = vmul.f32 %v3770_v46, %v3751_v55  ;;  %v4132_v54 = vmul.f32 %v5720_v32, %v4131_v30  ;;  %p5776_p3 = scmp.ne.s32.totalorder %s7593_s27, %s5775_s14 }
 0x410   : > { %v3673_v34 = vmul.f32 %v5505_v14, %v3669_v39  ;;  %v5513_v25 = vpop.f32.mrf.mxu0  ;;  %v3674_v53 = vadd.f32 %v3670_v40, %v3570_v59  ;;  %v3779_v29 = vadd.f32 %v3775_v1, %v3675_v0  ;;  %v3901_v39 = vpop.permute.xlu0 %3900  ;;  %s4549_s18 = sshll.u32 %s7727_s19, 3  ;;  %v5722_v40 = vld [vmem:[%s6167_s30 + $0x10] sm:$0xff] }
 0x411   : > { %v3657_v50 = vpop.f32.mrf.mxu1  ;;  %v3777_v3 = vmul.f32 %v5513_v25, %v3773_v23  ;;  %v4006_v23 = vld [vmem:[#allocation8 + $0x10] sm:$0xff]  ;;  %s4161_s21 = sadd.s32 %s7728_s0, %s4549_s18  ;;  %p5777_p13 = pnand %p5776_p3, %p7732_p8 }
 0x412   : > { %v3677_v62 = vadd.f32 %v3673_v34, %v3573_v37  ;;  %v3672_v2 = vmul.f32 %v3668_v45, %v3657_v50  ;;  %v3761_v33 = vpop.f32.mrf.mxu0  ;;  %v3778_v15 = vadd.f32 %v3774_v51, %v3674_v53  ;;  %v3886_v45 = vpop.permute.xlu1 %3885  ;;  %v5719_v37 = vld [vmem:[%s6167_s30 + $0x8] sm:$0xff]  ;;  %s4550_s4 = sshll.u32 %s4161_s21, 7  ;;  %s5884_s0 = smov [#allocation10]  }
 0x413   : > { %v5518_v19 = vpop.f32.mrf.mxu1  ;;  %v3776_v20 = vmul.f32 %v3772_v22, %v3761_v33  ;;  %v4133_v34 = vmul.f32 %v5719_v37, %v4131_v30  ;;  %p5778_p0 = pneg %p5777_p13  ;;  %s5779_s18 = sshll.u32 %s5884_s0, 4  ;;  %s5780_s18 = int_to_ptr.vmem [resolvable:$false] %s5779_s18 }
 0x414   : > { %v3676_v16 = vadd.f32 %v3672_v2, %v3572_v60  ;;  %v3781_v36 = vadd.f32 %v3777_v3, %v3677_v62  ;;  %v3872_v8 = vmul.f32 %v5518_v19, %v3779_v29  ;;  %v3891_v44 = vpop.permute.xlu0 %3890  ;;  %v5721_v62 = vld [vmem:[%s6167_s30 + $0x18] sm:$0xff]  ;;  %s7730_s30 = sld [smem:[#allocation37_spill]]  ;;  %s5781_s21 = scalar_lea.vmem %s5780_s18, 1024 }
 0x415   : > { %v3852_v10 = vpop.f32.mrf.mxu1  ;;  %v4135_v2 = vmul.f32 %v5721_v62, %v4131_v30  ;;  %p5782_p2 = scmp.lt.s32.totalorder %s7593_s27, %s5780_s18  ;;  %p5783_p4 = scmp.lt.s32.totalorder %s5781_s21, %s5775_s14 }
 0x416   : > { %v3780_v28 = vadd.f32 %v3776_v20, %v3676_v16  ;;  %v3871_v38 = vmul.f32 %v3852_v10, %v3778_v15  ;;  %v4020_v14 = vpop.permute.xlu1 %4019  ;;  %v4134_v16 = vmul.f32 %v5722_v40, %v4131_v30 }
 0x417   : > { %v5521_v42 = vpop.f32.mrf.mxu1  ;;  %p5784_p12 = por %p5783_p4, %p5782_p2 }
 0x418   : > { %v3874_v31 = vmul.f32 %v5521_v42, %v3781_v36  ;;  %v4015_v22 = vpop.permute.xlu0 %4014 }
 0x419   : > { %v3862_v7 = vpop.f32.mrf.mxu1  ;;  %p5785_p1 = pnand %p5784_p12, %p5778_p0 }
 0x41a   : > { %v3873_v43 = vmul.f32 %v3862_v7, %v3780_v28  ;;  %5522 = vmatprep.subr.mxu0 %v3874_v31  ;;  %v4030_v50 = vpop.permute.xlu1 %4029  ;;  %s7731_s13 = smov %s7730_s30  ;;  %s7598_s19 = scalar_lea.hbm %s7730_s30, %s4550_s4 }
 0x41b   : > { %5523 = vmatpush3.msra.mxu0 %v3874_v31 }
 0x41c   : > { %5524 = vmatprep.subr.mxu0 %v3873_v43  ;;  %v4025_v19 = vpop.permute.xlu0 %4024 }
 0x41d   : > { %5525 = vmatpush3.msra.mxu0 %v3873_v43 }
 0x41e   : > { %5526 = vmatprep.subr.mxu0 %v3872_v8 }
 0x41f   : > { %5527 = vmatpush3.msra.mxu0 %v3872_v8 }
 0x420   : > { %5528 = vmatprep.subr.mxu0 %v3871_v38 }
 0x421   : > { %5529 = vmatpush3.msra.mxu0 %v3871_v38 }
 0x422   : > { %5531 = vmatmul.mubr.msk.f32.vlgmr.msra.gmra.mxu0 %vm843_vm0, %v3876_v49 }
 0x423   : > { %5533 = vmatprep.mubr.msk.f32.mxu0 %vm843_vm0, %v3877_v5 }
 0x426   : > { %5534 = vmatmul.mubr.msk.f32.gmra.mxu0 %vm843_vm0, %v3878_v48 }
 0x4e2   : > { %v5532_v56 = vpop.f32.mrf.mxu0 }
 0x4e3   : > { %v3987_v63 = vadd.f32 %v5532_v56, %v3891_v44 }
 0x4e4   : > { %v3981_v24 = vpop.f32.mrf.mxu0 }
 0x4e5   : > { %v3982_v61 = vadd.f32 %v3981_v24, %v3886_v45  ;;  %v4001_v9 = vmax.f32 %v3987_v63, 0.0 }
 0x4e6   : > { %v5535_v21 = vpop.f32.mrf.mxu0 }
 0x4e7   : > { %v3997_v17 = vadd.f32 %v5535_v21, %v3901_v39  ;;  %v4000_v55 = vmax.f32 %v3982_v61, 0.0 }
 0x4e8   : > { %v3991_v27 = vpop.f32.mrf.mxu0 }
 0x4e9   : > { %v4003_v11 = vmax.f32 %v3997_v17, 0.0  ;;  %v3992_v26 = vadd.f32 %v3991_v27, %v3896_v6 }
 0x4eb   : > { %v4002_v47 = vmax.f32 %v3992_v26, 0.0  ;;  %5536 = vmatprep.subr.mxu1 %v4003_v11 }
 0x4ec   : > { %5537 = vmatpush3.msra.mxu1 %v4003_v11 }
 0x4ed   : > { %5538 = vmatprep.subr.mxu1 %v4002_v47 }
 0x4ee   : > { %5539 = vmatpush3.msra.mxu1 %v4002_v47 }
 0x4ef   : > { %5540 = vmatprep.subr.mxu1 %v4001_v9 }
 0x4f0   : > { %5541 = vmatpush3.msra.mxu1 %v4001_v9 }
 0x4f1   : > { %5542 = vmatprep.subr.mxu1 %v4000_v55 }
 0x4f2   : > { %5543 = vmatpush3.msra.mxu1 %v4000_v55 }
 0x4f3   : > { %5545 = vmatmul.mubr.msk.f32.vlgmr.msra.gmra.mxu1 %vm843_vm0, %v4005_v13 }
 0x4f4   : > { %5547 = vmatprep.mubr.msk.f32.mxu1 %vm843_vm0, %v4006_v23 }
 0x4f7   : > { %5548 = vmatmul.mubr.msk.f32.gmra.mxu1 %vm843_vm0, %v4007_v12 }
 0x5b3   : > { %v5546_v18 = vpop.f32.mrf.mxu1 }
 0x5b4   : > { %v4116_v25 = vadd.f32 %v5546_v18, %v4020_v14 }
 0x5b5   : > { %v4110_v52 = vpop.f32.mrf.mxu1 }
 0x5b6   : > { %v4138_v41 = vmul.f32 %v4136_v35, %v4116_v25  ;;  %v4111_v58 = vadd.f32 %v4110_v52, %v4015_v22 }
 0x5b7   : > { %v5549_v60 = vpop.f32.mrf.mxu1 }
 0x5b8   : > { %v4142_v3 = vadd.f32 %v4138_v41, %v4133_v34  ;;  %v4137_v33 = vmul.f32 %v4136_v35, %v4111_v58  ;;  %v4126_v46 = vadd.f32 %v5549_v60, %v4030_v50 }
 0x5b9   : > { %v4120_v4 = vpop.f32.mrf.mxu1 }
 0x5ba   : > { %4146 = vst [vmem:[%s725_s26 + $0x8] sm:$0xff] %v4142_v3  ;;  %v4141_v20 = vadd.f32 %v4137_v33, %v4132_v54  ;;  %v4140_v10 = vmul.f32 %v4136_v35, %v4126_v46  ;;  %v4121_v59 = vadd.f32 %v4120_v4, %v4025_v19 }
 0x5bc   : > { %4145 = vst [vmem:[%s725_s26] sm:$0xff] %v4141_v20  ;;  %v4144_v0 = vadd.f32 %v4140_v10, %v4135_v2  ;;  %v4139_v1 = vmul.f32 %v4136_v35, %v4121_v59 }
 0x5be   : > { %4148 = vst [vmem:[%s725_s26 + $0x18] sm:$0xff] %v4144_v0  ;;  %v4143_v36 = vadd.f32 %v4139_v1, %v4134_v16 }
 0x5c0   : > { %4147 = vst [vmem:[%s725_s26 + $0x10] sm:$0xff] %v4143_v36 }
 0x5c1   : > { %5788 = shalt.err (!%p5785_p1)
}
 0x5c2   : > { %s5789_s26 = scalar_lea.hbm %s7598_s19, 512  ;;  %s5793_s24 = scalar_lea.hbm %s7731_s13, 2048 }
 0x5c3   : > { %p5790_p5 = scmp.ne.s32.totalorder %s7598_s19, %s5789_s26  ;;  %p5794_p7 = scmp.lt.s32.totalorder %s7598_s19, %s7731_s13 }
 0x5c4   : > { %p5795_p9 = scmp.lt.s32.totalorder %s5793_s24, %s5789_s26 }
 0x5c5   : > { %p5791_p6 = pnand %p5790_p5, %p7732_p8 }
 0x5c6   : > { %p5796_p11 = por %p5795_p9, %p5794_p7 }
 0x5c7   : > { %p5792_p10 = pneg %p5791_p6 }
 0x5c9   : > { %p5797_p3 = pnand %p5796_p11, %p5792_p10 }
 0x5cb   : > { %5800 = shalt.err (!%p5797_p3)
}
 0x5cc   : > { %s5885_s14 = smov 128   ;;  %s5886_s18 = smov 256  }
 0x5cd   : > { %s5887_s21 = smov 8  }
 0x5ce   : > { %5558 = dma.vmem_to_hbm [thread:$0]  (%p7732_p8), %s7593_s27, 512, %s7598_s19, %s4150_s9, %s5885_s14, %s5886_s18, %s5887_s21  }
 0x5cf PF: > { %s7733_s4 = sld [smem:[#allocation14_spill]]  ;;  %p5575_p13 = scmp.ge.s32.totalorder %s5875_s17, 2 }
 0x5d0   : > { %s7734_s22 = sld [smem:[#allocation20_spill]] }
 0x5d5   : > { %s4179_s30 = sand.u32 1, %s7733_s4  }
 0x5d6   : > { %p7735_p0 = scmp.ne.s32.totalorder %s7734_s22, 0  ;;  %s4180_s26 = scalar_lea.sflag [#allocation7], %s4179_s30 }
 0x5d8   : > { %p5568_p2 = pnand %p5575_p13, %p7735_p0 }
 0x5da   : > { %p5569_p4 = pneg %p5568_p2 }
 0x5dc   : > { %5842 = dma.done.wait (%p5569_p4), %s4180_s26, 512  }
 0x5dd   : > { %5844 = vsyncadd (%p5569_p4), %s4180_s26, 4294966784  ;;  %s29_s17 = sadd.s32 1, %s5875_s17   ;;  %s7736_s20 = sld [smem:[#allocation21_spill]] }
 0x5de   : > { %p26_p12 = scmp.ge.s32.totalorder %s29_s17, 6   ;;  %s7737_s23 = sld [smem:[#allocation17_spill]] }
 0x5df   : > { %s7738_s19 = sld [smem:[#allocation18_spill]]  ;;  %s7739_s27 = smov %s5851_s28 }
 0x5e0   : > { %s7740_s28 = smov %s5855_s29  ;;  %s7742_s30 = smov %s5867_s15 }
 0x5e1   : > { %s7743_s14 = smov %s5871_s16  ;;  %28 = sbr.rel (!%p26_p12) target bundleno = 12 (0xc), region = 215 }
 0x5e3   : > { %s7741_s29 = smov %s7736_s20 }
 0x5e4   : > { %s7744_s15 = smov %s7737_s23 }
 0x5e5   : > { %s7745_s16 = smov %s7738_s19 }
 0x5e6   :  { %4185 = vsyncpa [#allocation6], 1 }
 0x5e7   :  { %4187 = vsyncpa [#allocation6 + $0x1], 1 }
 0x5e8   :  { %4188 = vsyncpa [#allocation9], 1 }
 0x5e9   :  { %4189 = vsyncpa [#allocation7], 1 }
 0x5ea   :  { %4191 = vsyncpa [#allocation7 + $0x1], 1 }

</bundles_post_ra>
